<compile_context>
chip_gen: v6e
topology: v6e:2x2x1
jax: 0.10.0
libtpu: 0.0.40
codegen_flags: <defaults>
</compile_context>

<pallas_src>
import functools

import jax
import jax.numpy as jnp
from jax.experimental import pallas as pl
from jax.experimental.pallas import tpu as pltpu


def _layernorm(x, gamma, beta, eps=1e-5):
    mu = jnp.mean(x, axis=-1, keepdims=True)
    var = jnp.mean((x - mu) ** 2, axis=-1, keepdims=True)
    return (x - mu) * jax.lax.rsqrt(var + eps) * gamma + beta


def _silu(x):
    return x * jax.nn.sigmoid(x)


def eggc_kernel(
    h_ref,            # [N_pad, Fin]   node features (resident, constant block)
    e_ref,            # [E_tile, Fin]  edge features (per edge tile)
    src_ref,          # [E_tile, 1]    int32 source node index (pad = -1)
    dst_ref,          # [E_tile, 1]    int32 destination node index (pad = -1)
    dstt_ref,         # [1, E_tile]    int32 destination index, row layout
    w4_ref, b4_ref,   # fused node linear: cols [src_gate | dst_update | dst_gate | src_update]
    weg_ref, beg_ref, # edge_gate linear
    gn_ref, bn_ref,   # norm_nodes LayerNorm gamma/beta
    ge_ref, be_ref,   # norm_edges LayerNorm gamma/beta
    x_out_ref,        # [N_pad, Fout]  node output (resident accumulator-style block)
    y_out_ref,        # [E_tile, Fout] edge output (per edge tile)
    z4_sc,            # VMEM scratch [N_pad, 4*Fout] fused node linear result
    acc_sc,           # VMEM scratch [N_pad, 2*Fout] = [sum_sigma_h | sum_sigma]
    *, fout, residual, skip_edgenorm,
):
    t = pl.program_id(0)
    F = fout
    n_pad = h_ref.shape[0]
    e_tile = e_ref.shape[0]

    # ---- grid step 0: fused node linear (one MXU matmul) + accumulator init ----
    @pl.when(t == 0)
    def _init():
        h0 = h_ref[...]
        z4_sc[...] = (
            jnp.dot(h0, w4_ref[...], preferred_element_type=jnp.float32) + b4_ref[...]
        )
        acc_sc[...] = jnp.zeros_like(acc_sc)

    # ---- per-edge-tile work ----
    e = e_ref[...]
    egate = jnp.dot(e, weg_ref[...], preferred_element_type=jnp.float32) + beg_ref[...]

    src = src_ref[...]                       # [E_tile, 1] int32
    dst = dst_ref[...]                       # [E_tile, 1] int32
    dstt = dstt_ref[...]                     # [1, E_tile] int32
    col_iota = jax.lax.broadcasted_iota(jnp.int32, (e_tile, n_pad), 1)
    row_iota = jax.lax.broadcasted_iota(jnp.int32, (n_pad, e_tile), 0)
    # Tile-local selectors built in-register (padded edges use index -1 -> all-zero row).
    oh_src = (src == col_iota).astype(jnp.float32)      # [E_tile, N_pad]
    oh_dst = (dst == col_iota).astype(jnp.float32)      # [E_tile, N_pad]
    oh_dst_t = (dstt == row_iota).astype(jnp.float32)   # [N_pad, E_tile]

    z4 = z4_sc[...]                                     # [N_pad, 4F]
    # fused src-gather: [e_src | Bh]
    src_gath = jnp.dot(oh_src, z4[:, : 2 * F], preferred_element_type=jnp.float32)
    e_src_g = src_gath[:, :F]
    bh_g = src_gath[:, F: 2 * F]
    # dst-gather: e_dst
    e_dst_g = jnp.dot(oh_dst, z4[:, 2 * F: 3 * F], preferred_element_type=jnp.float32)

    m = e_src_g + e_dst_g + egate                       # [E_tile, F]
    sigma = jax.nn.sigmoid(m)
    msg = bh_g * sigma

    # fused scatter-add of [msg | sigma] into node accumulator (MXU, transposed one-hot)
    acc_sc[...] += jnp.dot(
        oh_dst_t, jnp.concatenate([msg, sigma], axis=-1),
        preferred_element_type=jnp.float32,
    )

    # edge output for this tile
    if skip_edgenorm:
        y = _silu(m)
    else:
        y = _silu(_layernorm(m, ge_ref[...], be_ref[...]))
    if residual:
        y = e + y
    y_out_ref[...] = y.astype(y_out_ref.dtype)

    # ---- last grid step: finalize node update ----
    @pl.when(t == pl.num_programs(0) - 1)
    def _finalize():
        acc = acc_sc[...]
        sum_sigma_h = acc[:, :F]
        sum_sigma = acc[:, F: 2 * F]
        h_agg = sum_sigma_h * pl.reciprocal(sum_sigma + 1e-6, approx=True)
        x = z4[:, 3 * F: 4 * F] + h_agg                 # src_update + aggregate
        x = _silu(_layernorm(x, gn_ref[...], bn_ref[...]))
        if residual:
            x = h_ref[...] + x
        x_out_ref[...] = x.astype(x_out_ref.dtype)


def _round_up(x, m):
    return ((x + m - 1) // m) * m


def edge_gated_graph_conv(params, node_feats, edge_feats, src, dst,
                          *, residual=True, skip_edgenorm=False, edge_tile=512):
    """EdgeGatedGraphConv.forward as one tiled Pallas call. Returns (x, y)."""
    N, Fin = node_feats.shape
    E = edge_feats.shape[0]
    Fout = params["w_sg"].shape[1]
    if residual:
        assert Fin == Fout, "residual path requires input_features == output_features"

    # Fused node-side weight: columns [src_gate | dst_update | dst_gate | src_update].
    w4 = jnp.concatenate(
        [params["w_sg"], params["w_du"], params["w_dg"], params["w_su"]], axis=1)
    b4 = jnp.concatenate(
        [params["b_sg"], params["b_du"], params["b_dg"], params["b_su"]], axis=1)

    # Padding: nodes to a sublane multiple, edges to a whole number of tiles.
    n_pad = _round_up(max(N, 8), 8)
    if E <= edge_tile:
        e_tile = _round_up(max(E, 8), 8)
        e_pad = e_tile
    else:
        assert edge_tile % 128 == 0, "edge_tile must be a multiple of 128"
        e_tile = edge_tile
        e_pad = _round_up(E, e_tile)
    n_tiles = e_pad // e_tile

    f32 = jnp.float32
    h_p = jnp.pad(node_feats.astype(f32), ((0, n_pad - N), (0, 0)))
    e_p = jnp.pad(edge_feats.astype(f32), ((0, e_pad - E), (0, 0)))
    # Padded edges get index -1 -> zero one-hot row -> no gather/scatter contribution.
    src_p = jnp.full((e_pad,), -1, jnp.int32).at[:E].set(src.astype(jnp.int32))
    dst_p = jnp.full((e_pad,), -1, jnp.int32).at[:E].set(dst.astype(jnp.int32))
    src_col = src_p[:, None]
    dst_col = dst_p[:, None]
    dst_row = dst_p[None, :]

    kernel = functools.partial(
        eggc_kernel, fout=Fout, residual=residual, skip_edgenorm=skip_edgenorm)

    const = lambda *_: (0, 0)          # resident (weights / node) blocks
    edge_row = lambda t: (t, 0)        # per-edge-tile blocks

    grid_spec = pltpu.PrefetchScalarGridSpec(
        num_scalar_prefetch=0,
        grid=(n_tiles,),
        in_specs=[
            pl.BlockSpec((n_pad, Fin), const),        # h
            pl.BlockSpec((e_tile, Fin), edge_row),    # e
            pl.BlockSpec((e_tile, 1), edge_row),      # src index (column layout)
            pl.BlockSpec((e_tile, 1), edge_row),      # dst index (column layout)
            pl.BlockSpec((1, e_tile), lambda t: (0, t)),  # dst index (row layout)
            pl.BlockSpec((Fin, 4 * Fout), const),     # fused node weight
            pl.BlockSpec((1, 4 * Fout), const),       # fused node bias
            pl.BlockSpec((Fin, Fout), const),         # edge_gate weight
            pl.BlockSpec((1, Fout), const),           # edge_gate bias
            pl.BlockSpec((1, Fout), const),           # norm_nodes gamma
            pl.BlockSpec((1, Fout), const),           # norm_nodes beta
            pl.BlockSpec((1, Fout), const),           # norm_edges gamma
            pl.BlockSpec((1, Fout), const),           # norm_edges beta
        ],
        out_specs=(
            pl.BlockSpec((n_pad, Fout), const),       # x (node output, resident)
            pl.BlockSpec((e_tile, Fout), edge_row),   # y (edge output, tiled)
        ),
        scratch_shapes=[
            pltpu.VMEM((n_pad, 4 * Fout), jnp.float32),   # fused node linear result
            pltpu.VMEM((n_pad, 2 * Fout), jnp.float32),   # [sum_sigma_h | sum_sigma]
        ],
    )

    flops = int(
        2 * n_pad * Fin * 4 * Fout            # fused node linear
        + 2 * e_pad * Fin * Fout              # edge gate linear
        + 2 * e_pad * n_pad * 3 * Fout        # gathers
        + 2 * e_pad * n_pad * 2 * Fout        # scatter-add
    )
    transcendentals = int(2 * e_pad * Fout + 2 * n_pad * Fout)
    bytes_accessed = int(4 * (
        n_pad * Fin + e_pad * Fin + n_pad * Fout + e_pad * Fout
        + Fin * 4 * Fout + Fin * Fout + 8 * Fout + 3 * e_pad))

    x_pad, y_pad = pl.pallas_call(
        kernel,
        grid_spec=grid_spec,
        out_shape=(
            jax.ShapeDtypeStruct((n_pad, Fout), jnp.float32),
            jax.ShapeDtypeStruct((e_pad, Fout), jnp.float32),
        ),
        compiler_params=pltpu.CompilerParams(
            dimension_semantics=("arbitrary",),        # edge axis carries the accumulator
            vmem_limit_bytes=32 * 1024 * 1024,
        ),
        cost_estimate=pl.CostEstimate(
            flops=flops, transcendentals=transcendentals, bytes_accessed=bytes_accessed),
    )(h_p, e_p, src_col, dst_col, dst_row,
      w4, b4, params["w_eg"], params["b_eg"],
      params["gn"], params["bn"], params["ge"], params["be"])

    return x_pad[:N], y_pad[:E]


# ----------------------------- pure-JAX reference -----------------------------

def eggc_reference(params, h, e, src, dst, *, residual=True, skip_edgenorm=False):
    hp = jax.lax.Precision.HIGHEST
    dot = lambda a, b: jnp.dot(a, b, precision=hp)
    e_src = dot(h, params["w_sg"]) + params["b_sg"]
    e_dst = dot(h, params["w_dg"]) + params["b_dg"]
    bh = dot(h, params["w_du"]) + params["b_du"]
    su = dot(h, params["w_su"]) + params["b_su"]
    m = e_src[src] + e_dst[dst] + dot(e, params["w_eg"]) + params["b_eg"]
    sigma = jax.nn.sigmoid(m)
    n = h.shape[0]
    sum_sigma_h = jax.ops.segment_sum(bh[src] * sigma, dst, num_segments=n)
    sum_sigma = jax.ops.segment_sum(sigma, dst, num_segments=n)
    x = su + sum_sigma_h / (sum_sigma + 1e-6)
    x = _silu(_layernorm(x, params["gn"], params["bn"]))
    y = _silu(m) if skip_edgenorm else _silu(_layernorm(m, params["ge"], params["be"]))
    if residual:
        x = h + x
        y = e + y
    return x, y


def init_eggc_params(key, fin, fout):
    """nn.Linear-style uniform init + LayerNorm gamma/beta."""
    ks = jax.random.split(key, 10)
    s = float(fin) ** -0.5

    def lin(kw, kb):
        w = jax.random.uniform(kw, (fin, fout), jnp.float32, -s, s)
        b = jax.random.uniform(kb, (1, fout), jnp.float32, -s, s)
        return w, b

    w_sg, b_sg = lin(ks[0], ks[1])
    w_dg, b_dg = lin(ks[2], ks[3])
    w_eg, b_eg = lin(ks[4], ks[5])
    w_su, b_su = lin(ks[6], ks[7])
    w_du, b_du = lin(ks[8], ks[9])
    return dict(
        w_sg=w_sg, b_sg=b_sg, w_dg=w_dg, b_dg=b_dg, w_eg=w_eg, b_eg=b_eg,
        w_su=w_su, b_su=b_su, w_du=w_du, b_du=b_du,
        gn=jnp.ones((1, fout), jnp.float32), bn=jnp.zeros((1, fout), jnp.float32),
        ge=jnp.ones((1, fout), jnp.float32), be=jnp.zeros((1, fout), jnp.float32),
    )


if __name__ == "__main__":
    key = jax.random.PRNGKey(0)
    N, E, F = 64, 256, 128            # nodes, edges, features (Fout multiple of 128)
    ks = jax.random.split(key, 5)

    node_feats = jax.random.normal(ks[0], (N, F), jnp.float32)
    edge_feats = jax.random.normal(ks[1], (E, F), jnp.float32)
    src = jax.random.randint(ks[2], (E,), 0, N)
    dst = jax.random.randint(ks[3], (E,), 0, N)
    params = init_eggc_params(ks[4], F, F)

    x_k, y_k = edge_gated_graph_conv(
        params, node_feats, edge_feats, src, dst,
        residual=True, skip_edgenorm=False, edge_tile=128)   # 2 edge tiles -> exercises accumulation
    jax.block_until_ready((x_k, y_k))

    x_r, y_r = eggc_reference(
        params, node_feats, edge_feats, src, dst, residual=True, skip_edgenorm=False)

    assert x_k.shape == (N, F) and y_k.shape == (E, F)
    err_x = float(jnp.max(jnp.abs(x_k - x_r)))
    err_y = float(jnp.max(jnp.abs(y_k - y_r)))
    assert err_x < 5e-2 and err_y < 5e-2, (err_x, err_y)
    print("KERNEL_OK")
</pallas_src>

<mosaic_0001>
module attributes {stable_mosaic.version = 11 : i64} {
  func.func @eggc_kernel(%arg0: i32, %arg1: memref<64x128xf32, #tpu.memory_space<vmem>>, %arg2: memref<128x128xf32, #tpu.memory_space<vmem>>, %arg3: memref<128x1xi32, #tpu.memory_space<vmem>>, %arg4: memref<128x1xi32, #tpu.memory_space<vmem>>, %arg5: memref<1x128xi32, #tpu.memory_space<vmem>>, %arg6: memref<128x512xf32, #tpu.memory_space<vmem>>, %arg7: memref<1x512xf32, #tpu.memory_space<vmem>>, %arg8: memref<128x128xf32, #tpu.memory_space<vmem>>, %arg9: memref<1x128xf32, #tpu.memory_space<vmem>>, %arg10: memref<1x128xf32, #tpu.memory_space<vmem>>, %arg11: memref<1x128xf32, #tpu.memory_space<vmem>>, %arg12: memref<1x128xf32, #tpu.memory_space<vmem>>, %arg13: memref<1x128xf32, #tpu.memory_space<vmem>>, %arg14: memref<64x128xf32, #tpu.memory_space<vmem>>, %arg15: memref<128x128xf32, #tpu.memory_space<vmem>>, %arg16: memref<64x512xf32, #tpu.memory_space<vmem>>, %arg17: memref<64x256xf32, #tpu.memory_space<vmem>>) attributes {dimension_semantics = [#tpu.dimension_semantics<arbitrary>], iteration_bounds = array<i64: 2>, scalar_prefetch = 0 : i64, scratch_operands = 2 : i64, tpu.core_type = #tpu.core_type<tc>, window_params = [{pipeline_mode = #tpu.pipeline_mode<synchronous>, transform_indices = @transform_0, window_bounds = array<i64: 64, 128>}, {transform_indices = @transform_1, window_bounds = array<i64: 128, 128>}, {transform_indices = @transform_2, window_bounds = array<i64: 128, 1>}, {transform_indices = @transform_3, window_bounds = array<i64: 128, 1>}, {transform_indices = @transform_4, window_bounds = array<i64: 1, 128>}, {pipeline_mode = #tpu.pipeline_mode<synchronous>, transform_indices = @transform_5, window_bounds = array<i64: 128, 512>}, {pipeline_mode = #tpu.pipeline_mode<synchronous>, transform_indices = @transform_6, window_bounds = array<i64: 1, 512>}, {pipeline_mode = #tpu.pipeline_mode<synchronous>, transform_indices = @transform_7, window_bounds = array<i64: 128, 128>}, {pipeline_mode = #tpu.pipeline_mode<synchronous>, transform_indices = @transform_8, window_bounds = array<i64: 1, 128>}, {pipeline_mode = #tpu.pipeline_mode<synchronous>, transform_indices = @transform_9, window_bounds = array<i64: 1, 128>}, {pipeline_mode = #tpu.pipeline_mode<synchronous>, transform_indices = @transform_10, window_bounds = array<i64: 1, 128>}, {pipeline_mode = #tpu.pipeline_mode<synchronous>, transform_indices = @transform_11, window_bounds = array<i64: 1, 128>}, {pipeline_mode = #tpu.pipeline_mode<synchronous>, transform_indices = @transform_12, window_bounds = array<i64: 1, 128>}, {pipeline_mode = #tpu.pipeline_mode<synchronous>, transform_indices = @transform_13, window_bounds = array<i64: 64, 128>}, {transform_indices = @transform_14, window_bounds = array<i64: 128, 128>}]} {
    %c0_i32 = arith.constant 0 : i32
    %0 = arith.cmpi eq, %arg0, %c0_i32 : i32
    %1 = arith.extui %0 : i1 to i32
    %c0_i32_0 = arith.constant 0 : i32
    %2 = arith.cmpi ne, %1, %c0_i32_0 : i32
    scf.if %2 {
      %c0_35 = arith.constant 0 : index
      %c0_36 = arith.constant 0 : index
      %81 = vector.load %arg1[%c0_35, %c0_36] : memref<64x128xf32, #tpu.memory_space<vmem>>, vector<64x128xf32>
      %c0_37 = arith.constant 0 : index
      %c0_38 = arith.constant 0 : index
      %82 = vector.load %arg6[%c0_37, %c0_38] : memref<128x512xf32, #tpu.memory_space<vmem>>, vector<128x512xf32>
      %cst_39 = arith.constant dense<0.000000e+00> : vector<64x512xf32>
      %83 = tpu.matmul %81, %82, %cst_39 {dimension_numbers = #tpu.dot_dimension_numbers<[1], [0], [0], [1], [0, 0, 1, 1], [], []>} : vector<64x128xf32>, vector<128x512xf32>, vector<64x512xf32> -> vector<64x512xf32>
      %c0_40 = arith.constant 0 : index
      %c0_41 = arith.constant 0 : index
      %84 = vector.load %arg7[%c0_40, %c0_41] : memref<1x512xf32, #tpu.memory_space<vmem>>, vector<1x512xf32>
      %85 = vector.broadcast %84 : vector<1x512xf32> to vector<64x512xf32>
      %86 = arith.addf %83, %85 : vector<64x512xf32>
      %c0_42 = arith.constant 0 : index
      %c0_43 = arith.constant 0 : index
      %87 = vector.load %arg16[%c0_42, %c0_43] : memref<64x512xf32, #tpu.memory_space<vmem>>, vector<64x512xf32>
      tpu.vector_store %arg16[%c0_42, %c0_43], %86 {strides = array<i32>} : memref<64x512xf32, #tpu.memory_space<vmem>>, vector<64x512xf32>,
      %cst_44 = arith.constant 0.000000e+00 : f32
      %88 = vector.broadcast %cst_44 : f32 to vector<64x256xf32>
      %c0_45 = arith.constant 0 : index
      %c0_46 = arith.constant 0 : index
      %89 = vector.load %arg17[%c0_45, %c0_46] : memref<64x256xf32, #tpu.memory_space<vmem>>, vector<64x256xf32>
      tpu.vector_store %arg17[%c0_45, %c0_46], %88 {strides = array<i32>} : memref<64x256xf32, #tpu.memory_space<vmem>>, vector<64x256xf32>,
    } else {
    }
    %c0 = arith.constant 0 : index
    %c0_1 = arith.constant 0 : index
    %3 = vector.load %arg2[%c0, %c0_1] : memref<128x128xf32, #tpu.memory_space<vmem>>, vector<128x128xf32>
    %c0_2 = arith.constant 0 : index
    %c0_3 = arith.constant 0 : index
    %4 = vector.load %arg8[%c0_2, %c0_3] : memref<128x128xf32, #tpu.memory_space<vmem>>, vector<128x128xf32>
    %cst = arith.constant dense<0.000000e+00> : vector<128x128xf32>
    %5 = tpu.matmul %3, %4, %cst {dimension_numbers = #tpu.dot_dimension_numbers<[1], [0], [0], [1], [0, 0, 1, 1], [], []>} : vector<128x128xf32>, vector<128x128xf32>, vector<128x128xf32> -> vector<128x128xf32>
    %c0_4 = arith.constant 0 : index
    %c0_5 = arith.constant 0 : index
    %6 = vector.load %arg9[%c0_4, %c0_5] : memref<1x128xf32, #tpu.memory_space<vmem>>, vector<1x128xf32>
    %7 = vector.broadcast %6 : vector<1x128xf32> to vector<128x128xf32>
    %8 = arith.addf %5, %7 : vector<128x128xf32>
    %c0_6 = arith.constant 0 : index
    %c0_7 = arith.constant 0 : index
    %9 = vector.load %arg3[%c0_6, %c0_7] : memref<128x1xi32, #tpu.memory_space<vmem>>, vector<128x1xi32>
    %c0_8 = arith.constant 0 : index
    %c0_9 = arith.constant 0 : index
    %10 = vector.load %arg4[%c0_8, %c0_9] : memref<128x1xi32, #tpu.memory_space<vmem>>, vector<128x1xi32>
    %c0_10 = arith.constant 0 : index
    %c0_11 = arith.constant 0 : index
    %11 = vector.load %arg5[%c0_10, %c0_11] : memref<1x128xi32, #tpu.memory_space<vmem>>, vector<1x128xi32>
    %12 = tpu.iota {dimensions = array<i32: 1>} : vector<128x64xi32>
    %13 = tpu.iota {dimensions = array<i32: 0>} : vector<64x128xi32>
    %14 = vector.broadcast %9 : vector<128x1xi32> to vector<128x64xi32>
    %15 = arith.cmpi eq, %14, %12 : vector<128x64xi32>
    %16 = arith.extui %15 : vector<128x64xi1> to vector<128x64xi32>
    %17 = arith.sitofp %16 : vector<128x64xi32> to vector<128x64xf32>
    %18 = vector.broadcast %10 : vector<128x1xi32> to vector<128x64xi32>
    %19 = arith.cmpi eq, %18, %12 : vector<128x64xi32>
    %20 = arith.extui %19 : vector<128x64xi1> to vector<128x64xi32>
    %21 = arith.sitofp %20 : vector<128x64xi32> to vector<128x64xf32>
    %22 = vector.broadcast %11 : vector<1x128xi32> to vector<64x128xi32>
    %23 = arith.cmpi eq, %22, %13 : vector<64x128xi32>
    %24 = arith.extui %23 : vector<64x128xi1> to vector<64x128xi32>
    %25 = arith.sitofp %24 : vector<64x128xi32> to vector<64x128xf32>
    %c0_12 = arith.constant 0 : index
    %c0_13 = arith.constant 0 : index
    %26 = vector.load %arg16[%c0_12, %c0_13] : memref<64x512xf32, #tpu.memory_space<vmem>>, vector<64x512xf32>
    %27 = vector.extract_strided_slice %26 {offsets = [0, 0], sizes = [64, 256], strides = [1, 1]} : vector<64x512xf32> to vector<64x256xf32>
    %cst_14 = arith.constant dense<0.000000e+00> : vector<128x256xf32>
    %28 = tpu.matmul %17, %27, %cst_14 {dimension_numbers = #tpu.dot_dimension_numbers<[1], [0], [0], [1], [0, 0, 1, 1], [], []>} : vector<128x64xf32>, vector<64x256xf32>, vector<128x256xf32> -> vector<128x256xf32>
    %29 = vector.extract_strided_slice %28 {offsets = [0, 0], sizes = [128, 128], strides = [1, 1]} : vector<128x256xf32> to vector<128x128xf32>
    %30 = vector.extract_strided_slice %28 {offsets = [0, 128], sizes = [128, 128], strides = [1, 1]} : vector<128x256xf32> to vector<128x128xf32>
    %31 = vector.extract_strided_slice %26 {offsets = [0, 256], sizes = [64, 128], strides = [1, 1]} : vector<64x512xf32> to vector<64x128xf32>
    %cst_15 = arith.constant dense<0.000000e+00> : vector<128x128xf32>
    %32 = tpu.matmul %21, %31, %cst_15 {dimension_numbers = #tpu.dot_dimension_numbers<[1], [0], [0], [1], [0, 0, 1, 1], [], []>} : vector<128x64xf32>, vector<64x128xf32>, vector<128x128xf32> -> vector<128x128xf32>
    %33 = arith.addf %29, %32 : vector<128x128xf32>
    %34 = arith.addf %33, %8 : vector<128x128xf32>
    %35 = arith.negf %34 : vector<128x128xf32>
    %36 = math.exp %35 : vector<128x128xf32>
    %cst_16 = arith.constant 1.000000e+00 : f32
    %37 = vector.broadcast %cst_16 : f32 to vector<128x128xf32>
    %38 = arith.addf %37, %36 : vector<128x128xf32>
    %39 = arith.divf %37, %38 : vector<128x128xf32>
    %40 = arith.mulf %30, %39 : vector<128x128xf32>
    %c0_17 = arith.constant 0 : index
    %c0_18 = arith.constant 0 : index
    %41 = vector.load %arg17[%c0_17, %c0_18] : memref<64x256xf32, #tpu.memory_space<vmem>>, vector<64x256xf32>
    %42 = tpu.concatenate %40, %39 in 1 : vector<128x128xf32>, vector<128x128xf32> -> vector<128x256xf32>
    %cst_19 = arith.constant dense<0.000000e+00> : vector<64x256xf32>
    %43 = tpu.matmul %25, %42, %cst_19 {dimension_numbers = #tpu.dot_dimension_numbers<[1], [0], [0], [1], [0, 0, 1, 1], [], []>} : vector<64x128xf32>, vector<128x256xf32>, vector<64x256xf32> -> vector<64x256xf32>
    %44 = arith.addf %41, %43 : vector<64x256xf32>
    %c0_20 = arith.constant 0 : index
    %c0_21 = arith.constant 0 : index
    %45 = vector.load %arg17[%c0_20, %c0_21] : memref<64x256xf32, #tpu.memory_space<vmem>>, vector<64x256xf32>
    tpu.vector_store %arg17[%c0_20, %c0_21], %44 {strides = array<i32>} : memref<64x256xf32, #tpu.memory_space<vmem>>, vector<64x256xf32>,
    %c0_22 = arith.constant 0 : index
    %c0_23 = arith.constant 0 : index
    %46 = vector.load %arg12[%c0_22, %c0_23] : memref<1x128xf32, #tpu.memory_space<vmem>>, vector<1x128xf32>
    %c0_24 = arith.constant 0 : index
    %c0_25 = arith.constant 0 : index
    %47 = vector.load %arg13[%c0_24, %c0_25] : memref<1x128xf32, #tpu.memory_space<vmem>>, vector<1x128xf32>
    %cst_26 = arith.constant dense<0.000000e+00> : vector<128xf32>
    %48 = vector.multi_reduction <add>, %34, %cst_26 [1] : vector<128x128xf32> to vector<128xf32>
    %49 = vector.shape_cast %48 : vector<128xf32> to vector<128x1xf32>
    %cst_27 = arith.constant 1.280000e+02 : f32
    %50 = vector.broadcast %cst_27 : f32 to vector<128x1xf32>
    %51 = arith.divf %49, %50 : vector<128x1xf32>
    %52 = vector.broadcast %51 : vector<128x1xf32> to vector<128x128xf32>
    %53 = arith.subf %34, %52 : vector<128x128xf32>
    %54 = arith.mulf %53, %53 : vector<128x128xf32>
    %cst_28 = arith.constant dense<0.000000e+00> : vector<128xf32>
    %55 = vector.multi_reduction <add>, %54, %cst_28 [1] : vector<128x128xf32> to vector<128xf32>
    %56 = vector.shape_cast %55 : vector<128xf32> to vector<128x1xf32>
    %cst_29 = arith.constant 1.280000e+02 : f32
    %57 = vector.broadcast %cst_29 : f32 to vector<128x1xf32>
    %58 = arith.divf %56, %57 : vector<128x1xf32>
    %59 = vector.broadcast %51 : vector<128x1xf32> to vector<128x128xf32>
    %60 = arith.subf %34, %59 : vector<128x128xf32>
    %cst_30 = arith.constant 9.99999974E-6 : f32
    %61 = vector.broadcast %cst_30 : f32 to vector<128x1xf32>
    %62 = arith.addf %58, %61 : vector<128x1xf32>
    %63 = math.rsqrt %62 : vector<128x1xf32>
    %64 = vector.broadcast %63 : vector<128x1xf32> to vector<128x128xf32>
    %65 = arith.mulf %60, %64 : vector<128x128xf32>
    %66 = vector.broadcast %46 : vector<1x128xf32> to vector<128x128xf32>
    %67 = arith.mulf %65, %66 : vector<128x128xf32>
    %68 = vector.broadcast %47 : vector<1x128xf32> to vector<128x128xf32>
    %69 = arith.addf %67, %68 : vector<128x128xf32>
    %70 = arith.negf %69 : vector<128x128xf32>
    %71 = math.exp %70 : vector<128x128xf32>
    %cst_31 = arith.constant 1.000000e+00 : f32
    %72 = vector.broadcast %cst_31 : f32 to vector<128x128xf32>
    %73 = arith.addf %72, %71 : vector<128x128xf32>
    %74 = arith.divf %72, %73 : vector<128x128xf32>
    %75 = arith.mulf %69, %74 : vector<128x128xf32>
    %76 = arith.addf %3, %75 : vector<128x128xf32>
    %c0_32 = arith.constant 0 : index
    %c0_33 = arith.constant 0 : index
    %77 = vector.load %arg15[%c0_32, %c0_33] : memref<128x128xf32, #tpu.memory_space<vmem>>, vector<128x128xf32>
    tpu.vector_store %arg15[%c0_32, %c0_33], %76 {strides = array<i32>} : memref<128x128xf32, #tpu.memory_space<vmem>>, vector<128x128xf32>,
    %c1_i32 = arith.constant 1 : i32
    %78 = arith.cmpi eq, %arg0, %c1_i32 : i32
    %79 = arith.extui %78 : i1 to i32
    %c0_i32_34 = arith.constant 0 : i32
    %80 = arith.cmpi ne, %79, %c0_i32_34 : i32
    scf.if %80 {
      %c0_35 = arith.constant 0 : index
      %c0_36 = arith.constant 0 : index
      %81 = vector.load %arg17[%c0_35, %c0_36] : memref<64x256xf32, #tpu.memory_space<vmem>>, vector<64x256xf32>
      %82 = vector.extract_strided_slice %81 {offsets = [0, 0], sizes = [64, 128], strides = [1, 1]} : vector<64x256xf32> to vector<64x128xf32>
      %83 = vector.extract_strided_slice %81 {offsets = [0, 128], sizes = [64, 128], strides = [1, 1]} : vector<64x256xf32> to vector<64x128xf32>
      %cst_37 = arith.constant 9.99999997E-7 : f32
      %84 = vector.broadcast %cst_37 : f32 to vector<64x128xf32>
      %85 = arith.addf %83, %84 : vector<64x128xf32>
      %86 = tpu.reciprocal %85 {approx = true} : vector<64x128xf32> -> vector<64x128xf32>
      %87 = arith.mulf %82, %86 : vector<64x128xf32>
      %88 = vector.extract_strided_slice %26 {offsets = [0, 384], sizes = [64, 128], strides = [1, 1]} : vector<64x512xf32> to vector<64x128xf32>
      %89 = arith.addf %88, %87 : vector<64x128xf32>
      %c0_38 = arith.constant 0 : index
      %c0_39 = arith.constant 0 : index
      %90 = vector.load %arg10[%c0_38, %c0_39] : memref<1x128xf32, #tpu.memory_space<vmem>>, vector<1x128xf32>
      %c0_40 = arith.constant 0 : index
      %c0_41 = arith.constant 0 : index
      %91 = vector.load %arg11[%c0_40, %c0_41] : memref<1x128xf32, #tpu.memory_space<vmem>>, vector<1x128xf32>
      %cst_42 = arith.constant dense<0.000000e+00> : vector<64xf32>
      %92 = vector.multi_reduction <add>, %89, %cst_42 [1] : vector<64x128xf32> to vector<64xf32>
      %93 = vector.shape_cast %92 : vector<64xf32> to vector<64x1xf32>
      %cst_43 = arith.constant 1.280000e+02 : f32
      %94 = vector.broadcast %cst_43 : f32 to vector<64x1xf32>
      %95 = arith.divf %93, %94 : vector<64x1xf32>
      %96 = vector.broadcast %95 : vector<64x1xf32> to vector<64x128xf32>
      %97 = arith.subf %89, %96 : vector<64x128xf32>
      %98 = arith.mulf %97, %97 : vector<64x128xf32>
      %cst_44 = arith.constant dense<0.000000e+00> : vector<64xf32>
      %99 = vector.multi_reduction <add>, %98, %cst_44 [1] : vector<64x128xf32> to vector<64xf32>
      %100 = vector.shape_cast %99 : vector<64xf32> to vector<64x1xf32>
      %cst_45 = arith.constant 1.280000e+02 : f32
      %101 = vector.broadcast %cst_45 : f32 to vector<64x1xf32>
      %102 = arith.divf %100, %101 : vector<64x1xf32>
      %103 = vector.broadcast %95 : vector<64x1xf32> to vector<64x128xf32>
      %104 = arith.subf %89, %103 : vector<64x128xf32>
      %cst_46 = arith.constant 9.99999974E-6 : f32
      %105 = vector.broadcast %cst_46 : f32 to vector<64x1xf32>
      %106 = arith.addf %102, %105 : vector<64x1xf32>
      %107 = math.rsqrt %106 : vector<64x1xf32>
      %108 = vector.broadcast %107 : vector<64x1xf32> to vector<64x128xf32>
      %109 = arith.mulf %104, %108 : vector<64x128xf32>
      %110 = vector.broadcast %90 : vector<1x128xf32> to vector<64x128xf32>
      %111 = arith.mulf %109, %110 : vector<64x128xf32>
      %112 = vector.broadcast %91 : vector<1x128xf32> to vector<64x128xf32>
      %113 = arith.addf %111, %112 : vector<64x128xf32>
      %114 = arith.negf %113 : vector<64x128xf32>
      %115 = math.exp %114 : vector<64x128xf32>
      %cst_47 = arith.constant 1.000000e+00 : f32
      %116 = vector.broadcast %cst_47 : f32 to vector<64x128xf32>
      %117 = arith.addf %116, %115 : vector<64x128xf32>
      %118 = arith.divf %116, %117 : vector<64x128xf32>
      %119 = arith.mulf %113, %118 : vector<64x128xf32>
      %c0_48 = arith.constant 0 : index
      %c0_49 = arith.constant 0 : index
      %120 = vector.load %arg1[%c0_48, %c0_49] : memref<64x128xf32, #tpu.memory_space<vmem>>, vector<64x128xf32>
      %121 = arith.addf %120, %119 : vector<64x128xf32>
      %c0_50 = arith.constant 0 : index
      %c0_51 = arith.constant 0 : index
      %122 = vector.load %arg14[%c0_50, %c0_51] : memref<64x128xf32, #tpu.memory_space<vmem>>, vector<64x128xf32>
      tpu.vector_store %arg14[%c0_50, %c0_51], %121 {strides = array<i32>} : memref<64x128xf32, #tpu.memory_space<vmem>>, vector<64x128xf32>,
    } else {
    }
    return
  }
  func.func @transform_0(%arg0: i32) -> (i32, i32) {
    %c0_i32 = arith.constant 0 : i32
    %c0_i32_0 = arith.constant 0 : i32
    %c0_i32_1 = arith.constant 0 : i32
    return %c0_i32, %c0_i32_0 : i32, i32
  }
  func.func @transform_1(%arg0: i32) -> (i32, i32) {
    %c0_i32 = arith.constant 0 : i32
    %c0_i32_0 = arith.constant 0 : i32
    return %arg0, %c0_i32 : i32, i32
  }
  func.func @transform_2(%arg0: i32) -> (i32, i32) {
    %c0_i32 = arith.constant 0 : i32
    %c0_i32_0 = arith.constant 0 : i32
    return %arg0, %c0_i32 : i32, i32
  }
  func.func @transform_3(%arg0: i32) -> (i32, i32) {
    %c0_i32 = arith.constant 0 : i32
    %c0_i32_0 = arith.constant 0 : i32
    return %arg0, %c0_i32 : i32, i32
  }
  func.func @transform_4(%arg0: i32) -> (i32, i32) {
    %c0_i32 = arith.constant 0 : i32
    %c0_i32_0 = arith.constant 0 : i32
    return %c0_i32, %arg0 : i32, i32
  }
  func.func @transform_5(%arg0: i32) -> (i32, i32) {
    %c0_i32 = arith.constant 0 : i32
    %c0_i32_0 = arith.constant 0 : i32
    %c0_i32_1 = arith.constant 0 : i32
    return %c0_i32, %c0_i32_0 : i32, i32
  }
  func.func @transform_6(%arg0: i32) -> (i32, i32) {
    %c0_i32 = arith.constant 0 : i32
    %c0_i32_0 = arith.constant 0 : i32
    %c0_i32_1 = arith.constant 0 : i32
    return %c0_i32, %c0_i32_0 : i32, i32
  }
  func.func @transform_7(%arg0: i32) -> (i32, i32) {
    %c0_i32 = arith.constant 0 : i32
    %c0_i32_0 = arith.constant 0 : i32
    %c0_i32_1 = arith.constant 0 : i32
    return %c0_i32, %c0_i32_0 : i32, i32
  }
  func.func @transform_8(%arg0: i32) -> (i32, i32) {
    %c0_i32 = arith.constant 0 : i32
    %c0_i32_0 = arith.constant 0 : i32
    %c0_i32_1 = arith.constant 0 : i32
    return %c0_i32, %c0_i32_0 : i32, i32
  }
  func.func @transform_9(%arg0: i32) -> (i32, i32) {
    %c0_i32 = arith.constant 0 : i32
    %c0_i32_0 = arith.constant 0 : i32
    %c0_i32_1 = arith.constant 0 : i32
    return %c0_i32, %c0_i32_0 : i32, i32
  }
  func.func @transform_10(%arg0: i32) -> (i32, i32) {
    %c0_i32 = arith.constant 0 : i32
    %c0_i32_0 = arith.constant 0 : i32
    %c0_i32_1 = arith.constant 0 : i32
    return %c0_i32, %c0_i32_0 : i32, i32
  }
  func.func @transform_11(%arg0: i32) -> (i32, i32) {
    %c0_i32 = arith.constant 0 : i32
    %c0_i32_0 = arith.constant 0 : i32
    %c0_i32_1 = arith.constant 0 : i32
    return %c0_i32, %c0_i32_0 : i32, i32
  }
  func.func @transform_12(%arg0: i32) -> (i32, i32) {
    %c0_i32 = arith.constant 0 : i32
    %c0_i32_0 = arith.constant 0 : i32
    %c0_i32_1 = arith.constant 0 : i32
    return %c0_i32, %c0_i32_0 : i32, i32
  }
  func.func @transform_13(%arg0: i32) -> (i32, i32) {
    %c0_i32 = arith.constant 0 : i32
    %c0_i32_0 = arith.constant 0 : i32
    %c0_i32_1 = arith.constant 0 : i32
    return %c0_i32, %c0_i32_0 : i32, i32
  }
  func.func @transform_14(%arg0: i32) -> (i32, i32) {
    %c0_i32 = arith.constant 0 : i32
    %c0_i32_0 = arith.constant 0 : i32
    return %arg0, %c0_i32 : i32, i32
  }
}

</mosaic_0001>

<bundles_post_ra>
// kernel: tpu_custom_call.1
= control target key start
LH: loop header
LB: loop body
LE: loop exit
PB: predicated region body
PF: predicated region fallthrough
CT: control target
= control target key end

     0   :  { %s5037_s0 = inlined_call_operand.hbm [shape: f32[64,128], index: 0, kind: input, shape index: {}]   ;;  %s5038_s1 = inlined_call_operand.hbm [shape: f32[256,128], index: 1, kind: input, shape index: {}]   ;;  %s5039_s2 = inlined_call_operand.vmem [shape: s32[256,1], index: 2, kind: input, shape index: {}]   ;;  %s5040_s3 = inlined_call_operand.vmem [shape: s32[256,1], index: 3, kind: input, shape index: {}]   ;;  %s5041_s4 = inlined_call_operand.vmem [shape: s32[1,256], index: 4, kind: input, shape index: {}]   ;;  %s5042_s5 = inlined_call_operand.vmem [shape: f32[128,512], index: 5, kind: input, shape index: {}]   ;;  %s5043_s6 = inlined_call_operand.vmem [shape: f32[1,512], index: 6, kind: input, shape index: {}]   ;;  %s5044_s7 = inlined_call_operand.hbm [shape: f32[128,128], index: 7, kind: input, shape index: {}]   ;;  %s5045_s8 = inlined_call_operand.vmem [shape: f32[1,128], index: 8, kind: input, shape index: {}]   ;;  %s5046_s9 = inlined_call_operand.vmem [shape: f32[1,128], index: 9, kind: input, shape index: {}]   ;;  %s5047_s10 = inlined_call_operand.vmem [shape: f32[1,128], index: 10, kind: input, shape index: {}]   ;;  %s5048_s11 = inlined_call_operand.vmem [shape: f32[1,128], index: 11, kind: input, shape index: {}]   ;;  %s5049_s12 = inlined_call_operand.vmem [shape: f32[1,128], index: 12, kind: input, shape index: {}]   ;;  %s5050_s13 = inlined_call_operand.hbm [shape: f32[64,128], index: 13, kind: output, shape index: {0}]   ;;  %s5051_s14 = inlined_call_operand.hbm [shape: f32[256,128], index: 14, kind: output, shape index: {1}]  }
   0x1   :  { %5064 = sst [smem:[#allocation23_spill]] %s5044_s7 }
   0x2   :  { %5065 = sst [smem:[#allocation24_spill]] %s5046_s9 }
   0x3   :  { %5066 = sst [smem:[#allocation25_spill]] %s5047_s10 }
   0x4   :  { %5067 = sst [smem:[#allocation26_spill]] %s5050_s13 }
   0x5   :  { %5068 = sst [smem:[#allocation27_spill]] %s5051_s14 }
   0x6   :  { %20 = vsyncpa [#allocation5], 0 }
   0x7   :  { %21 = vsyncpa [#allocation8], 0 }
   0x8   :  { %23 = vsyncpa [#allocation8 + $0x1], 0 }
   0x9   :  { %24 = vsyncpa [#allocation6], 0 }
   0xa   :  { %25 = vsyncpa [#allocation12], 0 }
   0xb   :  { %27 = vsyncpa [#allocation12 + $0x1], 0  ;;  %s3850_s29 = smov 0   ;;  %s3852_s30 = smov 0  }
   0xc   :  { %s3854_s15 = smov 0   ;;  %s3856_s16 = smov 0  }
   0xd LB: > { %5069 = sst [smem:[#allocation18_spill]] %s3748_s29  ;;  %s3871_s17 = sadd.s32 4294967295, %s3760_s16   ;;  %s3760_s16 = sphi %s3856_s16, %s5104_s16   ;;  %s3756_s15 = sphi %s3854_s15, %s5108_s15   ;;  %s3752_s30 = sphi %s3852_s30, %s5107_s30   ;;  %s3748_s29 = sphi %s3850_s29, %s5106_s29  }
   0xe   : > { %s2918_s18 = sadd.s32 4294967294, %s3760_s16   ;;  %s3875_s19 = sadd.s32 1, %s3760_s16  }
   0xf   : > { %5070 = sst [smem:[#allocation19_spill]] %s3875_s19  ;;  %s61_s20 = sadd.s32 1, %s3756_s15 }
  0x10   : > { %s58_s21 = ssub.s32 %s3760_s16, %s3875_s19  ;;  %p68_p0 = scmp.ne.s32.totalorder %s3756_s15, %s3752_s30 }
  0x11   : > { %p59_p1 = scmp.eq.s32.totalorder %s58_s21, 0  ;;  %p69_p2 = scmp.eq.s32.totalorder %s3760_s16, 0 }
  0x12   : > { %p74_p3 = scmp.ne.s32.totalorder %s3752_s30, %s3748_s29  ;;  %p5052_p4 = scmp.eq.s32.totalorder %s3871_s17, 0 }
  0x13   : > { %s3887_s22 = scalar_select %p59_p1, %s3756_s15, %s61_s20  }
  0x14   : > { %p3889_p5 = por %p69_p2, %p68_p0  ;;  %p3895_p6 = por %p5052_p4, %p74_p3 }
  0x15   : > { %5071 = sst [smem:[#allocation20_spill]] %s3887_s22  ;;  %p5056_p7 = scmp.eq.s32.totalorder %s3871_s17, 1 }
  0x16   : > { %s5073_s24 = scalar_select %p3895_p6, 1, 0 }
  0x17   : > { %p371_p8 = scmp.eq.s32.totalorder %s2918_s18, 1  ;;  %p2919_p9 = scmp.ge.s32.totalorder %s3760_s16, 1 }
  0x18   : > { %p378_p10 = scmp.lt.s32.totalorder %s3760_s16, 3  ;;  %p3904_p11 = por %p5056_p7, %p68_p0 }
  0x19   : > { %p3908_p12 = por %p371_p8, %p74_p3  ;;  %s3762_s28 = smov [#allocation9]  }
  0x1a   : > { %s5074_s25 = scalar_select %p3904_p11, 1, 0 }
  0x1b   : > { %s5076_s26 = scalar_select %p3908_p12, 1, 0 }
  0x1c   : > { %5075 = sst [smem:[#allocation21_spill]] %s5074_s25  ;;  %p3912_p13 = pnand %p2919_p9, %p378_p10 }
  0x1d   : > { %5077 = sst [smem:[#allocation22_spill]] %s5076_s26  ;;  %s409_s18 = sshll.u32 %s3762_s28, 4  ;;  %s410_s18 = int_to_ptr.vmem [resolvable:$true] %s409_s18 }
  0x1e   : > { %s5078_s27 = scalar_select %p3912_p13, 1, 0 }
  0x1f   : > { %p3272_p2 = pneg %p3912_p13  ;;  %p5079_p6 = scmp.eq.s32.totalorder %s3871_s17, 0 }
  0x20   : > { %p3289_p3 = scmp.lt.s32.totalorder %s3760_s16, 2  ;;  %s3763_s21 = smov [#allocation4]  }
  0x21   : > { %p3922_p0 = pnand %p3272_p2, %p5079_p6  ;;  %s390_s22 = sshll.u32 %s3763_s21, 4  ;;  %s391_s22 = int_to_ptr.vmem [resolvable:$true] %s390_s22 }
  0x22   : > { %s3591_s19 = scalar_lea.vmem %s410_s18, 2048  ;;  %p3599_p4 = scmp.lt.s32.totalorder %s410_s18, %s410_s18 }
  0x23   : > { %p3582_p8 = pneg %p3922_p0  ;;  %p3592_p9 = scmp.ne.s32.totalorder %s410_s18, %s3591_s19 }
  0x24   : > { %p3600_p1 = scmp.lt.s32.totalorder %s3591_s19, %s3591_s19 }
  0x25   : > { %p3594_p10 = pnand %p3592_p9, %p3582_p8 }
  0x26   : > { %p3601_p6 = por %p3600_p1, %p3599_p4 }
  0x27   : > { %p3595_p7 = pneg %p3594_p10 }
  0x29   : > { %p3602_p2 = pnand %p3601_p6, %p3595_p7 }
  0x2b   : > { %3605 = shalt.err (!%p3602_p2)
}
  0x2c   : > { %s3764_s28 = smov 128   ;;  %s3765_s26 = smov 8  }
  0x2d   : > { %s5081_s7 = sld [smem:[#allocation23_spill]]  ;;  %p3944_p9 = pnand %p3289_p3, %p3889_p5 }
  0x2e   : > { %s3617_s14 = scalar_lea.vmem %s391_s22, 1024  ;;  %p3625_p10 = scmp.lt.s32.totalorder %s391_s22, %s391_s22 }
  0x2f   : > { %p3618_p4 = scmp.ne.s32.totalorder %s391_s22, %s3617_s14  ;;  %p3626_p6 = scmp.lt.s32.totalorder %s3617_s14, %s3617_s14 }
  0x31   : > { %p3620_p7 = pnand %p3618_p4, %p3582_p8  ;;  %p3627_p2 = por %p3626_p6, %p3625_p10 }
  0x33   : > { %3278 = dma.hbm_to_vmem [thread:$0]  (!%p3922_p0), %s5081_s7, 2048, %s410_s18, [#allocation8], %s3764_s28, %s3764_s28, %s3765_s26  }
  0x34   : > { %p3621_p1 = pneg %p3620_p7 }
  0x36   : > { %p3628_p12 = pnand %p3627_p2, %p3621_p1 }
  0x38   : > { %3631 = shalt.err (!%p3628_p12)
}
  0x39   : > { %3275 = dma.hbm_to_vmem [thread:$0]  (!%p3922_p0), %s5037_s0, 1024, %s391_s22, [#allocation5], %s3764_s28, %s3764_s28, %s3765_s26  }
  0x3a   : > { %s438_s18 = sand.u32 1, %s3760_s16   ;;  %s440_s21 = sand.u32 1, %s3756_s15  }
  0x3b   : > { %s2923_s7 = sshll.u32 %s440_s21, 7  ;;  %s3070_s14 = sshll.u32 %s3760_s16, 11 }
  0x3c   : > { %s3965_s10 = scalar_lea.hbm %s5038_s1, %s3070_s14  ;;  %s442_s20 = scalar_lea.vmem [#allocation7], %s2923_s7 }
  0x3d   : > { %s449_s9 = sshll.u32 %s442_s20, 4  ;;  %s3969_s29 = scalar_lea.sflag [#allocation8], %s438_s18  ;;  %s3967_s9 = int_to_ptr.vmem [resolvable:$true] %s449_s9 }
  0x3e   : > { %s3632_s23 = scalar_lea.hbm %s3965_s10, 2048  ;;  %p3634_p12 = pneg %p3944_p9 }
  0x3f   : > { %p3633_p5 = scmp.ne.s32.totalorder %s3965_s10, %s3632_s23  ;;  %s3637_s13 = scalar_lea.hbm %s5038_s1, 4096 }
  0x40   : > { %p3638_p8 = scmp.lt.s32.totalorder %s3965_s10, %s5038_s1  ;;  %p3639_p4 = scmp.lt.s32.totalorder %s3637_s13, %s3632_s23 }
  0x41   : > { %p3635_p0 = pnand %p3634_p12, %p3633_p5 }
  0x42   : > { %p3640_p7 = por %p3639_p4, %p3638_p8 }
  0x43   : > { %p3636_p3 = pneg %p3635_p0 }
  0x45   : > { %p3641_p1 = pnand %p3640_p7, %p3636_p3 }
  0x47   : > { %3644 = shalt.err (!%p3641_p1)
}
  0x48   : > { %s3645_s7 = scalar_lea.vmem %s3967_s9, 2048  ;;  %s3766_s18 = smov [#allocation7]  }
  0x49   : > { %p3646_p10 = scmp.ne.s32.totalorder %s3967_s9, %s3645_s7  ;;  %s3650_s20 = sshll.u32 %s3766_s18, 4  ;;  %s3651_s20 = int_to_ptr.vmem [resolvable:$false] %s3650_s20 }
  0x4a   : > { %s3652_s22 = scalar_lea.vmem %s3651_s20, 4096  ;;  %p3653_p5 = scmp.lt.s32.totalorder %s3967_s9, %s3651_s20 }
  0x4b   : > { %p3648_p6 = pnand %p3646_p10, %p3634_p12  ;;  %p3654_p0 = scmp.lt.s32.totalorder %s3652_s22, %s3645_s7 }
  0x4d   : > { %p3649_p2 = pneg %p3648_p6  ;;  %p3655_p11 = por %p3654_p0, %p3653_p5 }
  0x4f   : > { %p3656_p13 = pnand %p3655_p11, %p3649_p2 }
  0x51   : > { %3659 = shalt.err (!%p3656_p13)
}
  0x52   : > { %3282 = dma.hbm_to_vmem [thread:$0]  (!%p3944_p9), %s3965_s10, 2048, %s3967_s9, %s3969_s29, %s3764_s28, %s3764_s28, %s3765_s26  }
  0x53   : > { %p5083_p12 = scmp.ne.s32.totalorder %s5078_s27, 0 }
  0x54   : > { %p5084_p3 = scmp.eq.s32.totalorder (!%p5083_p12), %s3871_s17, 0 }
  0x55   : > { %485 = sbr.rel (%p5083_p12) target bundleno = 1534 (0x5fe), region = 72 }
  0x5a   : > { %3727 = dma.done.wait (%p5084_p3), [#allocation5], 1024   ;;  %p5085_p8 = pmov %p5084_p3 }
  0x5b   : > { %s491_s19 = sand.u32 1, %s3871_s17   ;;  %s493_s23 = sand.u32 1, %s3752_s30  }
  0x5c   : > { %3729 = vsyncadd (%p5085_p8), [#allocation5], 4294966272  ;;  %s2928_s21 = sshll.u32 %s493_s23, 7  ;;  %s492_s13 = scalar_lea.sflag [#allocation8], %s491_s19 }
  0x5d   : > { %s4003_s25 = scalar_lea.vmem [#allocation7], %s2928_s21  ;;  %p5086_p11 = scmp.ne.s32.totalorder %s5073_s24, 0 }
  0x5f   : > { %3731 = dma.done.wait (%p5086_p11), %s492_s13, 2048  }
  0x60   : > { %3733 = vsyncadd (%p5086_p11), %s492_s13, 4294965248  ;;  %p5087_p13 = pmov %p5084_p3 }
  0x61   : > { %p5088_p9 = pmov %p5084_p3 }
  0x62   : > { %3735 = dma.done.wait (%p5087_p13), [#allocation8], 2048  }
  0x63   : > { %3737 = vsyncadd (%p5088_p9), [#allocation8], 4294965248  ;;  %s2931_s9 = sshll.u32 %s3871_s17, 4  ;;  %p570_p7 = scmp.lt.s32.totalorder %s3871_s17, 1 }
  0x64   : > { %p559_p4 = scmp.lt.s32.totalorder %s2931_s9, 31  ;;  %s4032_s19 = scalar_lea.vmem [#allocation11], %s2928_s21 }
  0x65   : > { %s4016_s10 = scalar_select %p570_p7, %s3871_s17, 1 }
  0x66   : > { %s5110_s9 = smov (!%p559_p4, %s2931_s9), 31  ;;  %p5089_p1 = scmp.ne.s32.totalorder %s3871_s17, 0 }
  0x67   : > { %s2932_s26 = sshll.u32 %s5110_s9, 3  ;;  %s572_s22 = scalar_lea.vmem %s5041_s4, %s4016_s10 }
  0x68   : > { %s4021_s28 = scalar_lea.vmem %s5039_s2, %s2932_s26  ;;  %s4026_s7 = scalar_lea.vmem %s5040_s3, %s2932_s26 }
  0x69   : > { %577 = sbr.rel (%p5089_p1) target bundleno = 370 (0x172), region = 88 }
  0x6e   : > { %v647_v0 = vld [vmem:[%s5042_s5 + $0x1e8] sm:$0xff]  ;;  %v649_v1 = vld [vmem:[%s5042_s5 + $0x1f8] sm:$0xff]  ;;  %v646_v2 = vld [vmem:[%s5042_s5 + $0x1e0] sm:$0xff]  ;;  %v3767_v6 = vmov 0.0  }
  0x6f   : > { %672 = vmatprep.subr.mxu0 %v647_v0  ;;  %785 = vmatprep.subr.mxu1 %v649_v1  ;;  %v648_v3 = vld [vmem:[%s5042_s5 + $0x1f0] sm:$0xff]  ;;  %v643_v4 = vld [vmem:[%s5042_s5 + $0x1c8] sm:$0xff]  ;;  %v645_v5 = vld [vmem:[%s5042_s5 + $0x1d8] sm:$0xff]  ;;  %930 = vst [vmem:[#allocation3] sm:$0xff] %v3767_v6 }
  0x70   : > { %931 = vst [vmem:[#allocation3 + $0x48] sm:$0xff] %v3767_v6  ;;  %932 = vst [vmem:[#allocation3 + $0x68] sm:$0xff] %v3767_v6  ;;  %673 = vmatpush1.msra.mxu0 %v646_v2  ;;  %786 = vmatpush1.msra.mxu1 %v648_v3  ;;  %v642_v7 = vld [vmem:[%s5042_s5 + $0x1c0] sm:$0xff]  ;;  %v644_v8 = vld [vmem:[%s5042_s5 + $0x1d0] sm:$0xff] }
  0x71   : > { %933 = vst [vmem:[#allocation3 + $0x78] sm:$0xff] %v3767_v6  ;;  %934 = vst [vmem:[#allocation3 + $0x8] sm:$0xff] %v3767_v6  ;;  %v639_v9 = vld [vmem:[%s5042_s5 + $0x1a8] sm:$0xff]  ;;  %674 = vmatprep.subr.mxu0 %v643_v4  ;;  %787 = vmatprep.subr.mxu1 %v645_v5  ;;  %v641_v10 = vld [vmem:[%s5042_s5 + $0x1b8] sm:$0xff] }
  0x72   : > { %935 = vst [vmem:[#allocation3 + $0x50] sm:$0xff] %v3767_v6  ;;  %936 = vst [vmem:[#allocation3 + $0x40] sm:$0xff] %v3767_v6  ;;  %v638_v11 = vld [vmem:[%s5042_s5 + $0x1a0] sm:$0xff]  ;;  %v640_v12 = vld [vmem:[%s5042_s5 + $0x1b0] sm:$0xff]  ;;  %675 = vmatpush1.msra.mxu0 %v642_v7  ;;  %788 = vmatpush1.msra.mxu1 %v644_v8 }
  0x73   : > { %937 = vst [vmem:[#allocation3 + $0x38] sm:$0xff] %v3767_v6  ;;  %938 = vst [vmem:[#allocation3 + $0x70] sm:$0xff] %v3767_v6  ;;  %v635_v13 = vld [vmem:[%s5042_s5 + $0x188] sm:$0xff]  ;;  %v637_v14 = vld [vmem:[%s5042_s5 + $0x198] sm:$0xff]  ;;  %676 = vmatprep.subr.mxu0 %v639_v9  ;;  %789 = vmatprep.subr.mxu1 %v641_v10  ;;  %v652_v10 = vlaneseq }
  0x74   : > { %939 = vst [vmem:[#allocation3 + $0x60] sm:$0xff] %v3767_v6  ;;  %940 = vst [vmem:[#allocation3 + $0x18] sm:$0xff] %v3767_v6  ;;  %v634_v15 = vld [vmem:[%s5042_s5 + $0x180] sm:$0xff]  ;;  %v636_v16 = vld [vmem:[%s5042_s5 + $0x190] sm:$0xff]  ;;  %677 = vmatpush1.msra.mxu0 %v638_v11  ;;  %790 = vmatpush1.msra.mxu1 %v640_v12 }
  0x75   : > { %941 = vst [vmem:[#allocation3 + $0x20] sm:$0xff] %v3767_v6  ;;  %942 = vst [vmem:[#allocation3 + $0x10] sm:$0xff] %v3767_v6  ;;  %v631_v17 = vld [vmem:[%s5042_s5 + $0x168] sm:$0xff]  ;;  %v633_v18 = vld [vmem:[%s5042_s5 + $0x178] sm:$0xff]  ;;  %678 = vmatprep.subr.mxu0 %v635_v13  ;;  %791 = vmatprep.subr.mxu1 %v637_v14  ;;  %v653_v11 = vshrl.u32 %v652_v10, 7 }
  0x76   : > { %943 = vst [vmem:[#allocation3 + $0x30] sm:$0xff] %v3767_v6  ;;  %944 = vst [vmem:[#allocation3 + $0x28] sm:$0xff] %v3767_v6  ;;  %v630_v19 = vld [vmem:[%s5042_s5 + $0x160] sm:$0xff]  ;;  %v632_v20 = vld [vmem:[%s5042_s5 + $0x170] sm:$0xff]  ;;  %679 = vmatpush1.msra.mxu0 %v634_v15  ;;  %792 = vmatpush1.msra.mxu1 %v636_v16 }
  0x77   : > { %945 = vst [vmem:[#allocation3 + $0x58] sm:$0xff] %v3767_v6  ;;  %v627_v21 = vld [vmem:[%s5042_s5 + $0x148] sm:$0xff]  ;;  %v629_v22 = vld [vmem:[%s5042_s5 + $0x158] sm:$0xff]  ;;  %680 = vmatprep.subr.mxu0 %v631_v17  ;;  %793 = vmatprep.subr.mxu1 %v633_v18  ;;  %v626_v23 = vld [vmem:[%s5042_s5 + $0x140] sm:$0xff]  ;;  %v654_v12 = vsub.s32 0, %v653_v11  ;;  %v662_v13 = vsub.s32 2, %v653_v11 }
  0x78   : > { %v628_v24 = vld [vmem:[%s5042_s5 + $0x150] sm:$0xff]  ;;  %681 = vmatpush1.msra.mxu0 %v630_v19  ;;  %794 = vmatpush1.msra.mxu1 %v632_v20  ;;  %v623_v25 = vld [vmem:[%s5042_s5 + $0x128] sm:$0xff]  ;;  %v625_v26 = vld [vmem:[%s5042_s5 + $0x138] sm:$0xff]  ;;  %v658_v15 = vsub.s32 1, %v653_v11  ;;  %v666_v16 = vsub.s32 3, %v653_v11 }
  0x79   : > { %682 = vmatprep.subr.mxu0 %v627_v21  ;;  %795 = vmatprep.subr.mxu1 %v629_v22  ;;  %v622_v27 = vld [vmem:[%s5042_s5 + $0x120] sm:$0xff]  ;;  %v624_v28 = vld [vmem:[%s5042_s5 + $0x130] sm:$0xff]  ;;  %v619_v29 = vld [vmem:[%s5042_s5 + $0x108] sm:$0xff] }
  0x7a   : > { %683 = vmatpush1.msra.mxu0 %v626_v23  ;;  %796 = vmatpush1.msra.mxu1 %v628_v24  ;;  %v621_v30 = vld [vmem:[%s5042_s5 + $0x118] sm:$0xff]  ;;  %v618_v31 = vld [vmem:[%s5042_s5 + $0x100] sm:$0xff]  ;;  %v620_v32 = vld [vmem:[%s5042_s5 + $0x110] sm:$0xff] }
  0x7b   : > { %684 = vmatprep.subr.mxu0 %v623_v25  ;;  %797 = vmatprep.subr.mxu1 %v625_v26  ;;  %v615_v33 = vld [vmem:[%s5042_s5 + $0xe8] sm:$0xff]  ;;  %v617_v34 = vld [vmem:[%s5042_s5 + $0xf8] sm:$0xff]  ;;  %v614_v35 = vld [vmem:[%s5042_s5 + $0xe0] sm:$0xff] }
  0x7c   : > { %685 = vmatpush1.msra.mxu0 %v622_v27  ;;  %798 = vmatpush1.msra.mxu1 %v624_v28  ;;  %v616_v36 = vld [vmem:[%s5042_s5 + $0xf0] sm:$0xff]  ;;  %v611_v37 = vld [vmem:[%s5042_s5 + $0xc8] sm:$0xff]  ;;  %v613_v38 = vld [vmem:[%s5042_s5 + $0xd8] sm:$0xff] }
  0x7d   : > { %686 = vmatprep.subr.mxu0 %v619_v29  ;;  %799 = vmatprep.subr.mxu1 %v621_v30  ;;  %v610_v39 = vld [vmem:[%s5042_s5 + $0xc0] sm:$0xff]  ;;  %v612_v40 = vld [vmem:[%s5042_s5 + $0xd0] sm:$0xff]  ;;  %v607_v41 = vld [vmem:[%s5042_s5 + $0xa8] sm:$0xff] }
  0x7e   : > { %687 = vmatpush1.msra.mxu0 %v618_v31  ;;  %800 = vmatpush1.msra.mxu1 %v620_v32  ;;  %v609_v42 = vld [vmem:[%s5042_s5 + $0xb8] sm:$0xff]  ;;  %v606_v43 = vld [vmem:[%s5042_s5 + $0xa0] sm:$0xff]  ;;  %v608_v44 = vld [vmem:[%s5042_s5 + $0xb0] sm:$0xff] }
  0x7f   : > { %688 = vmatprep.subr.mxu0 %v615_v33  ;;  %801 = vmatprep.subr.mxu1 %v617_v34  ;;  %v603_v45 = vld [vmem:[%s5042_s5 + $0x88] sm:$0xff]  ;;  %v605_v46 = vld [vmem:[%s5042_s5 + $0x98] sm:$0xff]  ;;  %v602_v47 = vld [vmem:[%s5042_s5 + $0x80] sm:$0xff] }
  0x80   : > { %689 = vmatpush1.msra.mxu0 %v614_v35  ;;  %802 = vmatpush1.msra.mxu1 %v616_v36  ;;  %v604_v48 = vld [vmem:[%s5042_s5 + $0x90] sm:$0xff]  ;;  %v599_v49 = vld [vmem:[%s5042_s5 + $0x68] sm:$0xff]  ;;  %v601_v50 = vld [vmem:[%s5042_s5 + $0x78] sm:$0xff] }
  0x81   : > { %690 = vmatprep.subr.mxu0 %v611_v37  ;;  %803 = vmatprep.subr.mxu1 %v613_v38  ;;  %v598_v51 = vld [vmem:[%s5042_s5 + $0x60] sm:$0xff]  ;;  %v600_v52 = vld [vmem:[%s5042_s5 + $0x70] sm:$0xff]  ;;  %v595_v53 = vld [vmem:[%s5042_s5 + $0x48] sm:$0xff] }
  0x82   : > { %691 = vmatpush1.msra.mxu0 %v610_v39  ;;  %804 = vmatpush1.msra.mxu1 %v612_v40  ;;  %v597_v54 = vld [vmem:[%s5042_s5 + $0x58] sm:$0xff]  ;;  %v594_v55 = vld [vmem:[%s5042_s5 + $0x40] sm:$0xff]  ;;  %v596_v56 = vld [vmem:[%s5042_s5 + $0x50] sm:$0xff] }
  0x83   : > { %692 = vmatprep.subr.mxu0 %v607_v41  ;;  %805 = vmatprep.subr.mxu1 %v609_v42  ;;  %v591_v57 = vld [vmem:[%s5042_s5 + $0x28] sm:$0xff]  ;;  %v593_v58 = vld [vmem:[%s5042_s5 + $0x38] sm:$0xff]  ;;  %v590_v59 = vld [vmem:[%s5042_s5 + $0x20] sm:$0xff] }
  0x84   : > { %693 = vmatpush1.msra.mxu0 %v606_v43  ;;  %806 = vmatpush1.msra.mxu1 %v608_v44  ;;  %v592_v60 = vld [vmem:[%s5042_s5 + $0x30] sm:$0xff]  ;;  %v587_v61 = vld [vmem:[%s5042_s5 + $0x8] sm:$0xff]  ;;  %v589_v62 = vld [vmem:[%s5042_s5 + $0x18] sm:$0xff] }
  0x85   : > { %694 = vmatprep.subr.mxu0 %v603_v45  ;;  %807 = vmatprep.subr.mxu1 %v605_v46  ;;  %v586_v63 = vld [vmem:[%s5042_s5] sm:$0xff]  ;;  %v588_v0 = vld [vmem:[%s5042_s5 + $0x10] sm:$0xff]  ;;  %v579_v2 = vld [vmem:[#allocation4 + $0x8] sm:$0xff] }
  0x86   : > { %695 = vmatpush1.msra.mxu0 %v602_v47  ;;  %808 = vmatpush1.msra.mxu1 %v604_v48  ;;  %v578_v1 = vld [vmem:[#allocation4] sm:$0xff]  ;;  %v580_v3 = vld [vmem:[#allocation4 + $0x10] sm:$0xff]  ;;  %v581_v4 = vld [vmem:[#allocation4 + $0x18] sm:$0xff] }
  0x87   : > { %696 = vmatprep.subr.mxu0 %v599_v49  ;;  %809 = vmatprep.subr.mxu1 %v601_v50  ;;  %v582_v5 = vld [vmem:[#allocation4 + $0x20] sm:$0xff]  ;;  %v583_v7 = vld [vmem:[#allocation4 + $0x28] sm:$0xff]  ;;  %v584_v8 = vld [vmem:[#allocation4 + $0x30] sm:$0xff] }
  0x88   : > { %697 = vmatpush1.msra.mxu0 %v598_v51  ;;  %810 = vmatpush1.msra.mxu1 %v600_v52  ;;  %v585_v9 = vld [vmem:[#allocation4 + $0x38] sm:$0xff]  ;;  %v650_v14 = vld [vmem:[%s5043_s6] sm:$0xf] }
  0x89   : > { %698 = vmatprep.subr.mxu0 %v595_v53  ;;  %811 = vmatprep.subr.mxu1 %v597_v54  ;;  %v4263_v17 = vrot.slane %v650_v14, %v654_v12  ;;  %v4265_v18 = vrot.slane %v650_v14, %v662_v13  ;;  %v4267_v19 = vrot.slane %v650_v14, %v658_v15 }
  0x8a   : > { %699 = vmatpush1.msra.mxu0 %v594_v55  ;;  %812 = vmatpush1.msra.mxu1 %v596_v56 }
  0x8b   : > { %700 = vmatprep.subr.mxu0 %v591_v57  ;;  %813 = vmatprep.subr.mxu1 %v593_v58 }
  0x8c   : > { %701 = vmatpush1.msra.mxu0 %v590_v59  ;;  %814 = vmatpush1.msra.mxu1 %v592_v60 }
  0x8d   : > { %702 = vmatprep.subr.mxu0 %v587_v61  ;;  %815 = vmatprep.subr.mxu1 %v589_v62 }
  0x8e   : > { %703 = vmatpush1.msra.mxu0 %v586_v63  ;;  %736 = vmatprep.mubr.f32.mxu0 %v3767_v6 }
  0x8f   : > { %816 = vmatpush1.msra.mxu1 %v588_v0  ;;  %849 = vmatprep.mubr.f32.mxu1 %v3767_v6 }
  0x90   : > { %737 = vmatmul.mubr.f32.vlgmr.msra.gmra.mxu0 %v578_v1  ;;  %850 = vmatmul.mubr.f32.vlgmr.msra.gmra.mxu1 %v578_v1 }
  0x91   : > { %742 = vmatprep.mubr.f32.mxu0 %v3767_v6  ;;  %855 = vmatprep.mubr.f32.mxu1 %v3767_v6 }
  0x94   : > { %743 = vmatmul.mubr.f32.gmra.mxu0 %v579_v2  ;;  %856 = vmatmul.mubr.f32.gmra.mxu1 %v579_v2 }
  0x95   : > { %748 = vmatprep.mubr.f32.mxu0 %v3767_v6  ;;  %861 = vmatprep.mubr.f32.mxu1 %v3767_v6 }
  0x98   : > { %749 = vmatmul.mubr.f32.gmra.mxu0 %v580_v3  ;;  %862 = vmatmul.mubr.f32.gmra.mxu1 %v580_v3 }
  0x99   : > { %754 = vmatprep.mubr.f32.mxu0 %v3767_v6  ;;  %867 = vmatprep.mubr.f32.mxu1 %v3767_v6 }
  0x9c   : > { %755 = vmatmul.mubr.f32.gmra.mxu0 %v581_v4  ;;  %868 = vmatmul.mubr.f32.gmra.mxu1 %v581_v4 }
  0x9d   : > { %760 = vmatprep.mubr.f32.mxu0 %v3767_v6  ;;  %873 = vmatprep.mubr.f32.mxu1 %v3767_v6 }
  0xa0   : > { %761 = vmatmul.mubr.f32.gmra.mxu0 %v582_v5  ;;  %874 = vmatmul.mubr.f32.gmra.mxu1 %v582_v5 }
  0xa1   : > { %766 = vmatprep.mubr.f32.mxu0 %v3767_v6  ;;  %879 = vmatprep.mubr.f32.mxu1 %v3767_v6 }
  0xa4   : > { %767 = vmatmul.mubr.f32.gmra.mxu0 %v583_v7  ;;  %880 = vmatmul.mubr.f32.gmra.mxu1 %v583_v7 }
  0xa5   : > { %772 = vmatprep.mubr.f32.mxu0 %v3767_v6  ;;  %885 = vmatprep.mubr.f32.mxu1 %v3767_v6 }
  0xa8   : > { %773 = vmatmul.mubr.f32.gmra.mxu0 %v584_v8  ;;  %886 = vmatmul.mubr.f32.gmra.mxu1 %v584_v8 }
  0xa9   : > { %778 = vmatprep.mubr.f32.mxu0 %v3767_v6  ;;  %891 = vmatprep.mubr.f32.mxu1 %v3767_v6  ;;  %v4269_v6 = vrot.slane %v650_v14, %v666_v16 }
  0xac   : > { %779 = vmatmul.mubr.f32.gmra.mxu0 %v585_v9  ;;  %892 = vmatmul.mubr.f32.gmra.mxu1 %v585_v9 }
 0x150   : > { %v738_v20 = vpop.f32.mrf.mxu0  ;;  %v851_v21 = vpop.f32.mrf.mxu1 }
 0x151   : > { %v739_v22 = vadd.f32 %v738_v20, %v4263_v17  ;;  %v852_v23 = vadd.f32 %v851_v21, %v4265_v18 }
 0x152   : > { %v740_v24 = vpop.f32.mrf.mxu0  ;;  %v853_v25 = vpop.f32.mrf.mxu1 }
 0x153   : > { %898 = vst [vmem:[#allocation2 + $0xb0] sm:$0xff] %v739_v22  ;;  %900 = vst [vmem:[#allocation2 + $0xd8] sm:$0xff] %v852_v23  ;;  %v741_v26 = vadd.f32 %v740_v24, %v4267_v19  ;;  %v854_v27 = vadd.f32 %v853_v25, %v4269_v6 }
 0x154   : > { %v744_v28 = vpop.f32.mrf.mxu0  ;;  %v857_v29 = vpop.f32.mrf.mxu1 }
 0x155   : > { %899 = vst [vmem:[#allocation2] sm:$0xff] %v741_v26  ;;  %901 = vst [vmem:[#allocation2 + $0x18] sm:$0xff] %v854_v27  ;;  %v745_v30 = vadd.f32 %v744_v28, %v4263_v17  ;;  %v858_v31 = vadd.f32 %v857_v29, %v4265_v18 }
 0x156   : > { %v746_v32 = vpop.f32.mrf.mxu0  ;;  %v859_v33 = vpop.f32.mrf.mxu1 }
 0x157   : > { %902 = vst [vmem:[#allocation2 + $0x50] sm:$0xff] %v745_v30  ;;  %904 = vst [vmem:[#allocation2 + $0x30] sm:$0xff] %v858_v31  ;;  %v747_v34 = vadd.f32 %v746_v32, %v4267_v19  ;;  %v860_v35 = vadd.f32 %v859_v33, %v4269_v6 }
 0x158   : > { %v750_v36 = vpop.f32.mrf.mxu0  ;;  %v863_v37 = vpop.f32.mrf.mxu1 }
 0x159   : > { %903 = vst [vmem:[#allocation2 + $0x68] sm:$0xff] %v747_v34  ;;  %905 = vst [vmem:[#allocation2 + $0x48] sm:$0xff] %v860_v35  ;;  %v751_v38 = vadd.f32 %v750_v36, %v4263_v17  ;;  %v864_v39 = vadd.f32 %v863_v37, %v4265_v18 }
 0x15a   : > { %v752_v40 = vpop.f32.mrf.mxu0  ;;  %v865_v41 = vpop.f32.mrf.mxu1 }
 0x15b   : > { %906 = vst [vmem:[#allocation2 + $0x80] sm:$0xff] %v751_v38  ;;  %908 = vst [vmem:[#allocation2 + $0xe8] sm:$0xff] %v864_v39  ;;  %v753_v42 = vadd.f32 %v752_v40, %v4267_v19  ;;  %v866_v43 = vadd.f32 %v865_v41, %v4269_v6 }
 0x15c   : > { %v756_v44 = vpop.f32.mrf.mxu0  ;;  %v869_v45 = vpop.f32.mrf.mxu1 }
 0x15d   : > { %907 = vst [vmem:[#allocation2 + $0x88] sm:$0xff] %v753_v42  ;;  %909 = vst [vmem:[#allocation2 + $0xb8] sm:$0xff] %v866_v43  ;;  %v757_v46 = vadd.f32 %v756_v44, %v4263_v17  ;;  %v870_v47 = vadd.f32 %v869_v45, %v4265_v18 }
 0x15e   : > { %v758_v48 = vpop.f32.mrf.mxu0  ;;  %v871_v49 = vpop.f32.mrf.mxu1 }
 0x15f   : > { %910 = vst [vmem:[#allocation2 + $0x60] sm:$0xff] %v757_v46  ;;  %912 = vst [vmem:[#allocation2 + $0x8] sm:$0xff] %v870_v47  ;;  %v759_v50 = vadd.f32 %v758_v48, %v4267_v19  ;;  %v872_v51 = vadd.f32 %v871_v49, %v4269_v6 }
 0x160   : > { %v762_v52 = vpop.f32.mrf.mxu0  ;;  %v875_v53 = vpop.f32.mrf.mxu1 }
 0x161   : > { %911 = vst [vmem:[#allocation2 + $0xf0] sm:$0xff] %v759_v50  ;;  %913 = vst [vmem:[#allocation2 + $0x78] sm:$0xff] %v872_v51  ;;  %v763_v54 = vadd.f32 %v762_v52, %v4263_v17  ;;  %v876_v55 = vadd.f32 %v875_v53, %v4265_v18 }
 0x162   : > { %v764_v56 = vpop.f32.mrf.mxu0  ;;  %v877_v57 = vpop.f32.mrf.mxu1 }
 0x163   : > { %914 = vst [vmem:[#allocation2 + $0x38] sm:$0xff] %v763_v54  ;;  %916 = vst [vmem:[#allocation2 + $0x40] sm:$0xff] %v876_v55  ;;  %v765_v58 = vadd.f32 %v764_v56, %v4267_v19  ;;  %v878_v59 = vadd.f32 %v877_v57, %v4269_v6 }
 0x164   : > { %v768_v60 = vpop.f32.mrf.mxu0  ;;  %v881_v61 = vpop.f32.mrf.mxu1 }
 0x165   : > { %915 = vst [vmem:[#allocation2 + $0x58] sm:$0xff] %v765_v58  ;;  %917 = vst [vmem:[#allocation2 + $0xc8] sm:$0xff] %v878_v59  ;;  %v769_v62 = vadd.f32 %v768_v60, %v4263_v17  ;;  %v882_v63 = vadd.f32 %v881_v61, %v4265_v18 }
 0x166   : > { %v770_v0 = vpop.f32.mrf.mxu0  ;;  %v883_v1 = vpop.f32.mrf.mxu1 }
 0x167   : > { %918 = vst [vmem:[#allocation2 + $0xe0] sm:$0xff] %v769_v62  ;;  %920 = vst [vmem:[#allocation2 + $0x70] sm:$0xff] %v882_v63  ;;  %v771_v2 = vadd.f32 %v770_v0, %v4267_v19  ;;  %v884_v3 = vadd.f32 %v883_v1, %v4269_v6 }
 0x168   : > { %v774_v4 = vpop.f32.mrf.mxu0  ;;  %v887_v5 = vpop.f32.mrf.mxu1 }
 0x169   : > { %919 = vst [vmem:[#allocation2 + $0x90] sm:$0xff] %v771_v2  ;;  %921 = vst [vmem:[#allocation2 + $0xc0] sm:$0xff] %v884_v3  ;;  %v775_v7 = vadd.f32 %v774_v4, %v4263_v17  ;;  %v888_v8 = vadd.f32 %v887_v5, %v4265_v18 }
 0x16a   : > { %v776_v9 = vpop.f32.mrf.mxu0  ;;  %v889_v10 = vpop.f32.mrf.mxu1 }
 0x16b   : > { %922 = vst [vmem:[#allocation2 + $0xa8] sm:$0xff] %v775_v7  ;;  %924 = vst [vmem:[#allocation2 + $0x10] sm:$0xff] %v888_v8  ;;  %v777_v11 = vadd.f32 %v776_v9, %v4267_v19  ;;  %v890_v12 = vadd.f32 %v889_v10, %v4269_v6 }
 0x16c   : > { %v780_v13 = vpop.f32.mrf.mxu0  ;;  %v893_v14 = vpop.f32.mrf.mxu1 }
 0x16d   : > { %923 = vst [vmem:[#allocation2 + $0xd0] sm:$0xff] %v777_v11  ;;  %925 = vst [vmem:[#allocation2 + $0x28] sm:$0xff] %v890_v12  ;;  %v781_v15 = vadd.f32 %v780_v13, %v4263_v17  ;;  %v894_v16 = vadd.f32 %v893_v14, %v4265_v18 }
 0x16e   : > { %v782_v20 = vpop.f32.mrf.mxu0  ;;  %v895_v21 = vpop.f32.mrf.mxu1 }
 0x16f   : > { %926 = vst [vmem:[#allocation2 + $0xa0] sm:$0xff] %v781_v15  ;;  %928 = vst [vmem:[#allocation2 + $0x20] sm:$0xff] %v894_v16  ;;  %v783_v22 = vadd.f32 %v782_v20, %v4267_v19  ;;  %v896_v23 = vadd.f32 %v895_v21, %v4269_v6 }
 0x171   : > { %927 = vst [vmem:[#allocation2 + $0xf8] sm:$0xff] %v783_v22  ;;  %929 = vst [vmem:[#allocation2 + $0x98] sm:$0xff] %v896_v23 }
 0x172 PF: > { %v1132_v17 = vld [vmem:[%s4021_s28 + $0x10] sm:$0xff]  ;;  %v1130_v24 = vld [vmem:[%s4021_s28] sm:$0xff]  ;;  %v3768_v18 = vmov 0   ;;  %v1133_v19 = vld [vmem:[%s4021_s28 + $0x18] sm:$0xff]  ;;  %v3769_v25 = vmov 0.0   ;;  %vm1426_vm0 = vcmask 523264  }
 0x173   : > { %3339 = vset.pattern.permute.xlu1 %v3768_v18  ;;  %3338 = vset.pattern.permute.xlu0 %v3768_v18  ;;  %v1131_v6 = vld [vmem:[%s4021_s28 + $0x8] sm:$0xff]  ;;  %v1134_v27 = vld [vmem:[%s4021_s28 + $0x20] sm:$0xff]  ;;  %v977_v28 = vld [vmem:[#allocation9 + $0x78] sm:$0xff]  ;;  %p3052_p10 = scmp.ne.s32.totalorder %s3871_s17, 1 }
 0x174   : > { %1181 = vperm.xlu1 %3339, %v1132_v17   ;;  %1175 = vperm.xlu0 %3338, %v1130_v24   ;;  %v1135_v26 = vld [vmem:[%s4021_s28 + $0x28] sm:$0xff]  ;;  %v1137_v29 = vld [vmem:[%s4021_s28 + $0x38] sm:$0xff]  ;;  %v1136_v30 = vld [vmem:[%s4021_s28 + $0x30] sm:$0xff]  ;;  %s5090_s26 = sld [smem:[#allocation24_spill]] (!%p3052_p10) }
 0x175   : > { %1539 = vmatprep.mubr.f32.mxu1 %v3769_v25  ;;  %3128 = vmatprep.subr.mxu0 %v977_v28  ;;  %v976_v31 = vld [vmem:[#allocation9 + $0x70] sm:$0xff]  ;;  %v975_v32 = vld [vmem:[#allocation9 + $0x68] sm:$0xff]  ;;  %v1138_v33 = vld [vmem:[%s4021_s28 + $0x40] sm:$0xff]  ;;  %s5091_s18 = sld [smem:[#allocation25_spill]] (!%p3052_p10) }
 0x176   : > { %3129 = vmatpush3.msra.mxu0 %v977_v28  ;;  %v1146_v34 = vld [vmem:[%s4026_s7] sm:$0xff]  ;;  %v4314_v36 = vld [vmem:[#allocation2 + $0x18] sm:$0xff]  ;;  %v4316_v37 = vld [vmem:[#allocation2 + $0x48] sm:$0xff] }
 0x177   : > { %3130 = vmatprep.subr.mxu0 %v976_v31  ;;  %v974_v35 = vld [vmem:[#allocation9 + $0x60] sm:$0xff]  ;;  %v4318_v38 = vld [vmem:[#allocation2 + $0xb8] sm:$0xff]  ;;  %v1148_v40 = vld [vmem:[%s4026_s7 + $0x10] sm:$0xff] }
 0x178   : > { %1184 = vperm.xlu1 %3339, %v1133_v19   ;;  %1178 = vperm.xlu0 %3338, %v1131_v6   ;;  %v4320_v39 = vld [vmem:[#allocation2 + $0x78] sm:$0xff]  ;;  %v4323_v41 = vld [vmem:[#allocation2 + $0xc8] sm:$0xff]  ;;  %v4325_v42 = vld [vmem:[#allocation2 + $0xc0] sm:$0xff] }
 0x179   : > { %3131 = vmatpush3.msra.mxu0 %v976_v31  ;;  %v4327_v43 = vld [vmem:[#allocation2 + $0x28] sm:$0xff]  ;;  %v973_v44 = vld [vmem:[#allocation9 + $0x58] sm:$0xff]  ;;  %v1422_v48 = vld [vmem:[#allocation2 + $0xa0] sm:$0xff] }
 0x17a   : > { %3132 = vmatprep.subr.mxu0 %v975_v32  ;;  %v1423_v45 = vld [vmem:[#allocation2 + $0xf8] sm:$0xff]  ;;  %v1147_v47 = vld [vmem:[%s4026_s7 + $0x8] sm:$0xff]  ;;  %v946_v49 = vld [vmem:[%s4003_s25] sm:$0xff] }
 0x17b   : > { %3133 = vmatpush3.msra.mxu0 %v975_v32  ;;  %v4329_v46 = vld [vmem:[#allocation2 + $0x98] sm:$0xff]  ;;  %1491 = vmatprep.subr.mxu1 %v1423_v45  ;;  %v1419_v50 = vld [vmem:[#allocation2 + $0xd0] sm:$0xff]  ;;  %v1418_v52 = vld [vmem:[#allocation2 + $0xa8] sm:$0xff] }
 0x17c   : > { %1190 = vperm.xlu1 %3339, %v1135_v26   ;;  %1187 = vperm.xlu0 %3338, %v1134_v27   ;;  %v972_v51 = vld [vmem:[#allocation9 + $0x50] sm:$0xff]  ;;  %v1149_v54 = vld [vmem:[%s4026_s7 + $0x18] sm:$0xff]  ;;  %v1139_v55 = vld [vmem:[%s4021_s28 + $0x48] sm:$0xff] }
 0x17d   : > { %3134 = vmatprep.subr.mxu0 %v974_v35  ;;  %1492 = vmatpush1.msra.mxu1 %v1422_v48  ;;  %v1415_v53 = vld [vmem:[#allocation2 + $0x90] sm:$0xff]  ;;  %v971_v56 = vld [vmem:[#allocation9 + $0x48] sm:$0xff]  ;;  %v1414_v57 = vld [vmem:[#allocation2 + $0xe0] sm:$0xff] }
 0x17e   : > { %3135 = vmatpush3.msra.mxu0 %v974_v35  ;;  %3160 = vmatprep.mubr.f32.mxu0 %v946_v49  ;;  %v1411_v58 = vld [vmem:[#allocation2 + $0x58] sm:$0xff]  ;;  %v970_v59 = vld [vmem:[#allocation9 + $0x40] sm:$0xff]  ;;  %v1140_v61 = vld [vmem:[%s4021_s28 + $0x50] sm:$0xff] }
 0x17f   : > { %3136 = vmatprep.subr.mxu0 %v973_v44  ;;  %1493 = vmatprep.subr.mxu1 %v1419_v50  ;;  %v1410_v60 = vld [vmem:[#allocation2 + $0x38] sm:$0xff]  ;;  %v1150_v62 = vld [vmem:[%s4026_s7 + $0x20] sm:$0xff]  ;;  %v1407_v63 = vld [vmem:[#allocation2 + $0xf0] sm:$0xff] }
 0x180   : > { %1196 = vperm.xlu1 %3339, %v1137_v29   ;;  %1193 = vperm.xlu0 %3338, %v1136_v30   ;;  %v969_v0 = vld [vmem:[#allocation9 + $0x38] sm:$0xff]  ;;  %v1406_v1 = vld [vmem:[#allocation2 + $0x60] sm:$0xff]  ;;  %v1403_v2 = vld [vmem:[#allocation2 + $0x88] sm:$0xff] }
 0x181   : > { %3137 = vmatpush3.msra.mxu0 %v973_v44  ;;  %1494 = vmatpush1.msra.mxu1 %v1418_v52  ;;  %v1152_v3 = vld [vmem:[%s4026_s7 + $0x30] sm:$0xff]  ;;  %v1151_v4 = vld [vmem:[%s4026_s7 + $0x28] sm:$0xff]  ;;  %v1402_v7 = vld [vmem:[#allocation2 + $0x80] sm:$0xff] }
 0x182   : > { %3138 = vmatprep.subr.mxu0 %v972_v51  ;;  %1495 = vmatprep.subr.mxu1 %v1415_v53  ;;  %v968_v5 = vld [vmem:[#allocation9 + $0x30] sm:$0xff]  ;;  %v1399_v8 = vld [vmem:[#allocation2 + $0x68] sm:$0xff]  ;;  %v1153_v11 = vld [vmem:[%s4026_s7 + $0x38] sm:$0xff] }
 0x183   : > { %3139 = vmatpush3.msra.mxu0 %v972_v51  ;;  %1496 = vmatpush1.msra.mxu1 %v1414_v57  ;;  %v967_v9 = vld [vmem:[#allocation9 + $0x28] sm:$0xff]  ;;  %v1398_v10 = vld [vmem:[#allocation2 + $0x50] sm:$0xff]  ;;  %v1141_v12 = vld [vmem:[%s4021_s28 + $0x58] sm:$0xff] }
 0x184   : > { %1199 = vperm.xlu1 %3339, %v1138_v33   ;;  %1271 = vperm.xlu0 %3338, %v1146_v34   ;;  %v1395_v13 = vld [vmem:[#allocation2] sm:$0xff]  ;;  %v1394_v15 = vld [vmem:[#allocation2 + $0xb0] sm:$0xff]  ;;  %v965_v21 = vld [vmem:[#allocation9 + $0x18] sm:$0xff] }
 0x185   : > { %3140 = vmatprep.subr.mxu0 %v971_v56  ;;  %1497 = vmatprep.subr.mxu1 %v1411_v58  ;;  %v966_v14 = vld [vmem:[#allocation9 + $0x20] sm:$0xff]  ;;  %v964_v22 = vld [vmem:[#allocation9 + $0x10] sm:$0xff]  ;;  %v1155_v17 = vld [vmem:[%s4026_s7 + $0x48] sm:$0xff] }
 0x186   : > { %3141 = vmatpush3.msra.mxu0 %v971_v56  ;;  %1498 = vmatpush1.msra.mxu1 %v1410_v60  ;;  %v1142_v16 = vld [vmem:[%s4021_s28 + $0x60] sm:$0xff]  ;;  %v1156_v23 = vld [vmem:[%s4026_s7 + $0x50] sm:$0xff]  ;;  %v963_v24 = vld [vmem:[#allocation9 + $0x8] sm:$0xff] }
 0x187   : > { %3142 = vmatprep.subr.mxu0 %v970_v59  ;;  %1499 = vmatprep.subr.mxu1 %v1407_v63  ;;  %v1154_v20 = vld [vmem:[%s4026_s7 + $0x40] sm:$0xff]  ;;  %v1157_v18 = vld [vmem:[%s4026_s7 + $0x58] sm:$0xff]  ;;  %v1143_v19 = vld [vmem:[%s4021_s28 + $0x68] sm:$0xff]  ;;  %v1163_v63 = vlaneseq }
 0x188   : > { %1277 = vperm.xlu1 %3339, %v1148_v40   ;;  %1274 = vperm.xlu0 %3338, %v1147_v47   ;;  %v962_v6 = vld [vmem:[#allocation9] sm:$0xff]  ;;  %v947_v26 = vld [vmem:[%s4003_s25 + $0x8] sm:$0xff]  ;;  %v1144_v28 = vld [vmem:[%s4021_s28 + $0x70] sm:$0xff] }
 0x189   : > { %3143 = vmatpush3.msra.mxu0 %v970_v59  ;;  %1500 = vmatpush1.msra.mxu1 %v1406_v1  ;;  %v1424_v27 = vld [vmem:[#allocation2 + $0x20] sm:$0xff]  ;;  %v948_v30 = vld [vmem:[%s4003_s25 + $0x10] sm:$0xff]  ;;  %v949_v32 = vld [vmem:[%s4003_s25 + $0x18] sm:$0xff] }
 0x18a   : > { %3144 = vmatprep.subr.mxu0 %v969_v0  ;;  %1501 = vmatprep.subr.mxu1 %v1403_v2  ;;  %v1158_v29 = vld [vmem:[%s4026_s7 + $0x60] sm:$0xff]  ;;  %v1420_v31 = vld [vmem:[#allocation2 + $0x10] sm:$0xff]  ;;  %v1159_v34 = vld [vmem:[%s4026_s7 + $0x68] sm:$0xff] }
 0x18b   : > { %3145 = vmatpush3.msra.mxu0 %v969_v0  ;;  %1502 = vmatpush1.msra.mxu1 %v1402_v7  ;;  %v1160_v33 = vld [vmem:[%s4026_s7 + $0x70] sm:$0xff]  ;;  %v950_v35 = vld [vmem:[%s4003_s25 + $0x20] sm:$0xff]  ;;  %v951_v44 = vld [vmem:[%s4003_s25 + $0x28] sm:$0xff]  ;;  %v4369_v0 = vand.u32 127, %v1163_v63 }
 0x18c   : > { %1280 = vperm.xlu1 %3339, %v1149_v54   ;;  %1202 = vperm.xlu0 %3338, %v1139_v55   ;;  %v1416_v40 = vld [vmem:[#allocation2 + $0x70] sm:$0xff]  ;;  %v1161_v45 = vld [vmem:[%s4026_s7 + $0x78] sm:$0xff]  ;;  %v1412_v49 = vld [vmem:[#allocation2 + $0x40] sm:$0xff] }
 0x18d   : > { %3146 = vmatprep.subr.mxu0 %v968_v5  ;;  %1503 = vmatprep.subr.mxu1 %v1399_v8  ;;  %v1145_v47 = vld [vmem:[%s4021_s28 + $0x78] sm:$0xff]  ;;  %v952_v48 = vld [vmem:[%s4003_s25 + $0x30] sm:$0xff]  ;;  %v954_v51 = vld [vmem:[%s4003_s25 + $0x40] sm:$0xff] }
 0x18e   : > { %3147 = vmatpush3.msra.mxu0 %v968_v5  ;;  %1504 = vmatpush1.msra.mxu1 %v1398_v10  ;;  %v953_v50 = vld [vmem:[%s4003_s25 + $0x38] sm:$0xff]  ;;  %v1408_v52 = vld [vmem:[#allocation2 + $0x8] sm:$0xff]  ;;  %v956_v55 = vld [vmem:[%s4003_s25 + $0x50] sm:$0xff] }
 0x18f   : > { %3148 = vmatprep.subr.mxu0 %v967_v9  ;;  %1505 = vmatprep.subr.mxu1 %v1395_v13  ;;  %v955_v53 = vld [vmem:[%s4003_s25 + $0x48] sm:$0xff]  ;;  %v1400_v56 = vld [vmem:[#allocation2 + $0x30] sm:$0xff]  ;;  %v957_v57 = vld [vmem:[%s4003_s25 + $0x58] sm:$0xff] }
 0x190   : > { %1205 = vperm.xlu1 %3339, %v1140_v61   ;;  %1283 = vperm.xlu0 %3338, %v1150_v62   ;;  %v1404_v54 = vld [vmem:[#allocation2 + $0xe8] sm:$0xff]  ;;  %v1396_v58 = vld [vmem:[#allocation2 + $0xd8] sm:$0xff]  ;;  %v958_v59 = vld [vmem:[%s4003_s25 + $0x60] sm:$0xff] }
 0x191   : > { %3149 = vmatpush3.msra.mxu0 %v967_v9  ;;  %1506 = vmatpush1.msra.mxu1 %v1394_v15  ;;  %v959_v60 = vld [vmem:[%s4003_s25 + $0x68] sm:$0xff]  ;;  %v960_v61 = vld [vmem:[%s4003_s25 + $0x70] sm:$0xff]  ;;  %v961_v62 = vld [vmem:[%s4003_s25 + $0x78] sm:$0xff] }
 0x192   : > { %3150 = vmatprep.subr.mxu0 %v966_v14 }
 0x193   : > { %3151 = vmatpush3.msra.mxu0 %v966_v14 }
 0x194   : > { %1289 = vperm.xlu1 %3339, %v1152_v3   ;;  %1286 = vperm.xlu0 %3338, %v1151_v4  }
 0x195   : > { %3152 = vmatprep.subr.mxu0 %v965_v21 }
 0x196   : > { %3153 = vmatpush3.msra.mxu0 %v965_v21 }
 0x197   : > { %3154 = vmatprep.subr.mxu0 %v964_v22 }
 0x198   : > { %1292 = vperm.xlu1 %3339, %v1153_v11   ;;  %1208 = vperm.xlu0 %3338, %v1141_v12  }
 0x199   : > { %3155 = vmatpush3.msra.mxu0 %v964_v22 }
 0x19a   : > { %3156 = vmatprep.subr.mxu0 %v963_v24 }
 0x19b   : > { %3157 = vmatpush3.msra.mxu0 %v963_v24 }
 0x19c   : > { %1211 = vperm.xlu1 %3339, %v1142_v16   ;;  %1295 = vperm.xlu0 %3338, %v1154_v20  }
 0x19d   : > { %3158 = vmatprep.subr.mxu0 %v962_v6 }
 0x19e   : > { %3159 = vmatpush3.msra.mxu0 %v962_v6 }
 0x19f   : > { %3161 = vmatmul.mubr.f32.vlgmr.msra.gmra.mxu0 %v947_v26  ;;  %3184 = vmatprep.subr.mxu0 %v1424_v27 }
 0x1a0   : > { %1301 = vperm.xlu1 %3339, %v1156_v23   ;;  %1298 = vperm.xlu0 %3338, %v1155_v17  }
 0x1a1   : > { %3163 = vmatprep.mubr.f32.mxu0 %v948_v30  ;;  %3185 = vmatpush3.msra.mxu0 %v1424_v27 }
 0x1a2   : > { %3186 = vmatprep.subr.mxu0 %v1420_v31 }
 0x1a3   : > { %3164 = vmatmul.mubr.f32.gmra.mxu0 %v949_v32 }
 0x1a4   : > { %1304 = vperm.xlu1 %3339, %v1157_v18   ;;  %1214 = vperm.xlu0 %3338, %v1143_v19  }
 0x1a5   : > { %3166 = vmatprep.mubr.f32.mxu0 %v950_v35  ;;  %3187 = vmatpush3.msra.mxu0 %v1420_v31 }
 0x1a6   : > { %3188 = vmatprep.subr.mxu0 %v1416_v40 }
 0x1a7   : > { %3167 = vmatmul.mubr.f32.gmra.mxu0 %v951_v44 }
 0x1a8   : > { %1217 = vperm.xlu1 %3339, %v1144_v28   ;;  %1307 = vperm.xlu0 %3338, %v1158_v29  }
 0x1a9   : > { %3169 = vmatprep.mubr.f32.mxu0 %v952_v48  ;;  %3189 = vmatpush3.msra.mxu0 %v1416_v40 }
 0x1aa   : > { %3190 = vmatprep.subr.mxu0 %v1412_v49 }
 0x1ab   : > { %3170 = vmatmul.mubr.f32.gmra.mxu0 %v953_v50 }
 0x1ac   : > { %1313 = vperm.xlu1 %3339, %v1160_v33   ;;  %1310 = vperm.xlu0 %3338, %v1159_v34  }
 0x1ad   : > { %3172 = vmatprep.mubr.f32.mxu0 %v954_v51  ;;  %3191 = vmatpush3.msra.mxu0 %v1412_v49 }
 0x1ae   : > { %3192 = vmatprep.subr.mxu0 %v1408_v52 }
 0x1af   : > { %3193 = vmatpush3.msra.mxu0 %v1408_v52 }
 0x1b0   : > { %1316 = vperm.xlu1 %3339, %v1161_v45   ;;  %1220 = vperm.xlu0 %3338, %v1145_v47  }
 0x1b1   : > { %3173 = vmatmul.mubr.f32.gmra.mxu0 %v955_v53  ;;  %3194 = vmatprep.subr.mxu0 %v1404_v54 }
 0x1b2   : > { %3175 = vmatprep.mubr.f32.mxu0 %v956_v55  ;;  %3195 = vmatpush3.msra.mxu0 %v1404_v54 }
 0x1b3   : > { %3196 = vmatprep.subr.mxu0 %v1400_v56 }
 0x1b4   : > { %3197 = vmatpush3.msra.mxu0 %v1400_v56 }
 0x1b5   : > { %3176 = vmatmul.mubr.f32.gmra.mxu0 %v957_v57  ;;  %3198 = vmatprep.subr.mxu0 %v1396_v58 }
 0x1b6   : > { %3178 = vmatprep.mubr.f32.mxu0 %v958_v59  ;;  %3199 = vmatpush3.msra.mxu0 %v1396_v58 }
 0x1b9   : > { %3179 = vmatmul.mubr.f32.gmra.mxu0 %v959_v60 }
 0x1ba   : > { %3181 = vmatprep.mubr.f32.mxu0 %v960_v61 }
 0x1bd   : > { %3182 = vmatmul.mubr.f32.gmra.mxu0 %v961_v62 }
 0x1ef   : > { %v1182_v1 = vpop.permute.xlu1 %1181  ;;  %v1176_v2 = vpop.permute.xlu0 %1175 }
 0x1f0   : > { %vm1222_vm1 = vcmp.eq.s32.totalorder %v1176_v2, %v4369_v0  ;;  %vm1224_vm3 = vcmp.eq.s32.totalorder %v1182_v1, %v4369_v0 }
 0x1f1   : > { %v2937_v3 = vsel %vm1222_vm1, 1.0, %v3769_v25  ;;  %v2939_v10 = vsel %vm1224_vm3, 1.0, %v3769_v25 }
 0x1f2   : > { %2978 = vmatmul.mubr.msk.f32.vlgmr.msra.gmra.mxu1 %vm1426_vm0, %v2937_v3 }
 0x1f3   : > { %v1185_v4 = vpop.permute.xlu1 %1184  ;;  %v1179_v5 = vpop.permute.xlu0 %1178  ;;  %1545 = vmatprep.mubr.f32.mxu1 %v3769_v25 }
 0x1f4   : > { %vm1223_vm2 = vcmp.eq.s32.totalorder %v1179_v5, %v4369_v0  ;;  %vm1225_vm4 = vcmp.eq.s32.totalorder %v1185_v4, %v4369_v0 }
 0x1f5   : > { %v2938_v7 = vsel %vm1223_vm2, 1.0, %v3769_v25  ;;  %v2940_v13 = vsel %vm1225_vm4, 1.0, %v3769_v25 }
 0x1f6   : > { %2979 = vmatmul.mubr.msk.f32.gmra.mxu1 %vm1426_vm0, %v2938_v7 }
 0x1f7   : > { %v1191_v8 = vpop.permute.xlu1 %1190  ;;  %v1188_v9 = vpop.permute.xlu0 %1187  ;;  %1551 = vmatprep.mubr.f32.mxu1 %v3769_v25 }
 0x1f8   : > { %vm1226_vm5 = vcmp.eq.s32.totalorder %v1188_v9, %v4369_v0  ;;  %vm1227_vm7 = vcmp.eq.s32.totalorder %v1191_v8, %v4369_v0 }
 0x1f9   : > { %v2941_v16 = vsel %vm1226_vm5, 1.0, %v3769_v25  ;;  %v2942_v23 = vsel %vm1227_vm7, 1.0, %v3769_v25 }
 0x1fa   : > { %2980 = vmatmul.mubr.msk.f32.gmra.mxu1 %vm1426_vm0, %v2939_v10 }
 0x1fb   : > { %v1197_v11 = vpop.permute.xlu1 %1196  ;;  %v1194_v12 = vpop.permute.xlu0 %1193  ;;  %1557 = vmatprep.mubr.f32.mxu1 %v3769_v25 }
 0x1fc   : > { %vm1228_vm10 = vcmp.eq.s32.totalorder %v1194_v12, %v4369_v0  ;;  %vm1229_vm12 = vcmp.eq.s32.totalorder %v1197_v11, %v4369_v0 }
 0x1fd   : > { %v2943_v6 = vsel %vm1228_vm10, 1.0, %v3769_v25  ;;  %v2944_v29 = vsel %vm1229_vm12, 1.0, %v3769_v25 }
 0x1fe   : > { %2981 = vmatmul.mubr.msk.f32.gmra.mxu1 %vm1426_vm0, %v2940_v13 }
 0x1ff   : > { %v1200_v14 = vpop.permute.xlu1 %1199  ;;  %v1272_v15 = vpop.permute.xlu0 %1271  ;;  %1563 = vmatprep.mubr.f32.mxu1 %v3769_v25 }
 0x200   : > { %vm1318_vm6 = vcmp.eq.s32.totalorder %v1272_v15, %v4369_v0  ;;  %vm1230_vm14 = vcmp.eq.s32.totalorder %v1200_v14, %v4369_v0 }
 0x201   : > { %v2953_v20 = vsel %vm1318_vm6, 1.0, %v3769_v25  ;;  %v2945_v33 = vsel %vm1230_vm14, 1.0, %v3769_v25 }
 0x202   : > { %2982 = vmatmul.mubr.msk.f32.gmra.mxu1 %vm1426_vm0, %v2941_v16  ;;  %3200 = vmatprep.mubr.msk.f32.mxu0 %vm1426_vm0, %v2953_v20 }
 0x203   : > { %v1278_v21 = vpop.permute.xlu1 %1277  ;;  %v1275_v22 = vpop.permute.xlu0 %1274  ;;  %1569 = vmatprep.mubr.f32.mxu1 %v3769_v25 }
 0x204   : > { %vm1320_vm8 = vcmp.eq.s32.totalorder %v1278_v21, %v4369_v0  ;;  %vm1319_vm9 = vcmp.eq.s32.totalorder %v1275_v22, %v4369_v0 }
 0x205   : > { %v2955_v17 = vsel %vm1320_vm8, 1.0, %v3769_v25  ;;  %v2954_v24 = vsel %vm1319_vm9, 1.0, %v3769_v25 }
 0x206   : > { %2983 = vmatmul.mubr.msk.f32.gmra.mxu1 %vm1426_vm0, %v2942_v23  ;;  %3201 = vmatmul.mubr.msk.f32.vlgmr.msra.gmra.mxu0 %vm1426_vm0, %v2954_v24 }
 0x207   : > { %v1281_v18 = vpop.permute.xlu1 %1280  ;;  %v1203_v19 = vpop.permute.xlu0 %1202  ;;  %3203 = vmatprep.mubr.msk.f32.mxu0 %vm1426_vm0, %v2955_v17  ;;  %1575 = vmatprep.mubr.f32.mxu1 %v3769_v25 }
 0x208   : > { %vm1321_vm11 = vcmp.eq.s32.totalorder %v1281_v18, %v4369_v0  ;;  %vm1231_vm2 = vcmp.eq.s32.totalorder %v1203_v19, %v4369_v0 }
 0x209   : > { %v2956_v26 = vsel %vm1321_vm11, 1.0, %v3769_v25  ;;  %v2946_v45 = vsel %vm1231_vm2, 1.0, %v3769_v25 }
 0x20a   : > { %2984 = vmatmul.mubr.msk.f32.gmra.mxu1 %vm1426_vm0, %v2943_v6  ;;  %3204 = vmatmul.mubr.msk.f32.gmra.mxu0 %vm1426_vm0, %v2956_v26 }
 0x20b   : > { %v1206_v27 = vpop.permute.xlu1 %1205  ;;  %v1284_v28 = vpop.permute.xlu0 %1283  ;;  %1581 = vmatprep.mubr.f32.mxu1 %v3769_v25 }
 0x20c   : > { %vm1322_vm13 = vcmp.eq.s32.totalorder %v1284_v28, %v4369_v0  ;;  %vm1232_vm4 = vcmp.eq.s32.totalorder %v1206_v27, %v4369_v0 }
 0x20d   : > { %v2957_v30 = vsel %vm1322_vm13, 1.0, %v3769_v25  ;;  %v2947_v50 = vsel %vm1232_vm4, 1.0, %v3769_v25 }
 0x20e   : > { %2985 = vmatmul.mubr.msk.f32.gmra.mxu1 %vm1426_vm0, %v2944_v29  ;;  %3206 = vmatprep.mubr.msk.f32.mxu0 %vm1426_vm0, %v2957_v30 }
 0x20f   : > { %v1290_v31 = vpop.permute.xlu1 %1289  ;;  %v1287_v32 = vpop.permute.xlu0 %1286  ;;  %1587 = vmatprep.mubr.f32.mxu1 %v3769_v25 }
 0x210   : > { %vm1324_vm15 = vcmp.eq.s32.totalorder %v1290_v31, %v4369_v0  ;;  %vm1323_vm1 = vcmp.eq.s32.totalorder %v1287_v32, %v4369_v0 }
 0x211   : > { %v2959_v34 = vsel %vm1324_vm15, 1.0, %v3769_v25  ;;  %v2958_v35 = vsel %vm1323_vm1, 1.0, %v3769_v25 }
 0x212   : > { %2986 = vmatmul.mubr.msk.f32.gmra.mxu1 %vm1426_vm0, %v2945_v33  ;;  %3207 = vmatmul.mubr.msk.f32.gmra.mxu0 %vm1426_vm0, %v2958_v35 }
 0x213   : > { %v1293_v40 = vpop.permute.xlu1 %1292  ;;  %v1209_v44 = vpop.permute.xlu0 %1208  ;;  %3209 = vmatprep.mubr.msk.f32.mxu0 %vm1426_vm0, %v2959_v34  ;;  %1593 = vmatprep.mubr.f32.mxu1 %v3769_v25 }
 0x214   : > { %vm1325_vm3 = vcmp.eq.s32.totalorder %v1293_v40, %v4369_v0  ;;  %vm1233_vm6 = vcmp.eq.s32.totalorder %v1209_v44, %v4369_v0  ;;  %v4511_v44 = vld [vmem:[%s5045_s8] ss:$0 sm:$0xff] }
 0x215   : > { %v2960_v47 = vsel %vm1325_vm3, 1.0, %v3769_v25  ;;  %v2948_v54 = vsel %vm1233_vm6, 1.0, %v3769_v25 }
 0x216   : > { %2987 = vmatmul.mubr.msk.f32.gmra.mxu1 %vm1426_vm0, %v2946_v45  ;;  %3210 = vmatmul.mubr.msk.f32.gmra.mxu0 %vm1426_vm0, %v2960_v47 }
 0x217   : > { %v1212_v48 = vpop.permute.xlu1 %1211  ;;  %v1296_v49 = vpop.permute.xlu0 %1295  ;;  %1599 = vmatprep.mubr.f32.mxu1 %v3769_v25 }
 0x218   : > { %vm1326_vm5 = vcmp.eq.s32.totalorder %v1296_v49, %v4369_v0  ;;  %vm1234_vm9 = vcmp.eq.s32.totalorder %v1212_v48, %v4369_v0 }
 0x219   : > { %v2961_v51 = vsel %vm1326_vm5, 1.0, %v3769_v25  ;;  %v2949_v59 = vsel %vm1234_vm9, 1.0, %v3769_v25 }
 0x21a   : > { %2988 = vmatmul.mubr.msk.f32.gmra.mxu1 %vm1426_vm0, %v2947_v50  ;;  %3212 = vmatprep.mubr.msk.f32.mxu0 %vm1426_vm0, %v2961_v51 }
 0x21b   : > { %v1302_v52 = vpop.permute.xlu1 %1301  ;;  %v1299_v53 = vpop.permute.xlu0 %1298  ;;  %1605 = vmatprep.mubr.f32.mxu1 %v3769_v25 }
 0x21c   : > { %vm1328_vm7 = vcmp.eq.s32.totalorder %v1302_v52, %v4369_v0  ;;  %vm1327_vm8 = vcmp.eq.s32.totalorder %v1299_v53, %v4369_v0 }
 0x21d   : > { %v2963_v55 = vsel %vm1328_vm7, 1.0, %v3769_v25  ;;  %v2962_v56 = vsel %vm1327_vm8, 1.0, %v3769_v25 }
 0x21e   : > { %2989 = vmatmul.mubr.msk.f32.gmra.mxu1 %vm1426_vm0, %v2948_v54  ;;  %3213 = vmatmul.mubr.msk.f32.gmra.mxu0 %vm1426_vm0, %v2962_v56 }
 0x21f   : > { %v1305_v57 = vpop.permute.xlu1 %1304  ;;  %v1215_v58 = vpop.permute.xlu0 %1214  ;;  %3215 = vmatprep.mubr.msk.f32.mxu0 %vm1426_vm0, %v2963_v55  ;;  %1611 = vmatprep.mubr.f32.mxu1 %v3769_v25 }
 0x220   : > { %vm1329_vm10 = vcmp.eq.s32.totalorder %v1305_v57, %v4369_v0  ;;  %vm1235_vm11 = vcmp.eq.s32.totalorder %v1215_v58, %v4369_v0 }
 0x221   : > { %v2964_v60 = vsel %vm1329_vm10, 1.0, %v3769_v25  ;;  %v2950_v1 = vsel %vm1235_vm11, 1.0, %v3769_v25 }
 0x222   : > { %2990 = vmatmul.mubr.msk.f32.gmra.mxu1 %vm1426_vm0, %v2949_v59  ;;  %3216 = vmatmul.mubr.msk.f32.gmra.mxu0 %vm1426_vm0, %v2964_v60 }
 0x223   : > { %v1218_v61 = vpop.permute.xlu1 %1217  ;;  %v1308_v62 = vpop.permute.xlu0 %1307  ;;  %1617 = vmatprep.mubr.f32.mxu1 %v3769_v25 }
 0x224   : > { %vm1330_vm12 = vcmp.eq.s32.totalorder %v1308_v62, %v4369_v0  ;;  %vm1236_vm13 = vcmp.eq.s32.totalorder %v1218_v61, %v4369_v0 }
 0x225   : > { %v2965_v2 = vsel %vm1330_vm12, 1.0, %v3769_v25  ;;  %v2951_v5 = vsel %vm1236_vm13, 1.0, %v3769_v25 }
 0x226   : > { %2991 = vmatmul.mubr.msk.f32.gmra.mxu1 %vm1426_vm0, %v2950_v1  ;;  %3218 = vmatprep.mubr.msk.f32.mxu0 %vm1426_vm0, %v2965_v2 }
 0x227   : > { %v1314_v3 = vpop.permute.xlu1 %1313  ;;  %v1311_v4 = vpop.permute.xlu0 %1310  ;;  %1623 = vmatprep.mubr.f32.mxu1 %v3769_v25 }
 0x228   : > { %vm1332_vm14 = vcmp.eq.s32.totalorder %v1314_v3, %v4369_v0  ;;  %vm1331_vm15 = vcmp.eq.s32.totalorder %v1311_v4, %v4369_v0 }
 0x229   : > { %v2967_v7 = vsel %vm1332_vm14, 1.0, %v3769_v25  ;;  %v2966_v8 = vsel %vm1331_vm15, 1.0, %v3769_v25 }
 0x22a   : > { %2992 = vmatmul.mubr.msk.f32.gmra.mxu1 %vm1426_vm0, %v2951_v5  ;;  %3219 = vmatmul.mubr.msk.f32.gmra.mxu0 %vm1426_vm0, %v2966_v8 }
 0x22b   : > { %v1317_v9 = vpop.permute.xlu1 %1316  ;;  %v1221_v10 = vpop.permute.xlu0 %1220  ;;  %3221 = vmatprep.mubr.msk.f32.mxu0 %vm1426_vm0, %v2967_v7  ;;  %1629 = vmatprep.mubr.f32.mxu1 %v3769_v25 }
 0x22c   : > { %vm1333_vm1 = vcmp.eq.s32.totalorder %v1317_v9, %v4369_v0  ;;  %vm1237_vm2 = vcmp.eq.s32.totalorder %v1221_v10, %v4369_v0 }
 0x22d   : > { %v2968_v11 = vsel %vm1333_vm1, 1.0, %v3769_v25  ;;  %v2952_v12 = vsel %vm1237_vm2, 1.0, %v3769_v25 }
 0x22e   : > { %2993 = vmatmul.mubr.msk.f32.gmra.mxu1 %vm1426_vm0, %v2952_v12  ;;  %3222 = vmatmul.mubr.msk.f32.gmra.mxu0 %vm1426_vm0, %v2968_v11 }
 0x22f   : > { %2065 = vmatprep.mubr.f32.mxu1 %v3769_v25  ;;  %2053 = vmatprep.mubr.f32.mxu0 %v3769_v25 }
 0x25f   : > { %v3162_v13 = vpop.f32.mrf.mxu0 }
 0x260   : > { %v1057_v49 = vadd.f32 %v3162_v13, %v4511_v44 }
 0x261   : > { %v1051_v14 = vpop.f32.mrf.mxu0 }
 0x262   : > { %v1052_v53 = vadd.f32 %v4511_v44, %v1051_v14 }
 0x263   : > { %v3165_v15 = vpop.f32.mrf.mxu0 }
 0x264   : > { %v1067_v5 = vadd.f32 %v3165_v15, %v4511_v44 }
 0x265   : > { %v1061_v16 = vpop.f32.mrf.mxu0 }
 0x266   : > { %v1062_v61 = vadd.f32 %v4511_v44, %v1061_v16 }
 0x267   : > { %v3168_v20 = vpop.f32.mrf.mxu0 }
 0x268   : > { %v1077_v13 = vadd.f32 %v3168_v20, %v4511_v44 }
 0x269   : > { %v1071_v21 = vpop.f32.mrf.mxu0 }
 0x26a   : > { %v1072_v14 = vadd.f32 %v4511_v44, %v1071_v21 }
 0x26b   : > { %v3171_v22 = vpop.f32.mrf.mxu0 }
 0x26d   : > { %v1081_v0 = vpop.f32.mrf.mxu0 }
 0x271   : > { %v4484_v23 = vpop.f32.mrf.mxu0 }
 0x273   : > { %v4486_v17 = vpop.f32.mrf.mxu0 }
 0x275   : > { %v4488_v24 = vpop.f32.mrf.mxu0 }
 0x277   : > { %v4490_v19 = vpop.f32.mrf.mxu0 }
 0x279   : > { %v4494_v27 = vpop.f32.mrf.mxu0 }
 0x27b   : > { %v4498_v30 = vpop.f32.mrf.mxu0 }
 0x27d   : > { %v4502_v33 = vpop.f32.mrf.mxu0 }
 0x27f   : > { %v4506_v40 = vpop.f32.mrf.mxu0 }
 0x2b2   : > { %v1541_v18 = vpop.f32.mrf.mxu1 }
 0x2b4   : > { %v4492_v6 = vpop.f32.mrf.mxu1 }
 0x2b6   : > { %v1547_v26 = vpop.f32.mrf.mxu1 }
 0x2b8   : > { %v4496_v28 = vpop.f32.mrf.mxu1 }
 0x2ba   : > { %v1553_v29 = vpop.f32.mrf.mxu1 }
 0x2bc   : > { %v4500_v31 = vpop.f32.mrf.mxu1 }
 0x2be   : > { %v1559_v32 = vpop.f32.mrf.mxu1 }
 0x2c0   : > { %v4504_v34 = vpop.f32.mrf.mxu1 }
 0x2c2   : > { %v1565_v35 = vpop.f32.mrf.mxu1 }
 0x2c4   : > { %v4513_v45 = vpop.f32.mrf.mxu1 }
 0x2c6   : > { %v1571_v47 = vpop.f32.mrf.mxu1  ;;  %v3202_v48 = vpop.f32.mrf.mxu0 }
 0x2c7   : > { %v1830_v50 = vadd.f32 %v3202_v48, %v1547_v26 }
 0x2c8   : > { %v4516_v51 = vpop.f32.mrf.mxu1  ;;  %v1750_v52 = vpop.f32.mrf.mxu0 }
 0x2c9   : > { %v4519_v54 = vadd.f32 %v1830_v50, %v1057_v49  ;;  %v1829_v55 = vadd.f32 %v1750_v52, %v1541_v18  ;;  %v1087_v49 = vadd.f32 %v3171_v22, %v4511_v44  ;;  %v1082_v50 = vadd.f32 %v4511_v44, %v1081_v0 }
 0x2ca   : > { %v1577_v56 = vpop.f32.mrf.mxu1  ;;  %v3205_v57 = vpop.f32.mrf.mxu0  ;;  %v1097_v0 = vadd.f32 %v4484_v23, %v4511_v44 }
 0x2cb   : > { %v4521_v58 = vadd.f32 %v1829_v55, %v1052_v53  ;;  %2138 = vadd.xlane.f32.xlu1 %v4519_v54  ;;  %v1832_v2 = vadd.f32 %v3205_v57, %v1559_v32 }
 0x2cc   : > { %v4524_v59 = vpop.f32.mrf.mxu1  ;;  %v1760_v60 = vpop.f32.mrf.mxu0 }
 0x2cd   : > { %v1831_v62 = vadd.f32 %v1760_v60, %v1553_v29  ;;  %2136 = vadd.xlane.f32.xlu0 %v4521_v58  ;;  %v4534_v9 = vadd.f32 %v1832_v2, %v1067_v5 }
 0x2ce   : > { %v1583_v1 = vpop.f32.mrf.mxu1 }
 0x2cf   : > { %v4528_v3 = vadd.f32 %v1831_v62, %v1062_v61  ;;  %v1092_v61 = vadd.f32 %v4511_v44, %v4486_v17 }
 0x2d0   : > { %v4530_v4 = vpop.f32.mrf.mxu1 }
 0x2d1   : > { %2140 = vadd.xlane.f32.xlu0 %v4528_v3 }
 0x2d2   : > { %v1589_v7 = vpop.f32.mrf.mxu1  ;;  %v3208_v8 = vpop.f32.mrf.mxu0 }
 0x2d3   : > { %v1834_v10 = vadd.f32 %v3208_v8, %v1571_v47  ;;  %v1107_v8 = vadd.f32 %v4488_v24, %v4511_v44 }
 0x2d4   : > { %v4536_v11 = vpop.f32.mrf.mxu1  ;;  %v1770_v12 = vpop.f32.mrf.mxu0 }
 0x2d5   : > { %v1833_v16 = vadd.f32 %v1770_v12, %v1565_v35  ;;  %2142 = vadd.xlane.f32.xlu0 %v4534_v9  ;;  %v4541_v15 = vadd.f32 %v1834_v10, %v1077_v13 }
 0x2d6   : > { %v1595_v18 = vpop.f32.mrf.mxu1  ;;  %v3211_v26 = vpop.f32.mrf.mxu0 }
 0x2d7   : > { %v4543_v29 = vadd.f32 %v1833_v16, %v1072_v14  ;;  %v1836_v32 = vadd.f32 %v3211_v26, %v1583_v1  ;;  %v1102_v14 = vadd.f32 %v4511_v44, %v4490_v19 }
 0x2d8   : > { %v4545_v48 = vpop.f32.mrf.mxu1  ;;  %v1780_v47 = vpop.f32.mrf.mxu0 }
 0x2d9   : > { %v1835_v20 = vadd.f32 %v1780_v47, %v1577_v56  ;;  %2144 = vadd.xlane.f32.xlu1 %v4543_v29  ;;  %2146 = vadd.xlane.f32.xlu0 %v4541_v15  ;;  %v4551_v35 = vadd.f32 %v1836_v32, %v1087_v49  ;;  %v1117_v47 = vadd.f32 %v4494_v27, %v4511_v44 }
 0x2da   : > { %v1601_v21 = vpop.f32.mrf.mxu1 }
 0x2db   : > { %v4553_v52 = vadd.f32 %v1835_v20, %v1082_v50  ;;  %v1112_v20 = vadd.f32 %v4511_v44, %v4498_v30 }
 0x2dc   : > { %v4555_v53 = vpop.f32.mrf.mxu1 }
 0x2dd   : > { %2148 = vadd.xlane.f32.xlu1 %v4553_v52  ;;  %2150 = vadd.xlane.f32.xlu0 %v4551_v35 }
 0x2de   : > { %v1607_v55 = vpop.f32.mrf.mxu1  ;;  %v3214_v22 = vpop.f32.mrf.mxu0 }
 0x2df   : > { %v1838_v56 = vadd.f32 %v3214_v22, %v1595_v18 }
 0x2e0   : > { %v4561_v57 = vpop.f32.mrf.mxu1  ;;  %v1790_v60 = vpop.f32.mrf.mxu0 }
 0x2e1   : > { %v4565_v62 = vadd.f32 %v1838_v56, %v1097_v0  ;;  %v1837_v1 = vadd.f32 %v1790_v60, %v1589_v7  ;;  %v1127_v56 = vadd.f32 %v4502_v33, %v4511_v44 }
 0x2e2   : > { %v1613_v2 = vpop.f32.mrf.mxu1  ;;  %v3217_v5 = vpop.f32.mrf.mxu0 }
 0x2e3   : > { %v4569_v10 = vadd.f32 %v1837_v1, %v1092_v61  ;;  %v1840_v12 = vadd.f32 %v3217_v5, %v1607_v55  ;;  %2154 = vadd.xlane.f32.xlu0 %v4565_v62  ;;  %v1122_v5 = vadd.f32 %v4511_v44, %v4506_v40  ;;  %v3019_v44 = vmul.f32 -1.442695, %v4565_v62 }
 0x2e4   : > { %v4572_v23 = vpop.f32.mrf.mxu1  ;;  %v1800_v13 = vpop.f32.mrf.mxu0 }
 0x2e5   : > { %v4576_v17 = vadd.f32 %v1840_v12, %v1107_v8  ;;  %v1839_v16 = vadd.f32 %v1800_v13, %v1601_v21  ;;  %2152 = vadd.xlane.f32.xlu1 %v4569_v10 }
 0x2e6   : > { %v1619_v7 = vpop.f32.mrf.mxu1 }
 0x2e7   : > { %v4579_v18 = vadd.f32 %v1839_v16, %v1102_v14  ;;  %2158 = vadd.xlane.f32.xlu0 %v4576_v17  ;;  %v3021_v33 = vmul.f32 -1.442695, %v4576_v17  ;;  %v3018_v16 = vmul.f32 -1.442695, %v4569_v10 }
 0x2e8   : > { %v4582_v24 = vpop.f32.mrf.mxu1 }
 0x2e9   : > { %2156 = vadd.xlane.f32.xlu1 %v4579_v18  ;;  %v3020_v40 = vmul.f32 -1.442695, %v4579_v18 }
 0x2ea   : > { %v1625_v26 = vpop.f32.mrf.mxu1  ;;  %v3220_v32 = vpop.f32.mrf.mxu0 }
 0x2eb   : > { %v1842_v19 = vadd.f32 %v3220_v32, %v1619_v7  ;;  %v3017_v7 = vmul.f32 -1.442695, %v4551_v35  ;;  %v3013_v32 = vmul.f32 -1.442695, %v4534_v9 }
 0x2ec   : > { %v4587_v49 = vpop.f32.mrf.mxu1  ;;  %v1810_v50 = vpop.f32.mrf.mxu0 }
 0x2ed   : > { %v4591_v21 = vadd.f32 %v1842_v19, %v1117_v47  ;;  %v1841_v55 = vadd.f32 %v1810_v50, %v1613_v2  ;;  %v3015_v19 = vmul.f32 -1.442695, %v4541_v15  ;;  %v3014_v50 = vmul.f32 -1.442695, %v4543_v29 }
 0x2ee   : > { %v1631_v22 = vpop.f32.mrf.mxu1  ;;  %v3223_v0 = vpop.f32.mrf.mxu0 }
 0x2ef   : > { %v3023_v60 = vmul.f32 -1.442695, %v4591_v21  ;;  %v4596_v61 = vadd.f32 %v1841_v55, %v1112_v20  ;;  %v1844_v27 = vadd.f32 %v3223_v0, %v1631_v22  ;;  %2162 = vadd.xlane.f32.xlu0 %v4591_v21 }
 0x2f0   : > { %v1820_v1 = vpop.f32.mrf.mxu0 }
 0x2f1   : > { %v3022_v30 = vmul.f32 -1.442695, %v4596_v61  ;;  %v4602_v8 = vadd.f32 %v1844_v27, %v1127_v56  ;;  %v1843_v2 = vadd.f32 %v1820_v1, %v1625_v26  ;;  %2160 = vadd.xlane.f32.xlu1 %v4596_v61  ;;  %3340 = vpow2.f32 %v3023_v60 }
 0x2f2   : > { %v3016_v26 = vmul.f32 -1.442695, %v4553_v52  ;;  %v3012_v27 = vmul.f32 -1.442695, %v4528_v3 }
 0x2f3   : > { %v3025_v12 = vmul.f32 -1.442695, %v4602_v8  ;;  %v4607_v13 = vadd.f32 %v1843_v2, %v1122_v5  ;;  %2166 = vadd.xlane.f32.xlu0 %v4602_v8  ;;  %3342 = vpow2.f32 %v3022_v30  ;;  %v3011_v2 = vmul.f32 -1.442695, %v4519_v54 }
 0x2f5   : > { %v3024_v14 = vmul.f32 -1.442695, %v4607_v13  ;;  %2164 = vadd.xlane.f32.xlu1 %v4607_v13  ;;  %3344 = vpow2.f32 %v3025_v12 }
 0x2f6   : > { %3346 = vpow2.f32 %v3021_v33 }
 0x2f7   : > { %3348 = vpow2.f32 %v3024_v14  ;;  %v3010_v14 = vmul.f32 -1.442695, %v4521_v58 }
 0x2f8   : > { %3350 = vpow2.f32 %v3020_v40 }
 0x2f9   : > { %3352 = vpow2.f32 %v3019_v44 }
 0x2fa   : > { %3354 = vpow2.f32 %v3018_v16 }
 0x2fb   : > { %3356 = vpow2.f32 %v3017_v7 }
 0x2fc   : > { %3358 = vpow2.f32 %v3016_v26 }
 0x2fd   : > { %3360 = vpow2.f32 %v3013_v32 }
 0x2fe   : > { %v3341_v47 = vpop.eup %3340  ;;  %3362 = vpow2.f32 %v3015_v19 }
 0x2ff   : > { %v1922_v22 = vadd.f32 1.0, %v3341_v47  ;;  %3364 = vpow2.f32 %v3014_v50 }
 0x300   : > { %v3343_v20 = vpop.eup %3342 }
 0x301   : > { %v1921_v1 = vadd.f32 1.0, %v3343_v20 }
 0x302   : > { %v3345_v55 = vpop.eup %3344 }
 0x303   : > { %v3347_v0 = vpop.eup %3346  ;;  %v1924_v56 = vadd.f32 1.0, %v3345_v55 }
 0x304   : > { %v3349_v60 = vpop.eup %3348  ;;  %v1920_v33 = vadd.f32 1.0, %v3347_v0  ;;  %v1633_v0 = vpop.f32.mrf.mxu1 }
 0x305   : > { %3366 = vrcp.f32 %v1924_v56  ;;  %v1923_v5 = vadd.f32 1.0, %v3349_v60  ;;  %v3351_v30 = vpop.eup %3350 }
 0x306   : > { %3368 = vrcp.f32 %v1922_v22  ;;  %v3353_v12 = vpop.eup %3352  ;;  %v1919_v40 = vadd.f32 1.0, %v3351_v30 }
 0x307   : > { %3370 = vrcp.f32 %v1923_v5  ;;  %v3355_v44 = vpop.eup %3354  ;;  %v1918_v16 = vadd.f32 1.0, %v3353_v12 }
 0x308   : > { %3372 = vpow2.f32 %v3012_v27  ;;  %v3357_v7 = vpop.eup %3356  ;;  %v1917_v26 = vadd.f32 1.0, %v3355_v44 }
 0x309   : > { %3374 = vrcp.f32 %v1921_v1  ;;  %v3359_v32 = vpop.eup %3358  ;;  %v1916_v19 = vadd.f32 1.0, %v3357_v7 }
 0x30a   : > { %3376 = vpow2.f32 %v3011_v2  ;;  %v3361_v47 = vpop.eup %3360  ;;  %v1915_v55 = vadd.f32 1.0, %v3359_v32 }
 0x30b   : > { %3378 = vrcp.f32 %v1920_v33  ;;  %v3363_v50 = vpop.eup %3362 }
 0x30c   : > { %3380 = vpow2.f32 %v3010_v14  ;;  %v3365_v20 = vpop.eup %3364  ;;  %v1914_v60 = vadd.f32 1.0, %v3363_v50  ;;  %v1912_v14 = vadd.f32 1.0, %v3361_v47 }
 0x30d   : > { %3382 = vrcp.f32 %v1919_v40  ;;  %v1913_v30 = vadd.f32 1.0, %v3365_v20 }
 0x30e   : > { %3384 = vrcp.f32 %v1918_v16 }
 0x30f   : > { %3386 = vrcp.f32 %v1917_v26 }
 0x310   : > { %3388 = vrcp.f32 %v1916_v19 }
 0x311   : > { %3390 = vrcp.f32 %v1915_v55 }
 0x312   : > { %v3367_v22 = vpop.eup %3366  ;;  %3392 = vrcp.f32 %v1914_v60 }
 0x313   : > { %v3369_v56 = vpop.eup %3368  ;;  %v1972_v27 = vmul.f32 %v3367_v22, %v1633_v0  ;;  %1989 = vmatprep.subr.mxu0 %v3367_v22  ;;  %3224 = vmatprep.subr.mxu1 %v3367_v22  ;;  %3394 = vrcp.f32 %v1913_v30 }
 0x314   : > { %v3371_v1 = vpop.eup %3370  ;;  %v1970_v40 = vmul.f32 %v3369_v56, %v4582_v24  ;;  %3396 = vrcp.f32 %v1912_v14 }
 0x315   : > { %v3373_v5 = vpop.eup %3372  ;;  %1990 = vmatpush1.msra.mxu0 %v1972_v27  ;;  %3240 = vmatpush1.msra.mxu1 %v1972_v27  ;;  %v1971_v2 = vmul.f32 %v3371_v1, %v4587_v49  ;;  %v1166_v27 = vshrl.u32 %v1163_v63, 7 }
 0x316   : > { %v3375_v33 = vpop.eup %3374  ;;  %1991 = vmatprep.subr.mxu0 %v3371_v1  ;;  %3225 = vmatprep.subr.mxu1 %v3371_v1  ;;  %v1911_v7 = vadd.f32 1.0, %v3373_v5 }
 0x317   : > { %v3377_v12 = vpop.eup %3376  ;;  %1992 = vmatpush1.msra.mxu0 %v1971_v2  ;;  %3241 = vmatpush1.msra.mxu1 %v1971_v2  ;;  %v1969_v49 = vmul.f32 %v3375_v33, %v4572_v23  ;;  %v1172_v14 = vadd.s32 48, %v1166_v27 }
 0x318   : > { %v3379_v44 = vpop.eup %3378  ;;  %1993 = vmatprep.subr.mxu0 %v3369_v56  ;;  %3226 = vmatprep.subr.mxu1 %v3369_v56  ;;  %v1910_v32 = vadd.f32 1.0, %v3377_v12  ;;  %3398 = vrcp.f32 %v1911_v7  ;;  %v3770_v12 = vmov 1.0  }
 0x319   : > { %v3381_v16 = vpop.eup %3380  ;;  %1994 = vmatpush1.msra.mxu0 %v1970_v40  ;;  %3242 = vmatpush1.msra.mxu1 %v1970_v40  ;;  %v1968_v47 = vmul.f32 %v3379_v44, %v4561_v57  ;;  %v1173_v40 = vadd.s32 56, %v1166_v27 }
 0x31a   : > { %v3383_v26 = vpop.eup %3382  ;;  %1995 = vmatprep.subr.mxu0 %v3375_v33  ;;  %3227 = vmatprep.subr.mxu1 %v3375_v33  ;;  %v1909_v19 = vadd.f32 1.0, %v3381_v16  ;;  %3400 = vrcp.f32 %v1910_v32  ;;  %v1169_v33 = vadd.s32 24, %v1166_v27 }
 0x31b   : > { %1996 = vmatpush1.msra.mxu0 %v1969_v49  ;;  %3243 = vmatpush1.msra.mxu1 %v1969_v49  ;;  %v3385_v24 = vpop.eup %3384  ;;  %v1967_v50 = vmul.f32 %v3383_v26, %v4555_v53 }
 0x31c   : > { %1997 = vmatprep.subr.mxu0 %v3379_v44  ;;  %3228 = vmatprep.subr.mxu1 %v3379_v44  ;;  %v3387_v20 = vpop.eup %3386  ;;  %v1966_v23 = vmul.f32 %v3385_v24, %v4545_v48  ;;  %3402 = vrcp.f32 %v1909_v19 }
 0x31d   : > { %1998 = vmatpush1.msra.mxu0 %v1968_v47  ;;  %3244 = vmatpush1.msra.mxu1 %v1968_v47  ;;  %v3389_v55 = vpop.eup %3388  ;;  %v1965_v57 = vmul.f32 %v3387_v20, %v4536_v11 }
 0x31e   : > { %1999 = vmatprep.subr.mxu0 %v3383_v26  ;;  %3229 = vmatprep.subr.mxu1 %v3383_v26  ;;  %v3391_v22 = vpop.eup %3390  ;;  %v1964_v53 = vmul.f32 %v3389_v55, %v4530_v4 }
 0x31f   : > { %2000 = vmatpush1.msra.mxu0 %v1967_v50  ;;  %3245 = vmatpush1.msra.mxu1 %v1967_v50  ;;  %v3393_v0 = vpop.eup %3392  ;;  %v1963_v48 = vmul.f32 %v3391_v22, %v4524_v59 }
 0x320   : > { %2001 = vmatprep.subr.mxu0 %v3385_v24  ;;  %3230 = vmatprep.subr.mxu1 %v3385_v24  ;;  %v3395_v56 = vpop.eup %3394  ;;  %v1962_v11 = vmul.f32 %v3393_v0, %v4516_v51  ;;  %v1168_v51 = vadd.s32 16, %v1166_v27 }
 0x321   : > { %2002 = vmatpush1.msra.mxu0 %v1966_v23  ;;  %3246 = vmatpush1.msra.mxu1 %v1966_v23  ;;  %v3397_v60 = vpop.eup %3396  ;;  %v1961_v4 = vmul.f32 %v3395_v56, %v4513_v45  ;;  %v2969_v45 = vld [vmem:[%s572_s22] ss:$0 sm:$0xff] }
 0x322   : > { %2003 = vmatprep.subr.mxu0 %v3387_v20  ;;  %3231 = vmatprep.subr.mxu1 %v3387_v20  ;;  %v1960_v59 = vmul.f32 %v3397_v60, %v4504_v34  ;;  %vm1372_vm0 = vcmp.eq.s32.totalorder %v2969_v45, %v1168_v51  ;;  %vm1370_vm3 = vcmp.eq.s32.totalorder %v2969_v45, %v1166_v27 }
 0x323   : > { %2004 = vmatpush1.msra.mxu0 %v1965_v57  ;;  %3247 = vmatpush1.msra.mxu1 %v1965_v57  ;;  %vm1373_vm4 = vcmp.eq.s32.totalorder %v2969_v45, %v1169_v33  ;;  %vm1376_vm8 = vcmp.eq.s32.totalorder %v2969_v45, %v1172_v14  ;;  %vm1377_vm9 = vcmp.eq.s32.totalorder %v2969_v45, %v1173_v40 }
 0x324   : > { %2005 = vmatprep.subr.mxu0 %v3389_v55  ;;  %3232 = vmatprep.subr.mxu1 %v3389_v55 }
 0x325   : > { %2006 = vmatpush1.msra.mxu0 %v1964_v53  ;;  %3248 = vmatpush1.msra.mxu1 %v1964_v53  ;;  %v3399_v1 = vpop.eup %3398 }
 0x326   : > { %2007 = vmatprep.subr.mxu0 %v3391_v22  ;;  %3233 = vmatprep.subr.mxu1 %v3391_v22  ;;  %v1959_v63 = vmul.f32 %v3399_v1, %v4500_v31  ;;  %v1167_v31 = vadd.s32 8, %v1166_v27 }
 0x327   : > { %2008 = vmatpush1.msra.mxu0 %v1963_v48  ;;  %3249 = vmatpush1.msra.mxu1 %v1963_v48  ;;  %v3401_v5 = vpop.eup %3400 }
 0x328   : > { %2009 = vmatprep.subr.mxu0 %v3393_v0  ;;  %3234 = vmatprep.subr.mxu1 %v3393_v0  ;;  %v1958_v34 = vmul.f32 %v3401_v5, %v4496_v28  ;;  %v1170_v28 = vadd.s32 32, %v1166_v27  ;;  %vm1371_vm5 = vcmp.eq.s32.totalorder %v2969_v45, %v1167_v31 }
 0x329   : > { %2010 = vmatpush1.msra.mxu0 %v1962_v11  ;;  %3250 = vmatpush1.msra.mxu1 %v1962_v11  ;;  %v3403_v30 = vpop.eup %3402 }
 0x32a   : > { %2011 = vmatprep.subr.mxu0 %v3395_v56  ;;  %3235 = vmatprep.subr.mxu1 %v3395_v56  ;;  %v1957_v2 = vmul.f32 %v3403_v30, %v4492_v6  ;;  %vm1374_vm6 = vcmp.eq.s32.totalorder %v2969_v45, %v1170_v28  ;;  %v1171_v6 = vadd.s32 40, %v1166_v27 }
 0x32b   : > { %2012 = vmatpush1.msra.mxu0 %v1961_v4  ;;  %3251 = vmatpush1.msra.mxu1 %v1961_v4 }
 0x32c   : > { %2013 = vmatprep.subr.mxu0 %v3397_v60  ;;  %3236 = vmatprep.subr.mxu1 %v3397_v60  ;;  %vm1375_vm7 = vcmp.eq.s32.totalorder %v2969_v45, %v1171_v6 }
 0x32d   : > { %2014 = vmatpush1.msra.mxu0 %v1960_v59  ;;  %3252 = vmatpush1.msra.mxu1 %v1960_v59 }
 0x32e   : > { %2015 = vmatprep.subr.mxu0 %v3399_v1  ;;  %3237 = vmatprep.subr.mxu1 %v3399_v1 }
 0x32f   : > { %2016 = vmatpush1.msra.mxu0 %v1959_v63  ;;  %3253 = vmatpush1.msra.mxu1 %v1959_v63 }
 0x330   : > { %2017 = vmatprep.subr.mxu0 %v3401_v5  ;;  %3238 = vmatprep.subr.mxu1 %v3401_v5 }
 0x331   : > { %2018 = vmatpush1.msra.mxu0 %v1958_v34  ;;  %3254 = vmatpush1.msra.mxu1 %v1958_v34 }
 0x332   : > { %2019 = vmatprep.subr.mxu0 %v3403_v30  ;;  %3239 = vmatprep.subr.mxu1 %v3403_v30 }
 0x333   : > { %2020 = vmatpush1.msra.mxu0 %v1957_v2  ;;  %3255 = vmatpush1.msra.mxu1 %v1957_v2 }
 0x334   : > { %3028 = vmatmul.mubr.msk.f32.vlgmr.msra.gmra.mxu1 %vm1372_vm0, %v3770_v12  ;;  %3026 = vmatmul.mubr.msk.f32.vlgmr.msra.gmra.mxu0 %vm1370_vm3, %v3770_v12 }
 0x335   : > { %2071 = vmatprep.mubr.f32.mxu1 %v3769_v25  ;;  %2059 = vmatprep.mubr.f32.mxu0 %v3769_v25 }
 0x338   : > { %3029 = vmatmul.mubr.msk.f32.gmra.mxu1 %vm1373_vm4, %v3770_v12  ;;  %3027 = vmatmul.mubr.msk.f32.gmra.mxu0 %vm1371_vm5, %v3770_v12 }
 0x339   : > { %2077 = vmatprep.mubr.f32.mxu1 %v3769_v25 }
 0x33c   : > { %3030 = vmatmul.mubr.msk.f32.gmra.mxu1 %vm1374_vm6, %v3770_v12 }
 0x33d   : > { %2083 = vmatprep.mubr.f32.mxu1 %v3769_v25 }
 0x340   : > { %3031 = vmatmul.mubr.msk.f32.gmra.mxu1 %vm1375_vm7, %v3770_v12 }
 0x341   : > { %2089 = vmatprep.mubr.f32.mxu1 %v3769_v25 }
 0x344   : > { %3032 = vmatmul.mubr.msk.f32.gmra.mxu1 %vm1376_vm8, %v3770_v12 }
 0x345   : > { %2095 = vmatprep.mubr.f32.mxu1 %v3769_v25 }
 0x348   : > { %3033 = vmatmul.mubr.msk.f32.gmra.mxu1 %vm1377_vm9, %v3770_v12 }
 0x354   : > { %v2139_v44 = vpop.xlane.xlu1 %2138 }
 0x355   : > { %v2170_v16 = vmul.f32 0.0078125, %v2139_v44 }
 0x356   : > { %v2137_v7 = vpop.xlane.xlu0 %2136 }
 0x357   : > { %v4651_v49 = vsub.f32 %v4519_v54, %v2170_v16  ;;  %v2169_v26 = vmul.f32 0.0078125, %v2137_v7 }
 0x359   : > { %v4654_v32 = vsub.f32 %v4521_v58, %v2169_v26  ;;  %v2202_v47 = vmul.f32 %v4651_v49, %v4651_v49 }
 0x35a   : > { %v2141_v24 = vpop.xlane.xlu0 %2140 }
 0x35b   : > { %v2171_v19 = vmul.f32 0.0078125, %v2141_v24  ;;  %2219 = vadd.xlane.f32.xlu0 %v2202_v47  ;;  %v2201_v25 = vmul.f32 %v4654_v32, %v4654_v32 }
 0x35d   : > { %v4661_v50 = vsub.f32 %v4528_v3, %v2171_v19  ;;  %2217 = vadd.xlane.f32.xlu1 %v2201_v25 }
 0x35e   : > { %v2143_v20 = vpop.xlane.xlu0 %2142 }
 0x35f   : > { %v2172_v54 = vmul.f32 0.0078125, %v2143_v20  ;;  %v2203_v23 = vmul.f32 %v4661_v50, %v4661_v50 }
 0x361   : > { %v4666_v58 = vsub.f32 %v4534_v9, %v2172_v54  ;;  %2221 = vadd.xlane.f32.xlu1 %v2203_v23 }
 0x362   : > { %v2145_v55 = vpop.xlane.xlu1 %2144  ;;  %v2147_v57 = vpop.xlane.xlu0 %2146 }
 0x363   : > { %v2173_v22 = vmul.f32 0.0078125, %v2145_v55  ;;  %v2174_v53 = vmul.f32 0.0078125, %v2147_v57  ;;  %v2204_v0 = vmul.f32 %v4666_v58, %v4666_v58 }
 0x365   : > { %v4671_v3 = vsub.f32 %v4543_v29, %v2173_v22  ;;  %v4674_v48 = vsub.f32 %v4541_v15, %v2174_v53  ;;  %2223 = vadd.xlane.f32.xlu0 %v2204_v0 }
 0x366   : > { %v2149_v56 = vpop.xlane.xlu1 %2148  ;;  %v2151_v11 = vpop.xlane.xlu0 %2150 }
 0x367   : > { %v2175_v60 = vmul.f32 0.0078125, %v2149_v56  ;;  %v2176_v9 = vmul.f32 0.0078125, %v2151_v11  ;;  %v2205_v27 = vmul.f32 %v4671_v3, %v4671_v3  ;;  %v2206_v4 = vmul.f32 %v4674_v48, %v4674_v48 }
 0x369   : > { %v4681_v1 = vsub.f32 %v4553_v52, %v2175_v60  ;;  %v4684_v29 = vsub.f32 %v4551_v35, %v2176_v9  ;;  %2225 = vadd.xlane.f32.xlu1 %v2205_v27  ;;  %2227 = vadd.xlane.f32.xlu0 %v2206_v4 }
 0x36b   : > { %v2207_v15 = vmul.f32 %v4681_v1, %v4681_v1  ;;  %v2208_v59 = vmul.f32 %v4684_v29, %v4684_v29 }
 0x36c   : > { %v2155_v5 = vpop.xlane.xlu0 %2154 }
 0x36d   : > { %v2178_v51 = vmul.f32 0.0078125, %v2155_v5  ;;  %2229 = vadd.xlane.f32.xlu1 %v2207_v15  ;;  %2231 = vadd.xlane.f32.xlu0 %v2208_v59  ;;  %v1977_v5 = vld [vmem:[#allocation3 + $0x8] sm:$0xff] }
 0x36e   : > { %v2153_v30 = vpop.xlane.xlu1 %2152 }
 0x36f   : > { %v4691_v63 = vsub.f32 %v4565_v62, %v2178_v51  ;;  %v2177_v52 = vmul.f32 0.0078125, %v2153_v30  ;;  %v1973_v51 = vld [vmem:[#allocation3] sm:$0xff] }
 0x370   : > { %v2159_v45 = vpop.xlane.xlu0 %2158 }
 0x371   : > { %v4694_v35 = vsub.f32 %v4569_v10, %v2177_v52  ;;  %v2180_v34 = vmul.f32 0.0078125, %v2159_v45  ;;  %v2210_v2 = vmul.f32 %v4691_v63, %v4691_v63 }
 0x372   : > { %v2157_v33 = vpop.xlane.xlu1 %2156 }
 0x373   : > { %v4699_v31 = vsub.f32 %v4576_v17, %v2180_v34  ;;  %v2179_v12 = vmul.f32 0.0078125, %v2157_v33  ;;  %2235 = vadd.xlane.f32.xlu0 %v2210_v2  ;;  %v2209_v28 = vmul.f32 %v4694_v35, %v4694_v35  ;;  %v1978_v34 = vld [vmem:[#allocation3 + $0x50] sm:$0xff]  ;;  %v1974_v33 = vld [vmem:[#allocation3 + $0x48] sm:$0xff] }
 0x375   : > { %v4704_v62 = vsub.f32 %v4579_v18, %v2179_v12  ;;  %2233 = vadd.xlane.f32.xlu1 %v2209_v28  ;;  %v2212_v10 = vmul.f32 %v4699_v31, %v4699_v31  ;;  %v4733_v28 = vld [vmem:[%s5048_s11] ss:$0 sm:$0xff] }
 0x377   : > { %2239 = vadd.xlane.f32.xlu0 %v2212_v10  ;;  %v2211_v6 = vmul.f32 %v4704_v62, %v4704_v62 }
 0x378   : > { %v2163_v14 = vpop.xlane.xlu0 %2162 }
 0x379   : > { %v2182_v40 = vmul.f32 0.0078125, %v2163_v14  ;;  %2237 = vadd.xlane.f32.xlu1 %v2211_v6 }
 0x37a   : > { %v2161_v17 = vpop.xlane.xlu1 %2160 }
 0x37b   : > { %v4711_v44 = vsub.f32 %v4591_v21, %v2182_v40  ;;  %v2181_v16 = vmul.f32 0.0078125, %v2161_v17 }
 0x37c   : > { %v2167_v7 = vpop.xlane.xlu0 %2166 }
 0x37d   : > { %v4714_v18 = vsub.f32 %v4596_v61, %v2181_v16  ;;  %v2184_v26 = vmul.f32 0.0078125, %v2167_v7  ;;  %v2214_v47 = vmul.f32 %v4711_v44, %v4711_v44 }
 0x37e   : > { %v2165_v24 = vpop.xlane.xlu1 %2164 }
 0x37f   : > { %v4719_v19 = vsub.f32 %v4602_v8, %v2184_v26  ;;  %v2183_v25 = vmul.f32 0.0078125, %v2165_v24  ;;  %2243 = vadd.xlane.f32.xlu0 %v2214_v47  ;;  %v2213_v20 = vmul.f32 %v4714_v18, %v4714_v18  ;;  %v1979_v47 = vld [vmem:[#allocation3 + $0x40] sm:$0xff] }
 0x381   : > { %v4724_v21 = vsub.f32 %v4607_v13, %v2183_v25  ;;  %2241 = vadd.xlane.f32.xlu1 %v2213_v20  ;;  %v2216_v61 = vmul.f32 %v4719_v19, %v4719_v19  ;;  %v1975_v25 = vld [vmem:[#allocation3 + $0x68] sm:$0xff] }
 0x383   : > { %2247 = vadd.xlane.f32.xlu0 %v2216_v61  ;;  %v2215_v54 = vmul.f32 %v4724_v21, %v4724_v21  ;;  %v4739_v61 = vld [vmem:[%s5049_s12] ss:$0 sm:$0xff] }
 0x385   : > { %2245 = vadd.xlane.f32.xlu1 %v2215_v54 }
 0x3e4   : > { %v2220_v23 = vpop.xlane.xlu0 %2219 }
 0x3e5   : > { %v2250_v8 = vmul.f32 0.0078125, %v2220_v23 }
 0x3e6   : > { %v2218_v55 = vpop.xlane.xlu1 %2217 }
 0x3e7   : > { %v2266_v57 = vadd.f32 1e-05, %v2250_v8  ;;  %v2249_v22 = vmul.f32 0.0078125, %v2218_v55 }
 0x3e9   : > { %3404 = vrsqrt.f32 %v2266_v57  ;;  %v2265_v53 = vadd.f32 1e-05, %v2249_v22 }
 0x3ea   : > { %v2222_v0 = vpop.xlane.xlu1 %2221 }
 0x3eb   : > { %3406 = vrsqrt.f32 %v2265_v53  ;;  %v2251_v13 = vmul.f32 0.0078125, %v2222_v0  ;;  %v1980_v53 = vld [vmem:[#allocation3 + $0x38] sm:$0xff] }
 0x3ed   : > { %v2267_v56 = vadd.f32 1e-05, %v2251_v13  ;;  %v1976_v13 = vld [vmem:[#allocation3 + $0x78] sm:$0xff] }
 0x3ee   : > { %v2224_v11 = vpop.xlane.xlu0 %2223 }
 0x3ef   : > { %3408 = vrsqrt.f32 %v2267_v56  ;;  %v2252_v60 = vmul.f32 0.0078125, %v2224_v11 }
 0x3f1   : > { %v2268_v9 = vadd.f32 1e-05, %v2252_v60 }
 0x3f2   : > { %v2226_v27 = vpop.xlane.xlu1 %2225  ;;  %v2228_v4 = vpop.xlane.xlu0 %2227 }
 0x3f3   : > { %3410 = vrsqrt.f32 %v2268_v9  ;;  %v2253_v15 = vmul.f32 0.0078125, %v2226_v27  ;;  %v2254_v59 = vmul.f32 0.0078125, %v2228_v4  ;;  %v1981_v4 = vld [vmem:[#allocation3 + $0x70] sm:$0xff] }
 0x3f4   : > { %v2067_v45 = vpop.f32.mrf.mxu1  ;;  %v2055_v2 = vpop.f32.mrf.mxu0 }
 0x3f5   : > { %v2269_v30 = vadd.f32 1e-05, %v2253_v15  ;;  %v2270_v52 = vadd.f32 1e-05, %v2254_v59  ;;  %v2106_v14 = vadd.f32 %v2067_v45, %v1977_v5  ;;  %v2102_v40 = vadd.f32 %v2055_v2, %v1973_v51 }
 0x3f6   : > { %v3405_v12 = vpop.eup %3404  ;;  %v2230_v10 = vpop.xlane.xlu1 %2229 }
 0x3f7   : > { %v2232_v6 = vpop.xlane.xlu0 %2231  ;;  %v2298_v17 = vmul.f32 %v3405_v12, %v4651_v49  ;;  %3412 = vrsqrt.f32 %v2269_v30  ;;  %v2255_v16 = vmul.f32 0.0078125, %v2230_v10  ;;  %v2069_v26 = vpop.f32.mrf.mxu1  ;;  %2122 = vst [vmem:[#allocation3 + $0x8] sm:$0xff] %v2106_v14  ;;  %2118 = vst [vmem:[#allocation3] sm:$0xff] %v2102_v40 }
 0x3f8   : > { %v2256_v7 = vmul.f32 0.0078125, %v2232_v6  ;;  %v2057_v24 = vpop.f32.mrf.mxu0  ;;  %v3407_v20 = vpop.eup %3406  ;;  %3414 = vrsqrt.f32 %v2270_v52  ;;  %v2107_v54 = vadd.f32 %v2069_v26, %v1978_v34 }
 0x3f9   : > { %v2103_v23 = vadd.f32 %v2057_v24, %v1974_v33  ;;  %v2320_v49 = vmul.f32 %v4733_v28, %v2298_v17  ;;  %v2297_v8 = vmul.f32 %v3407_v20, %v4654_v32  ;;  %v2271_v55 = vadd.f32 1e-05, %v2255_v16  ;;  %v2073_v22 = vpop.f32.mrf.mxu1  ;;  %v1982_v33 = vld [vmem:[#allocation3 + $0x60] sm:$0xff]  ;;  %v1983_v16 = vld [vmem:[#allocation3 + $0x18] sm:$0xff] }
 0x3fa   : > { %v2272_v57 = vadd.f32 1e-05, %v2256_v7  ;;  %v2061_v0 = vpop.f32.mrf.mxu0  ;;  %2123 = vst [vmem:[#allocation3 + $0x50] sm:$0xff] %v2107_v54  ;;  %v2108_v56 = vadd.f32 %v2073_v22, %v1979_v47 }
 0x3fb   : > { %2119 = vst [vmem:[#allocation3 + $0x48] sm:$0xff] %v2103_v23  ;;  %v2104_v11 = vadd.f32 %v2061_v0, %v1975_v25  ;;  %v4744_v60 = vadd.f32 %v4739_v61, %v2320_v49  ;;  %v2319_v9 = vmul.f32 %v4733_v28, %v2297_v8  ;;  %3416 = vrsqrt.f32 %v2271_v55  ;;  %v2075_v27 = vpop.f32.mrf.mxu1  ;;  %v1984_v23 = vld [vmem:[#allocation3 + $0x20] sm:$0xff] }
 0x3fc   : > { %v2063_v15 = vpop.f32.mrf.mxu0  ;;  %v3409_v32 = vpop.eup %3408  ;;  %3418 = vrsqrt.f32 %v2272_v57  ;;  %2124 = vst [vmem:[#allocation3 + $0x40] sm:$0xff] %v2108_v56  ;;  %v2109_v5 = vadd.f32 %v2075_v27, %v1980_v53  ;;  %v1985_v56 = vld [vmem:[#allocation3 + $0x10] sm:$0xff] }
 0x3fd   : > { %v2236_v59 = vpop.xlane.xlu0 %2235  ;;  %2120 = vst [vmem:[#allocation3 + $0x68] sm:$0xff] %v2104_v11  ;;  %v2105_v51 = vadd.f32 %v2063_v15, %v1976_v13  ;;  %v3037_v30 = vmul.f32 -1.442695, %v4744_v60  ;;  %v4749_v52 = vadd.f32 %v4739_v61, %v2319_v9  ;;  %v2299_v45 = vmul.f32 %v3409_v32, %v4661_v50  ;;  %v2079_v2 = vpop.f32.mrf.mxu1 }
 0x3fe   : > { %v2258_v34 = vmul.f32 0.0078125, %v2236_v59  ;;  %v2234_v12 = vpop.xlane.xlu1 %2233  ;;  %2125 = vst [vmem:[#allocation3 + $0x38] sm:$0xff] %v2109_v5  ;;  %v2110_v10 = vadd.f32 %v2079_v2, %v1981_v4  ;;  %v1986_v59 = vld [vmem:[#allocation3 + $0x30] sm:$0xff]  ;;  %v1987_v2 = vld [vmem:[#allocation3 + $0x28] sm:$0xff] }
 0x3ff   : > { %2121 = vst [vmem:[#allocation3 + $0x78] sm:$0xff] %v2105_v51  ;;  %3420 = vpow2.f32 %v3037_v30  ;;  %v3036_v6 = vmul.f32 -1.442695, %v4749_v52  ;;  %v2321_v14 = vmul.f32 %v4733_v28, %v2299_v45  ;;  %v2081_v17 = vpop.f32.mrf.mxu1  ;;  %v2257_v26 = vmul.f32 0.0078125, %v2234_v12 }
 0x400   : > { %v2274_v40 = vadd.f32 1e-05, %v2258_v34  ;;  %v3411_v7 = vpop.eup %3410  ;;  %2126 = vst [vmem:[#allocation3 + $0x70] sm:$0xff] %v2110_v10  ;;  %v2111_v50 = vadd.f32 %v2081_v17, %v1982_v33 }
 0x401   : > { %v2240_v47 = vpop.xlane.xlu0 %2239  ;;  %3422 = vpow2.f32 %v3036_v6  ;;  %v4755_v24 = vadd.f32 %v4739_v61, %v2321_v14  ;;  %v2300_v25 = vmul.f32 %v3411_v7, %v4666_v58  ;;  %v2085_v54 = vpop.f32.mrf.mxu1  ;;  %v2273_v49 = vadd.f32 1e-05, %v2257_v26 }
 0x402   : > { %v2260_v20 = vmul.f32 0.0078125, %v2240_v47  ;;  %3424 = vrsqrt.f32 %v2274_v40  ;;  %v2238_v8 = vpop.xlane.xlu1 %2237  ;;  %2127 = vst [vmem:[#allocation3 + $0x60] sm:$0xff] %v2111_v50  ;;  %v2112_v55 = vadd.f32 %v2085_v54, %v1983_v16  ;;  %v1988_v16 = vld [vmem:[#allocation3 + $0x58] sm:$0xff] }
 0x403   : > { %v3038_v57 = vmul.f32 -1.442695, %v4755_v24  ;;  %v2322_v22 = vmul.f32 %v4733_v28, %v2300_v25  ;;  %v2259_v0 = vmul.f32 0.0078125, %v2238_v8  ;;  %v2087_v13 = vpop.f32.mrf.mxu1  ;;  %3426 = vrsqrt.f32 %v2273_v49 }
 0x404   : > { %v2276_v53 = vadd.f32 1e-05, %v2260_v20  ;;  %v3413_v11 = vpop.eup %3412  ;;  %2128 = vst [vmem:[#allocation3 + $0x18] sm:$0xff] %v2112_v55  ;;  %v2113_v58 = vadd.f32 %v2087_v13, %v1984_v23 }
 0x405   : > { %v3415_v9 = vpop.eup %3414  ;;  %3428 = vpow2.f32 %v3038_v57  ;;  %v4761_v27 = vadd.f32 %v4739_v61, %v2322_v22  ;;  %v2301_v4 = vmul.f32 %v3413_v11, %v4671_v3  ;;  %v2275_v15 = vadd.f32 1e-05, %v2259_v0  ;;  %v2091_v32 = vpop.f32.mrf.mxu1 }
 0x406   : > { %v2302_v5 = vmul.f32 %v3415_v9, %v4674_v48  ;;  %3430 = vrsqrt.f32 %v2276_v53  ;;  %2129 = vst [vmem:[#allocation3 + $0x20] sm:$0xff] %v2113_v58  ;;  %v2114_v51 = vadd.f32 %v2091_v32, %v1985_v56 }
 0x407   : > { %v3039_v30 = vmul.f32 -1.442695, %v4761_v27  ;;  %v2323_v45 = vmul.f32 %v4733_v28, %v2301_v4  ;;  %3432 = vrsqrt.f32 %v2275_v15  ;;  %v2093_v34 = vpop.f32.mrf.mxu1 }
 0x408   : > { %v3417_v33 = vpop.eup %3416  ;;  %v2324_v12 = vmul.f32 %v4733_v28, %v2302_v5  ;;  %v2244_v10 = vpop.xlane.xlu0 %2243  ;;  %2130 = vst [vmem:[#allocation3 + $0x10] sm:$0xff] %v2114_v51  ;;  %v2115_v3 = vadd.f32 %v2093_v34, %v1986_v59 }
 0x409   : > { %v3419_v6 = vpop.eup %3418  ;;  %3434 = vpow2.f32 %v3039_v30  ;;  %v4769_v48 = vadd.f32 %v4739_v61, %v2323_v45  ;;  %v2303_v14 = vmul.f32 %v3417_v33, %v4681_v1  ;;  %v2262_v40 = vmul.f32 0.0078125, %v2244_v10  ;;  %v2097_v17 = vpop.f32.mrf.mxu1 }
 0x40a   : > { %v4773_v7 = vadd.f32 %v4739_v61, %v2324_v12  ;;  %v2304_v26 = vmul.f32 %v3419_v6, %v4684_v29  ;;  %v2242_v47 = vpop.xlane.xlu1 %2241  ;;  %2131 = vst [vmem:[#allocation3 + $0x30] sm:$0xff] %v2115_v3  ;;  %v2116_v50 = vadd.f32 %v2097_v17, %v1987_v2 }
 0x40b   : > { %v3040_v25 = vmul.f32 -1.442695, %v4769_v48  ;;  %v2325_v20 = vmul.f32 %v4733_v28, %v2303_v14  ;;  %v2278_v54 = vadd.f32 1e-05, %v2262_v40  ;;  %v2099_v23 = vpop.f32.mrf.mxu1  ;;  %v2261_v55 = vmul.f32 0.0078125, %v2242_v47 }
 0x40c   : > { %v3421_v49 = vpop.eup %3420  ;;  %v3041_v1 = vmul.f32 -1.442695, %v4773_v7  ;;  %v2326_v8 = vmul.f32 %v4733_v28, %v2304_v26  ;;  %v2248_v57 = vpop.xlane.xlu0 %2247  ;;  %2132 = vst [vmem:[#allocation3 + $0x28] sm:$0xff] %v2116_v50  ;;  %v2117_v22 = vadd.f32 %v2099_v23, %v1988_v16 }
 0x40d   : > { %v2406_v53 = vadd.f32 1.0, %v3421_v49  ;;  %3436 = vpow2.f32 %v3040_v25  ;;  %v4781_v29 = vadd.f32 %v4739_v61, %v2325_v20  ;;  %v2264_v56 = vmul.f32 0.0078125, %v2248_v57 }
 0x40e   : > { %v3423_v0 = vpop.eup %3422  ;;  %3438 = vpow2.f32 %v3041_v1  ;;  %v4784_v13 = vadd.f32 %v4739_v61, %v2326_v8  ;;  %v2246_v11 = vpop.xlane.xlu1 %2245  ;;  %2133 = vst [vmem:[#allocation3 + $0x58] sm:$0xff] %v2117_v22  ;;  %v2277_v5 = vadd.f32 1e-05, %v2261_v55 }
 0x40f   : > { %v3425_v58 = vpop.eup %3424  ;;  %3440 = vrcp.f32 %v2406_v53  ;;  %v2405_v9 = vadd.f32 1.0, %v3423_v0  ;;  %v3042_v4 = vmul.f32 -1.442695, %v4781_v29  ;;  %v2263_v15 = vmul.f32 0.0078125, %v2246_v11  ;;  %v3500_v11 = vld [vmem:[%s4003_s25 + $0x8] sm:$0xff] }
 0x410   : > { %v3043_v32 = vmul.f32 -1.442695, %v4784_v13  ;;  %v2306_v59 = vmul.f32 %v3425_v58, %v4691_v63  ;;  %3442 = vrsqrt.f32 %v2278_v54  ;;  %v3427_v51 = vpop.eup %3426  ;;  %v2280_v2 = vadd.f32 1e-05, %v2264_v56 }
 0x411   : > { %3444 = vrcp.f32 %v2405_v9  ;;  %v2305_v34 = vmul.f32 %v3427_v51, %v4694_v35  ;;  %v2279_v10 = vadd.f32 1e-05, %v2263_v15 }
 0x412   : > { %v3429_v30 = vpop.eup %3428  ;;  %3446 = vpow2.f32 %v3042_v4  ;;  %v2328_v45 = vmul.f32 %v4733_v28, %v2306_v59 }
 0x413   : > { %v3431_v33 = vpop.eup %3430  ;;  %v2407_v12 = vadd.f32 1.0, %v3429_v30  ;;  %3448 = vpow2.f32 %v3043_v32  ;;  %v2327_v63 = vmul.f32 %v4733_v28, %v2305_v34 }
 0x414   : > { %v3433_v3 = vpop.eup %3432  ;;  %v4792_v6 = vadd.f32 %v4739_v61, %v2328_v45  ;;  %v2308_v14 = vmul.f32 %v3431_v33, %v4699_v31  ;;  %3450 = vrsqrt.f32 %v2277_v5  ;;  %v3501_v5 = vld [vmem:[%s4003_s25] sm:$0xff] }
 0x415   : > { %3452 = vrcp.f32 %v2407_v12  ;;  %v2307_v40 = vmul.f32 %v3433_v3, %v4704_v62  ;;  %v4799_v16 = vadd.f32 %v4739_v61, %v2327_v63  ;;  %v3502_v63 = vld [vmem:[%s4003_s25 + $0x10] sm:$0xff] }
 0x416   : > { %v3435_v17 = vpop.eup %3434  ;;  %v3045_v35 = vmul.f32 -1.442695, %v4792_v6  ;;  %v2330_v26 = vmul.f32 %v4733_v28, %v2308_v14  ;;  %3454 = vrsqrt.f32 %v2280_v2 }
 0x417   : > { %v2408_v47 = vadd.f32 1.0, %v3435_v17  ;;  %v2329_v50 = vmul.f32 %v4733_v28, %v2307_v40  ;;  %3456 = vrsqrt.f32 %v2279_v10  ;;  %v3044_v31 = vmul.f32 -1.442695, %v4799_v16 }
 0x418   : > { %3458 = vpow2.f32 %v3045_v35  ;;  %v4805_v25 = vadd.f32 %v4739_v61, %v2330_v26 }
 0x419   : > { %3460 = vrcp.f32 %v2408_v47  ;;  %v4808_v62 = vadd.f32 %v4739_v61, %v2329_v50 }
 0x41a   : > { %v3437_v20 = vpop.eup %3436  ;;  %3462 = vpow2.f32 %v3044_v31  ;;  %v3047_v54 = vmul.f32 -1.442695, %v4805_v25 }
 0x41b   : > { %v3439_v23 = vpop.eup %3438  ;;  %v2409_v49 = vadd.f32 1.0, %v3437_v20  ;;  %v3046_v1 = vmul.f32 -1.442695, %v4808_v62 }
 0x41c   : > { %v3441_v8 = vpop.eup %3440  ;;  %v2410_v55 = vadd.f32 1.0, %v3439_v23  ;;  %3464 = vpow2.f32 %v3047_v54  ;;  %v3503_v54 = vld [vmem:[%s4003_s25 + $0x18] sm:$0xff] }
 0x41d   : > { %v3443_v57 = vpop.eup %3442  ;;  %v2454_v22 = vmul.f32 %v3441_v8, %v4744_v60  ;;  %3466 = vrcp.f32 %v2409_v49 }
 0x41e   : > { %v3445_v53 = vpop.eup %3444  ;;  %3468 = vrcp.f32 %v2410_v55  ;;  %v2310_v0 = vmul.f32 %v3443_v57, %v4711_v44 }
 0x41f   : > { %v3447_v56 = vpop.eup %3446  ;;  %v2470_v58 = vadd.f32 %v3500_v11, %v2454_v22  ;;  %v2453_v9 = vmul.f32 %v3445_v53, %v4749_v52  ;;  %3470 = vpow2.f32 %v3046_v1  ;;  %v3505_v11 = vld [vmem:[%s4003_s25 + $0x28] sm:$0xff] }
 0x420   : > { %v3449_v4 = vpop.eup %3448  ;;  %v2411_v15 = vadd.f32 1.0, %v3447_v56  ;;  %v2332_v32 = vmul.f32 %v4733_v28, %v2310_v0 }
 0x421   : > { %v3451_v59 = vpop.eup %3450  ;;  %2486 = vst [vmem:[%s4032_s19 + $0x8] sm:$0xff] %v2470_v58  ;;  %v2469_v60 = vadd.f32 %v3501_v5, %v2453_v9  ;;  %v2412_v51 = vadd.f32 1.0, %v3449_v4  ;;  %v3507_v5 = vld [vmem:[%s4003_s25 + $0x38] sm:$0xff] }
 0x422   : > { %v3453_v30 = vpop.eup %3452  ;;  %3472 = vrcp.f32 %v2411_v15  ;;  %v4820_v44 = vadd.f32 %v4739_v61, %v2332_v32  ;;  %v2309_v45 = vmul.f32 %v3451_v59, %v4714_v18  ;;  %v3506_v15 = vld [vmem:[%s4003_s25 + $0x30] sm:$0xff] }
 0x423   : > { %v3455_v34 = vpop.eup %3454  ;;  %2485 = vst [vmem:[%s4032_s19] sm:$0xff] %v2469_v60  ;;  %v2455_v52 = vmul.f32 %v3453_v30, %v4755_v24  ;;  %3474 = vrcp.f32 %v2412_v51 }
 0x424   : > { %v3457_v2 = vpop.eup %3456  ;;  %v3049_v33 = vmul.f32 -1.442695, %v4820_v44  ;;  %v2331_v12 = vmul.f32 %v4733_v28, %v2309_v45  ;;  %v2312_v10 = vmul.f32 %v3455_v34, %v4719_v19 }
 0x425   : > { %v3459_v3 = vpop.eup %3458  ;;  %v2471_v14 = vadd.f32 %v3502_v63, %v2455_v52  ;;  %v2311_v40 = vmul.f32 %v3457_v2, %v4724_v21 }
 0x426   : > { %v3461_v18 = vpop.eup %3460  ;;  %v2414_v17 = vadd.f32 1.0, %v3459_v3  ;;  %3476 = vpow2.f32 %v3049_v33  ;;  %v4831_v24 = vadd.f32 %v4739_v61, %v2331_v12  ;;  %v2334_v35 = vmul.f32 %v4733_v28, %v2312_v10  ;;  %v3509_v3 = vld [vmem:[%s4003_s25 + $0x40] sm:$0xff] }
 0x427   : > { %v3463_v26 = vpop.eup %3462  ;;  %2487 = vst [vmem:[%s4032_s19 + $0x10] sm:$0xff] %v2471_v14  ;;  %v2456_v47 = vmul.f32 %v3461_v18, %v4761_v27  ;;  %v2333_v19 = vmul.f32 %v4733_v28, %v2311_v40 }
 0x428   : > { %3478 = vrcp.f32 %v2414_v17  ;;  %v2413_v50 = vadd.f32 1.0, %v3463_v26  ;;  %v3048_v31 = vmul.f32 -1.442695, %v4831_v24  ;;  %v4839_v21 = vadd.f32 %v4739_v61, %v2334_v35  ;;  %v3510_v17 = vld [vmem:[%s4003_s25 + $0x58] sm:$0xff] }
 0x429   : > { %v3465_v20 = vpop.eup %3464  ;;  %v2472_v23 = vadd.f32 %v3503_v54, %v2456_v47  ;;  %v4843_v49 = vadd.f32 %v4739_v61, %v2333_v19  ;;  %v3504_v61 = vld [vmem:[%s4003_s25 + $0x20] sm:$0xff]  ;;  %v3511_v47 = vld [vmem:[%s4003_s25 + $0x50] sm:$0xff] }
 0x42a   : > { %v3467_v1 = vpop.eup %3466  ;;  %3480 = vrcp.f32 %v2413_v50  ;;  %v2416_v27 = vadd.f32 1.0, %v3465_v20  ;;  %v3051_v28 = vmul.f32 -1.442695, %v4839_v21 }
 0x42b   : > { %v3469_v8 = vpop.eup %3468  ;;  %2488 = vst [vmem:[%s4032_s19 + $0x18] sm:$0xff] %v2472_v23  ;;  %v2457_v55 = vmul.f32 %v3467_v1, %v4769_v48  ;;  %3482 = vpow2.f32 %v3048_v31  ;;  %v3050_v57 = vmul.f32 -1.442695, %v4843_v49  ;;  %v3512_v31 = vld [vmem:[%s4003_s25 + $0x68] sm:$0xff] }
 0x42c   : > { %v3471_v22 = vpop.eup %3470  ;;  %v2458_v53 = vmul.f32 %v3469_v8, %v4773_v7  ;;  %3484 = vrcp.f32 %v2416_v27  ;;  %v3513_v27 = vld [vmem:[%s4003_s25 + $0x60] sm:$0xff] }
 0x42d   : > { %v2473_v0 = vadd.f32 %v3504_v61, %v2457_v55  ;;  %v2415_v56 = vadd.f32 1.0, %v3471_v22  ;;  %3486 = vpow2.f32 %v3051_v28 }
 0x42e   : > { %v2474_v58 = vadd.f32 %v3505_v11, %v2458_v53  ;;  %3488 = vpow2.f32 %v3050_v57  ;;  %v3514_v57 = vld [vmem:[%s4003_s25 + $0x78] sm:$0xff] }
 0x42f   : > { %v3473_v48 = vpop.eup %3472  ;;  %2489 = vst [vmem:[%s4032_s19 + $0x20] sm:$0xff] %v2473_v0  ;;  %3490 = vrcp.f32 %v2415_v56 }
 0x430   : > { %v3475_v9 = vpop.eup %3474  ;;  %2490 = vst [vmem:[%s4032_s19 + $0x28] sm:$0xff] %v2474_v58  ;;  %v2459_v7 = vmul.f32 %v3473_v48, %v4781_v29  ;;  %v3508_v29 = vld [vmem:[%s4003_s25 + $0x48] sm:$0xff] }
 0x431   : > { %v2460_v4 = vmul.f32 %v3475_v9, %v4784_v13 }
 0x432   : > { %v2475_v32 = vadd.f32 %v3506_v15, %v2459_v7 }
 0x433   : > { %v3477_v59 = vpop.eup %3476  ;;  %v2476_v60 = vadd.f32 %v3507_v5, %v2460_v4 }
 0x434   : > { %2491 = vst [vmem:[%s4032_s19 + $0x30] sm:$0xff] %v2475_v32  ;;  %v2418_v51 = vadd.f32 1.0, %v3477_v59 }
 0x435   : > { %v3479_v30 = vpop.eup %3478  ;;  %2492 = vst [vmem:[%s4032_s19 + $0x38] sm:$0xff] %v2476_v60 }
 0x436   : > { %v2462_v45 = vmul.f32 %v3479_v30, %v4792_v6  ;;  %3492 = vrcp.f32 %v2418_v51 }
 0x437   : > { %v3481_v34 = vpop.eup %3480 }
 0x438   : > { %v3483_v52 = vpop.eup %3482  ;;  %v2478_v13 = vadd.f32 %v3508_v29, %v2462_v45  ;;  %v2461_v2 = vmul.f32 %v3481_v34, %v4799_v16 }
 0x439   : > { %v3485_v33 = vpop.eup %3484  ;;  %v2417_v12 = vadd.f32 1.0, %v3483_v52 }
 0x43a   : > { %v3487_v10 = vpop.eup %3486  ;;  %2494 = vst [vmem:[%s4032_s19 + $0x48] sm:$0xff] %v2478_v13  ;;  %v2477_v63 = vadd.f32 %v3509_v3, %v2461_v2  ;;  %v2464_v6 = vmul.f32 %v3485_v33, %v4805_v25 }
 0x43b   : > { %v3489_v14 = vpop.eup %3488  ;;  %3494 = vrcp.f32 %v2417_v12  ;;  %v2420_v40 = vadd.f32 1.0, %v3487_v10 }
 0x43c   : > { %v3491_v18 = vpop.eup %3490  ;;  %2493 = vst [vmem:[%s4032_s19 + $0x40] sm:$0xff] %v2477_v63  ;;  %v2480_v16 = vadd.f32 %v3510_v17, %v2464_v6  ;;  %v2419_v35 = vadd.f32 1.0, %v3489_v14 }
 0x43d   : > { %v2463_v26 = vmul.f32 %v3491_v18, %v4808_v62  ;;  %3496 = vrcp.f32 %v2420_v40 }
 0x43e   : > { %2496 = vst [vmem:[%s4032_s19 + $0x58] sm:$0xff] %v2480_v16  ;;  %3498 = vrcp.f32 %v2419_v35 }
 0x43f   : > { %v2479_v19 = vadd.f32 %v3511_v47, %v2463_v26 }
 0x441   : > { %2495 = vst [vmem:[%s4032_s19 + $0x50] sm:$0xff] %v2479_v19 }
 0x443   : > { %v3493_v25 = vpop.eup %3492 }
 0x444   : > { %v2466_v50 = vmul.f32 %v3493_v25, %v4820_v44  ;;  %v3515_v44 = vld [vmem:[%s4003_s25 + $0x70] sm:$0xff] }
 0x446   : > { %v2482_v20 = vadd.f32 %v3512_v31, %v2466_v50 }
 0x448   : > { %v3495_v54 = vpop.eup %3494  ;;  %2498 = vst [vmem:[%s4032_s19 + $0x68] sm:$0xff] %v2482_v20 }
 0x449   : > { %v2465_v62 = vmul.f32 %v3495_v54, %v4831_v24 }
 0x44a   : > { %v3497_v23 = vpop.eup %3496 }
 0x44b   : > { %v3499_v1 = vpop.eup %3498  ;;  %v2481_v28 = vadd.f32 %v3513_v27, %v2465_v62  ;;  %v2468_v8 = vmul.f32 %v3497_v23, %v4839_v21 }
 0x44c   : > { %v2467_v55 = vmul.f32 %v3499_v1, %v4843_v49  ;;  %2504 = sbr.rel (%p3052_p10) target bundleno = 1486 (0x5ce), region = 92 }
 0x44d   : > { %2497 = vst [vmem:[%s4032_s19 + $0x60] sm:$0xff] %v2481_v28  ;;  %v2484_v22 = vadd.f32 %v3514_v57, %v2468_v8 }
 0x44e   : > { %v2483_v53 = vadd.f32 %v3515_v44, %v2467_v55 }
 0x44f   : > { %2500 = vst [vmem:[%s4032_s19 + $0x78] sm:$0xff] %v2484_v22 }
 0x450   : > { %2499 = vst [vmem:[%s4032_s19 + $0x70] sm:$0xff] %v2483_v53 }
 0x451   : > { %v2506_v61 = vld [vmem:[#allocation3 + $0x48] sm:$0xff]  ;;  %v2510_v0 = vld [vmem:[#allocation3 + $0x50] sm:$0xff]  ;;  %v2508_v56 = vld [vmem:[#allocation3 + $0x78] sm:$0xff] }
 0x452   : > { %v2521_v24 = vadd.f32 1e-06, %v2506_v61  ;;  %v2523_v11 = vadd.f32 1e-06, %v2510_v0  ;;  %v2522_v58 = vadd.f32 1e-06, %v2508_v56 }
 0x453   : > { %v2512_v48 = vld [vmem:[#allocation3 + $0x38] sm:$0xff]  ;;  %v2514_v49 = vld [vmem:[#allocation3 + $0x60] sm:$0xff]  ;;  %v2518_v4 = vld [vmem:[#allocation3 + $0x30] sm:$0xff] }
 0x454   : > { %3516 = vrcp.f32 %v2521_v24  ;;  %v2524_v21 = vadd.f32 1e-06, %v2512_v48  ;;  %v2525_v9 = vadd.f32 1e-06, %v2514_v49  ;;  %v2516_v7 = vld [vmem:[#allocation3 + $0x20] sm:$0xff]  ;;  %v2520_v59 = vld [vmem:[#allocation3 + $0x58] sm:$0xff] }
 0x455   : > { %3518 = vrcp.f32 %v2523_v11  ;;  %v2526_v15 = vadd.f32 1e-06, %v2516_v7  ;;  %v2527_v32 = vadd.f32 1e-06, %v2518_v4  ;;  %v2528_v5 = vadd.f32 1e-06, %v2520_v59 }
 0x456   : > { %3520 = vrcp.f32 %v2522_v58  ;;  %v2505_v60 = vld [vmem:[#allocation3] sm:$0xff]  ;;  %v2509_v51 = vld [vmem:[#allocation3 + $0x8] sm:$0xff]  ;;  %v2513_v33 = vld [vmem:[#allocation3 + $0x70] sm:$0xff] }
 0x457   : > { %3522 = vrcp.f32 %v2524_v21  ;;  %v2507_v45 = vld [vmem:[#allocation3 + $0x68] sm:$0xff]  ;;  %v2511_v29 = vld [vmem:[#allocation3 + $0x40] sm:$0xff]  ;;  %v2515_v63 = vld [vmem:[#allocation3 + $0x18] sm:$0xff] }
 0x458   : > { %3524 = vrcp.f32 %v2525_v9  ;;  %v2517_v19 = vld [vmem:[#allocation3 + $0x10] sm:$0xff]  ;;  %v2519_v50 = vld [vmem:[#allocation3 + $0x28] sm:$0xff] }
 0x459   : > { %3526 = vrcp.f32 %v2526_v15 }
 0x45a   : > { %3528 = vrcp.f32 %v2527_v32 }
 0x45b   : > { %3530 = vrcp.f32 %v2528_v5 }
 0x461   : > { %v3517_v30 = vpop.eup %3516 }
 0x462   : > { %v3519_v34 = vpop.eup %3518  ;;  %v2537_v52 = vmul.f32 %v3517_v30, %v2505_v60 }
 0x463   : > { %v3521_v13 = vpop.eup %3520  ;;  %v2539_v2 = vmul.f32 %v3519_v34, %v2509_v51 }
 0x464   : > { %v3523_v12 = vpop.eup %3522  ;;  %v2545_v10 = vadd.f32 %v2537_v52, %v4314_v36  ;;  %v2538_v3 = vmul.f32 %v3521_v13, %v2507_v45 }
 0x465   : > { %v3525_v6 = vpop.eup %3524  ;;  %v2547_v14 = vadd.f32 %v2539_v2, %v4318_v38  ;;  %v2540_v40 = vmul.f32 %v3523_v12, %v2511_v29 }
 0x466   : > { %v3527_v18 = vpop.eup %3526  ;;  %2555 = vadd.xlane.f32.xlu0 %v2545_v10  ;;  %v2546_v17 = vadd.f32 %v2538_v3, %v4316_v37  ;;  %v2541_v16 = vmul.f32 %v3525_v6, %v2513_v33 }
 0x467   : > { %v3529_v35 = vpop.eup %3528  ;;  %2559 = vadd.xlane.f32.xlu1 %v2547_v14  ;;  %v2548_v26 = vadd.f32 %v2540_v40, %v4320_v39  ;;  %v2542_v47 = vmul.f32 %v3527_v18, %v2515_v63 }
 0x468   : > { %v3531_v25 = vpop.eup %3530  ;;  %v2549_v36 = vadd.f32 %v2541_v16, %v4323_v41  ;;  %v2543_v31 = vmul.f32 %v3529_v35, %v2517_v19 }
 0x469   : > { %v2550_v38 = vadd.f32 %v2542_v47, %v4325_v42  ;;  %v2544_v20 = vmul.f32 %v3531_v25, %v2519_v50  ;;  %v3053_v25 = vld [vmem:[%s5090_s26] ss:$0 sm:$0xff] }
 0x46a   : > { %2557 = vadd.xlane.f32.xlu0 %v2546_v17  ;;  %v2551_v37 = vadd.f32 %v2543_v31, %v4327_v43  ;;  %v3054_v31 = vld [vmem:[%s5091_s18] ss:$0 sm:$0xff] }
 0x46b   : > { %2561 = vadd.xlane.f32.xlu1 %v2548_v26  ;;  %v2552_v54 = vadd.f32 %v2544_v20, %v4329_v46 }
 0x46e   : > { %2563 = vadd.xlane.f32.xlu0 %v2549_v36 }
 0x46f   : > { %2565 = vadd.xlane.f32.xlu1 %v2550_v38 }
 0x472   : > { %2567 = vadd.xlane.f32.xlu0 %v2551_v37 }
 0x473   : > { %2569 = vadd.xlane.f32.xlu1 %v2552_v54 }
 0x4ef   : > { %v2556_v39 = vpop.xlane.xlu0 %2555 }
 0x4f0   : > { %v2571_v62 = vmul.f32 0.0078125, %v2556_v39  ;;  %v2560_v23 = vpop.xlane.xlu1 %2559 }
 0x4f1   : > { %v2573_v1 = vmul.f32 0.0078125, %v2560_v23 }
 0x4f2   : > { %v4893_v27 = vsub.f32 %v2545_v10, %v2571_v62 }
 0x4f3   : > { %v4895_v41 = vsub.f32 %v2547_v14, %v2573_v1  ;;  %v2558_v28 = vpop.xlane.xlu0 %2557 }
 0x4f4   : > { %v2572_v8 = vmul.f32 0.0078125, %v2558_v28  ;;  %v2587_v42 = vmul.f32 %v4893_v27, %v4893_v27  ;;  %v2562_v55 = vpop.xlane.xlu1 %2561 }
 0x4f5   : > { %v2574_v43 = vmul.f32 0.0078125, %v2562_v55  ;;  %v2589_v46 = vmul.f32 %v4895_v41, %v4895_v41 }
 0x4f6   : > { %v4899_v57 = vsub.f32 %v2546_v17, %v2572_v8  ;;  %2595 = vadd.xlane.f32.xlu0 %v2587_v42 }
 0x4f7   : > { %v4903_v22 = vsub.f32 %v2548_v26, %v2574_v43  ;;  %v2564_v44 = vpop.xlane.xlu0 %2563 }
 0x4f8   : > { %v2575_v53 = vmul.f32 0.0078125, %v2564_v44  ;;  %v2588_v61 = vmul.f32 %v4899_v57, %v4899_v57  ;;  %v2566_v24 = vpop.xlane.xlu1 %2565 }
 0x4f9   : > { %v2576_v0 = vmul.f32 0.0078125, %v2566_v24  ;;  %v2590_v11 = vmul.f32 %v4903_v22, %v4903_v22 }
 0x4fa   : > { %v4907_v56 = vsub.f32 %v2549_v36, %v2575_v53  ;;  %2599 = vadd.xlane.f32.xlu0 %v2589_v46  ;;  %2597 = vadd.xlane.f32.xlu1 %v2588_v61 }
 0x4fb   : > { %v4911_v58 = vsub.f32 %v2550_v38, %v2576_v0  ;;  %v2568_v48 = vpop.xlane.xlu0 %2567 }
 0x4fc   : > { %v2577_v21 = vmul.f32 0.0078125, %v2568_v48  ;;  %v2591_v49 = vmul.f32 %v4907_v56, %v4907_v56  ;;  %v2570_v9 = vpop.xlane.xlu1 %2569 }
 0x4fd   : > { %v2578_v7 = vmul.f32 0.0078125, %v2570_v9  ;;  %v2592_v15 = vmul.f32 %v4911_v58, %v4911_v58 }
 0x4fe   : > { %v4915_v4 = vsub.f32 %v2551_v37, %v2577_v21  ;;  %2601 = vadd.xlane.f32.xlu1 %v2590_v11  ;;  %2603 = vadd.xlane.f32.xlu0 %v2591_v49 }
 0x4ff   : > { %v4919_v32 = vsub.f32 %v2552_v54, %v2578_v7 }
 0x500   : > { %v2593_v59 = vmul.f32 %v4915_v4, %v4915_v4 }
 0x501   : > { %v2594_v5 = vmul.f32 %v4919_v32, %v4919_v32 }
 0x502   : > { %2605 = vadd.xlane.f32.xlu1 %v2592_v15  ;;  %2607 = vadd.xlane.f32.xlu0 %v2593_v59 }
 0x506   : > { %2609 = vadd.xlane.f32.xlu1 %v2594_v5 }
 0x57f   : > { %v2596_v60 = vpop.xlane.xlu0 %2595 }
 0x580   : > { %v2611_v51 = vmul.f32 0.0078125, %v2596_v60 }
 0x582   : > { %v2619_v30 = vadd.f32 1e-05, %v2611_v51 }
 0x583   : > { %v2598_v45 = vpop.xlane.xlu1 %2597  ;;  %v2600_v34 = vpop.xlane.xlu0 %2599 }
 0x584   : > { %3532 = vrsqrt.f32 %v2619_v30  ;;  %v2612_v52 = vmul.f32 0.0078125, %v2598_v45  ;;  %v2613_v29 = vmul.f32 0.0078125, %v2600_v34 }
 0x586   : > { %v2620_v13 = vadd.f32 1e-05, %v2612_v52  ;;  %v2621_v2 = vadd.f32 1e-05, %v2613_v29 }
 0x587   : > { %v2602_v33 = vpop.xlane.xlu1 %2601  ;;  %v2604_v12 = vpop.xlane.xlu0 %2603 }
 0x588   : > { %3534 = vrsqrt.f32 %v2620_v13  ;;  %v2614_v10 = vmul.f32 0.0078125, %v2602_v33  ;;  %v2615_v3 = vmul.f32 0.0078125, %v2604_v12 }
 0x589   : > { %3536 = vrsqrt.f32 %v2621_v2 }
 0x58a   : > { %v2622_v63 = vadd.f32 1e-05, %v2614_v10  ;;  %v2623_v6 = vadd.f32 1e-05, %v2615_v3 }
 0x58b   : > { %v2606_v14 = vpop.xlane.xlu1 %2605  ;;  %v2608_v40 = vpop.xlane.xlu0 %2607 }
 0x58c   : > { %3538 = vrsqrt.f32 %v2622_v63  ;;  %v2616_v18 = vmul.f32 0.0078125, %v2606_v14  ;;  %v2617_v17 = vmul.f32 0.0078125, %v2608_v40 }
 0x58d   : > { %3540 = vrsqrt.f32 %v2623_v6 }
 0x58e   : > { %v2624_v16 = vadd.f32 1e-05, %v2616_v18  ;;  %v2625_v35 = vadd.f32 1e-05, %v2617_v17  ;;  %v2727_v18 = vld [vmem:[#allocation4] sm:$0xff] }
 0x58f   : > { %v2610_v26 = vpop.xlane.xlu1 %2609 }
 0x590   : > { %3542 = vrsqrt.f32 %v2624_v16  ;;  %v2618_v47 = vmul.f32 0.0078125, %v2610_v26 }
 0x591   : > { %v3533_v19 = vpop.eup %3532  ;;  %3544 = vrsqrt.f32 %v2625_v35 }
 0x592   : > { %v2635_v50 = vmul.f32 %v3533_v19, %v4893_v27  ;;  %v2626_v36 = vadd.f32 1e-05, %v2618_v47  ;;  %v2728_v19 = vld [vmem:[#allocation4 + $0x8] sm:$0xff] }
 0x594   : > { %v2649_v38 = vmul.f32 %v3053_v25, %v2635_v50  ;;  %3546 = vrsqrt.f32 %v2626_v36  ;;  %v2729_v36 = vld [vmem:[#allocation4 + $0x10] sm:$0xff] }
 0x595   : > { %v3535_v20 = vpop.eup %3534 }
 0x596   : > { %v3537_v37 = vpop.eup %3536  ;;  %v4932_v54 = vadd.f32 %v3054_v31, %v2649_v38  ;;  %v2636_v39 = vmul.f32 %v3535_v20, %v4899_v57 }
 0x597   : > { %v2637_v62 = vmul.f32 %v3537_v37, %v4895_v41 }
 0x598   : > { %v3055_v23 = vmul.f32 -1.442695, %v4932_v54  ;;  %v2650_v1 = vmul.f32 %v3053_v25, %v2636_v39  ;;  %v2730_v39 = vld [vmem:[#allocation4 + $0x18] sm:$0xff] }
 0x599   : > { %v3539_v28 = vpop.eup %3538  ;;  %v2651_v27 = vmul.f32 %v3053_v25, %v2637_v62 }
 0x59a   : > { %v3541_v8 = vpop.eup %3540  ;;  %3548 = vpow2.f32 %v3055_v23  ;;  %v4937_v42 = vadd.f32 %v3054_v31, %v2650_v1  ;;  %v2638_v55 = vmul.f32 %v3539_v28, %v4903_v22  ;;  %v2731_v23 = vld [vmem:[#allocation4 + $0x20] sm:$0xff] }
 0x59b   : > { %v4940_v43 = vadd.f32 %v3054_v31, %v2651_v27  ;;  %v2639_v46 = vmul.f32 %v3541_v8, %v4907_v56 }
 0x59c   : > { %v3056_v44 = vmul.f32 -1.442695, %v4937_v42  ;;  %v2652_v57 = vmul.f32 %v3053_v25, %v2638_v55  ;;  %v2732_v55 = vld [vmem:[#allocation4 + $0x28] sm:$0xff] }
 0x59d   : > { %v3543_v53 = vpop.eup %3542  ;;  %v3057_v41 = vmul.f32 -1.442695, %v4940_v43  ;;  %v2653_v61 = vmul.f32 %v3053_v25, %v2639_v46  ;;  %v2733_v46 = vld [vmem:[#allocation4 + $0x30] sm:$0xff] }
 0x59e   : > { %v3545_v24 = vpop.eup %3544  ;;  %3550 = vpow2.f32 %v3056_v44  ;;  %v4945_v0 = vadd.f32 %v3054_v31, %v2652_v57  ;;  %v2640_v11 = vmul.f32 %v3543_v53, %v4911_v58 }
 0x59f   : > { %3552 = vpow2.f32 %v3057_v41  ;;  %v4948_v48 = vadd.f32 %v3054_v31, %v2653_v61  ;;  %v2641_v22 = vmul.f32 %v3545_v24, %v4915_v4  ;;  %v2734_v61 = vld [vmem:[#allocation4 + $0x38] sm:$0xff] }
 0x5a0   : > { %v3058_v56 = vmul.f32 -1.442695, %v4945_v0  ;;  %v2654_v21 = vmul.f32 %v3053_v25, %v2640_v11 }
 0x5a1   : > { %v3547_v49 = vpop.eup %3546  ;;  %v3059_v9 = vmul.f32 -1.442695, %v4948_v48  ;;  %v2655_v7 = vmul.f32 %v3053_v25, %v2641_v22 }
 0x5a2   : > { %3554 = vpow2.f32 %v3058_v56  ;;  %v4953_v15 = vadd.f32 %v3054_v31, %v2654_v21  ;;  %v2642_v59 = vmul.f32 %v3547_v49, %v4919_v32 }
 0x5a3   : > { %3556 = vpow2.f32 %v3059_v9  ;;  %v4956_v5 = vadd.f32 %v3054_v31, %v2655_v7 }
 0x5a4   : > { %v3060_v58 = vmul.f32 -1.442695, %v4953_v15  ;;  %v2656_v60 = vmul.f32 %v3053_v25, %v2642_v59 }
 0x5a5   : > { %v3061_v4 = vmul.f32 -1.442695, %v4956_v5 }
 0x5a6   : > { %3558 = vpow2.f32 %v3060_v58  ;;  %v4960_v51 = vadd.f32 %v3054_v31, %v2656_v60 }
 0x5a7   : > { %v3549_v30 = vpop.eup %3548  ;;  %3560 = vpow2.f32 %v3061_v4 }
 0x5a8   : > { %v2695_v45 = vadd.f32 1.0, %v3549_v30  ;;  %v3062_v34 = vmul.f32 -1.442695, %v4960_v51 }
 0x5aa   : > { %3562 = vrcp.f32 %v2695_v45 }
 0x5ab   : > { %v3551_v52 = vpop.eup %3550  ;;  %3564 = vpow2.f32 %v3062_v34 }
 0x5ac   : > { %v3553_v32 = vpop.eup %3552  ;;  %v2696_v29 = vadd.f32 1.0, %v3551_v52 }
 0x5ad   : > { %v2697_v13 = vadd.f32 1.0, %v3553_v32 }
 0x5ae   : > { %3566 = vrcp.f32 %v2696_v29 }
 0x5af   : > { %v3555_v2 = vpop.eup %3554  ;;  %3568 = vrcp.f32 %v2697_v13 }
 0x5b0   : > { %v3557_v33 = vpop.eup %3556  ;;  %v2698_v12 = vadd.f32 1.0, %v3555_v2 }
 0x5b1   : > { %v2699_v10 = vadd.f32 1.0, %v3557_v33 }
 0x5b2   : > { %3570 = vrcp.f32 %v2698_v12 }
 0x5b3   : > { %v3559_v3 = vpop.eup %3558  ;;  %3572 = vrcp.f32 %v2699_v10 }
 0x5b4   : > { %v3561_v63 = vpop.eup %3560  ;;  %v2700_v6 = vadd.f32 1.0, %v3559_v3 }
 0x5b5   : > { %v2701_v14 = vadd.f32 1.0, %v3561_v63 }
 0x5b6   : > { %3574 = vrcp.f32 %v2700_v6 }
 0x5b7   : > { %v3563_v40 = vpop.eup %3562  ;;  %3576 = vrcp.f32 %v2701_v14 }
 0x5b8   : > { %v3565_v17 = vpop.eup %3564  ;;  %v2719_v16 = vmul.f32 %v3563_v40, %v4932_v54 }
 0x5b9   : > { %v2702_v35 = vadd.f32 1.0, %v3565_v17 }
 0x5ba   : > { %v2735_v26 = vadd.f32 %v2727_v18, %v2719_v16 }
 0x5bb   : > { %v3567_v47 = vpop.eup %3566  ;;  %3578 = vrcp.f32 %v2702_v35 }
 0x5bc   : > { %v3569_v25 = vpop.eup %3568  ;;  %2743 = vst [vmem:[#allocation10] sm:$0xff] %v2735_v26  ;;  %v2720_v50 = vmul.f32 %v3567_v47, %v4937_v42 }
 0x5bd   : > { %v2721_v31 = vmul.f32 %v3569_v25, %v4940_v43 }
 0x5be   : > { %v2736_v38 = vadd.f32 %v2728_v19, %v2720_v50 }
 0x5bf   : > { %v3571_v20 = vpop.eup %3570  ;;  %v2737_v37 = vadd.f32 %v2729_v36, %v2721_v31 }
 0x5c0   : > { %v3573_v62 = vpop.eup %3572  ;;  %2744 = vst [vmem:[#allocation10 + $0x8] sm:$0xff] %v2736_v38  ;;  %v2722_v54 = vmul.f32 %v3571_v20, %v4945_v0 }
 0x5c1   : > { %2745 = vst [vmem:[#allocation10 + $0x10] sm:$0xff] %v2737_v37  ;;  %v2723_v1 = vmul.f32 %v3573_v62, %v4948_v48 }
 0x5c2   : > { %v2738_v28 = vadd.f32 %v2730_v39, %v2722_v54 }
 0x5c3   : > { %v3575_v27 = vpop.eup %3574  ;;  %v2739_v8 = vadd.f32 %v2731_v23, %v2723_v1 }
 0x5c4   : > { %v3577_v42 = vpop.eup %3576  ;;  %2746 = vst [vmem:[#allocation10 + $0x18] sm:$0xff] %v2738_v28  ;;  %v2724_v43 = vmul.f32 %v3575_v27, %v4953_v15 }
 0x5c5   : > { %2747 = vst [vmem:[#allocation10 + $0x20] sm:$0xff] %v2739_v8  ;;  %v2725_v44 = vmul.f32 %v3577_v42, %v4956_v5 }
 0x5c6   : > { %v2740_v57 = vadd.f32 %v2732_v55, %v2724_v43 }
 0x5c7   : > { %v2741_v53 = vadd.f32 %v2733_v46, %v2725_v44 }
 0x5c8   : > { %v3579_v41 = vpop.eup %3578  ;;  %2748 = vst [vmem:[#allocation10 + $0x28] sm:$0xff] %v2740_v57 }
 0x5c9   : > { %2749 = vst [vmem:[#allocation10 + $0x30] sm:$0xff] %v2741_v53  ;;  %v2726_v24 = vmul.f32 %v3579_v41, %v4960_v51 }
 0x5cb   : > { %v2742_v0 = vadd.f32 %v2734_v61, %v2726_v24 }
 0x5cd   : > { %2750 = vst [vmem:[#allocation10 + $0x38] sm:$0xff] %v2742_v0 }
 0x5ce PF: > { %s3771_s20 = smov [#allocation10]   ;;  %p5092_p2 = scmp.eq.s32.totalorder %s3871_s17, 1 }
 0x5cf   : > { %s2762_s28 = sshll.u32 %s3771_s20, 4  ;;  %s2763_s28 = int_to_ptr.vmem [resolvable:$true] %s2762_s28 }
 0x5d0   : > { %s3660_s7 = scalar_lea.vmem %s2763_s28, 1024  ;;  %p3667_p12 = scmp.lt.s32.totalorder %s2763_s28, %s2763_s28 }
 0x5d1   : > { %p3661_p6 = scmp.ne.s32.totalorder %s2763_s28, %s3660_s7  ;;  %p3668_p3 = scmp.lt.s32.totalorder %s3660_s7, %s3660_s7 }
 0x5d3   : > { %p3662_p5 = pnand %p3661_p6, %p5092_p2  ;;  %p3669_p8 = por %p3668_p3, %p3667_p12 }
 0x5d5   : > { %p3663_p0 = pneg %p3662_p5 }
 0x5d7   : > { %p3670_p11 = pnand %p3669_p8, %p3663_p0 }
 0x5d9   : > { %3673 = shalt.err (!%p3670_p11)
}
 0x5da   : > { %s3772_s13 = smov 128   ;;  %s5093_s9 = sld [smem:[#allocation21_spill]] }
 0x5db   : > { %s3773_s10 = smov 8   ;;  %p5094_p13 = pmov %p5092_p2 }
 0x5dc   : > { %s5095_s24 = sld [smem:[#allocation26_spill]]  ;;  %s3071_s25 = sshll.u32 %s3871_s17, 11 }
 0x5dd   : > { %s2778_s29 = sshll.u32 %s4032_s19, 4  ;;  %s5096_s21 = sld [smem:[#allocation27_spill]]  ;;  %s4988_s29 = int_to_ptr.vmem [resolvable:$true] %s2778_s29 }
 0x5de   : > { %s2752_s20 = scalar_lea.sflag [#allocation12], %s493_s23  ;;  %s3684_s7 = scalar_lea.vmem %s4988_s29, 2048 }
 0x5df   : > { %p3685_p9 = scmp.ne.s32.totalorder %s4988_s29, %s3684_s7 }
 0x5e0   : > { %p5097_p4 = scmp.ne.s32.totalorder %s5093_s9, 0 }
 0x5e2   : > { %3267 = dma.vmem_to_hbm [thread:$0]  (%p5094_p13), %s2763_s28, 1024, %s5095_s24, [#allocation6], %s3772_s13, %s3772_s13, %s3773_s10  }
 0x5e3   : > { %s4986_s18 = scalar_lea.hbm %s5096_s21, %s3071_s25  ;;  %p3686_p7 = pnand %p3685_p9, %p5097_p4 }
 0x5e4   : > { %s3774_s28 = smov [#allocation11]  }
 0x5e5   : > { %p3687_p1 = pneg %p3686_p7  ;;  %s3688_s22 = sshll.u32 %s3774_s28, 4  ;;  %s3689_s22 = int_to_ptr.vmem [resolvable:$false] %s3688_s22 }
 0x5e6   : > { %s3690_s19 = scalar_lea.vmem %s3689_s22, 4096  ;;  %p3691_p10 = scmp.lt.s32.totalorder %s4988_s29, %s3689_s22 }
 0x5e7   : > { %p3692_p6 = scmp.lt.s32.totalorder %s3690_s19, %s3684_s7 }
 0x5e9   : > { %p3693_p2 = por %p3692_p6, %p3691_p10 }
 0x5eb   : > { %p3694_p5 = pnand %p3693_p2, %p3687_p1 }
 0x5ed   : > { %3697 = shalt.err (!%p3694_p5)
}
 0x5ee   : > { %s3698_s27 = scalar_lea.hbm %s4986_s18, 2048  ;;  %s3702_s25 = scalar_lea.hbm %s5096_s21, 4096 }
 0x5ef   : > { %p3699_p0 = scmp.ne.s32.totalorder %s4986_s18, %s3698_s27  ;;  %p3703_p8 = scmp.lt.s32.totalorder %s4986_s18, %s5096_s21 }
 0x5f0   : > { %p3704_p11 = scmp.lt.s32.totalorder %s3702_s25, %s3698_s27 }
 0x5f1   : > { %p3700_p12 = pnand %p3699_p0, %p5097_p4 }
 0x5f2   : > { %p3705_p13 = por %p3704_p11, %p3703_p8 }
 0x5f3   : > { %p3701_p3 = pneg %p3700_p12 }
 0x5f5   : > { %p3706_p9 = pnand %p3705_p13, %p3701_p3 }
 0x5f7   : > { %3709 = shalt.err (!%p3706_p9)
}
 0x5f8   : > { %3268 = dma.vmem_to_hbm [thread:$0]  (%p5097_p4), %s4988_s29, 2048, %s4986_s18, %s2752_s20, %s3772_s13, %s3772_s13, %s3773_s10  }
 0x5f9   : > { %p5098_p7 = scmp.eq.s32.totalorder %s3871_s17, 1 }
 0x5fb   : > { %3739 = dma.done.wait (%p5098_p7), [#allocation6], 1024   ;;  %p5099_p1 = pmov %p5098_p7 }
 0x5fd   : > { %3741 = vsyncadd (%p5099_p1), [#allocation6], 4294966272 }
 0x5fe PF: > { %s5100_s7 = sld [smem:[#allocation18_spill]]  ;;  %p5103_p6 = scmp.ge.s32.totalorder %s3760_s16, 2 }
 0x5ff   : > { %s5101_s28 = sld [smem:[#allocation22_spill]] }
 0x604   : > { %s2797_s22 = sand.u32 1, %s5100_s7  }
 0x605   : > { %p5102_p10 = scmp.ne.s32.totalorder %s5101_s28, 0  ;;  %s2798_s9 = scalar_lea.sflag [#allocation12], %s2797_s22 }
 0x607   : > { %p3284_p2 = pnand %p5103_p6, %p5102_p10 }
 0x609   : > { %p3285_p5 = pneg %p3284_p2 }
 0x60b   : > { %3743 = dma.done.wait (%p3285_p5), %s2798_s9, 2048  }
 0x60c   : > { %3745 = vsyncadd (%p3285_p5), %s2798_s9, 4294965248  ;;  %s5104_s16 = sld [smem:[#allocation19_spill]]  ;;  %s5106_s29 = smov %s3752_s30 }
 0x60d   : > { %s5105_s13 = sld [smem:[#allocation20_spill]]  ;;  %s5107_s30 = smov %s3756_s15 }
 0x612   : > { %p30_p4 = scmp.ge.s32.totalorder %s5104_s16, 4  }
 0x613   : > { %s5108_s15 = smov %s5105_s13 }
 0x614   :  { %32 = sbr.rel (!%p30_p4) target bundleno = 13 (0xd), region = 152 }
 0x619   :  { %2803 = vsyncpa [#allocation5], 1 }
 0x61a   :  { %2805 = vsyncpa [#allocation5 + $0x1], 1 }
 0x61b   :  { %2806 = vsyncpa [#allocation8], 1 }
 0x61c   :  { %2808 = vsyncpa [#allocation8 + $0x1], 1 }
 0x61d   :  { %2809 = vsyncpa [#allocation6], 1 }
 0x61e   :  { %2811 = vsyncpa [#allocation6 + $0x1], 1 }
 0x61f   :  { %2812 = vsyncpa [#allocation12], 1 }
 0x620   :  { %2814 = vsyncpa [#allocation12 + $0x1], 1 }

</bundles_post_ra>
